<compile_context>
chip_gen: v7x
topology: tpu7x:2x2x1
jax: 0.10.0
libtpu: 0.0.40
codegen_flags: <defaults>
</compile_context>

<pallas_src>
import functools

import jax
import jax.numpy as jnp
from jax import lax
from jax.experimental import pallas as pl
from jax.experimental.pallas import tpu as pltpu


_PAD_MODE = {"reflect": "reflect", "replicate": "edge", "zero": "constant"}


def _compiler_params():
    try:
        cap = pltpu.get_tpu_info().vmem_capacity_bytes
    except Exception:                      # noqa: BLE001 - conservative fallback
        cap = 64 * 1024 * 1024
    return pltpu.CompilerParams(
        dimension_semantics=("parallel",),
        vmem_limit_bytes=int(cap * 3 // 4),
    )


# ----------------------------------------------------------------------------
# In-kernel helpers (shared by the conv-block and fused res-block kernels)
# ----------------------------------------------------------------------------

def _valid_mask(q, wp, ow):
    """(1, q) bool mask: True on real output columns, False on wrap/pad."""
    col = lax.broadcasted_iota(jnp.int32, (1, q), 1)
    return (col % wp) < ow


def _instance_norm(y, valid, cnt, eps):
    """InstanceNorm2d(affine=False): per-channel mean / biased var over H*W."""
    yv = jnp.where(valid, y, 0.0)
    mean = jnp.sum(yv, axis=1, keepdims=True) / cnt
    d = jnp.where(valid, y - mean, 0.0)
    var = jnp.sum(d * d, axis=1, keepdims=True) / cnt
    return (y - mean) * lax.rsqrt(var + eps)


def _layer_norm(y, valid, cnt_total, gamma, beta, eps):
    """MUNIT-style LayerNorm: per-sample mean + *unbiased* std over C*H*W,
    normalized as (x - mean) / (std + eps), then per-channel affine."""
    yv = jnp.where(valid, y, 0.0)
    s = jnp.sum(jnp.sum(yv, axis=1, keepdims=True), axis=0, keepdims=True)
    mean = s / cnt_total
    d = jnp.where(valid, y - mean, 0.0)
    ss = jnp.sum(jnp.sum(d * d, axis=1, keepdims=True), axis=0, keepdims=True)
    std = jnp.sqrt(ss / (cnt_total - 1.0))
    return (y - mean) / (std + eps) * gamma + beta


def _im2col(dst_ref, read_slice, taps, kw, wp, cin):
    """Fill the (taps*cin, Q) folded operand with taps static slice copies."""
    for t in range(taps):
        off = (t // kw) * wp + (t % kw)
        dst_ref[t * cin:(t + 1) * cin, :] = read_slice(off)


# ----------------------------------------------------------------------------
# Fused Conv2dBlock kernel: im2col -> one matmul -> bias -> norm -> act
# ----------------------------------------------------------------------------

def _conv_block_kernel(*refs, taps, kw, wp, ow, norm, relu, eps):
    x_ref, w_ref, b_ref = refs[0], refs[1], refs[2]
    i = 3
    if norm == "ln":
        g_ref, be_ref = refs[i], refs[i + 1]
        i += 2
    o_ref, f_ref = refs[i], refs[i + 1]

    cin = x_ref.shape[1]
    cout, q = o_ref.shape[1], o_ref.shape[2]
    oh = q // wp

    _im2col(f_ref, lambda off: x_ref[0, :, off:off + q], taps, kw, wp, cin)

    y = jnp.dot(w_ref[...], f_ref[...],
                preferred_element_type=jnp.float32) + b_ref[...]
    valid = _valid_mask(q, wp, ow)

    if norm == "in":
        y = _instance_norm(y, valid, float(oh * ow), eps)
    elif norm == "ln":
        y = _layer_norm(y, valid, float(cout * oh * ow),
                        g_ref[...], be_ref[...], eps)
    if relu:
        y = jnp.maximum(y, 0.0)
    o_ref[0] = y.astype(o_ref.dtype)


# ----------------------------------------------------------------------------
# Fused ResBlock kernel: conv1+LN+ReLU -> in-VMEM reflect pad -> conv2+LN -> +x
# ----------------------------------------------------------------------------

def _res_block_kernel(x_ref, w1_ref, b1_ref, g1_ref, be1_ref,
                      w2_ref, b2_ref, g2_ref, be2_ref,
                      o_ref, f_ref, p_ref, *, h, w, eps):
    c = o_ref.shape[1]
    wp = w + 2                       # flat row stride, shared by both convs
    q = h * wp
    valid = _valid_mask(q, wp, w)
    cnt = float(c * h * w)

    # ---- conv1 (3x3) as a single matmul, then LayerNorm + ReLU --------------
    _im2col(f_ref, lambda off: x_ref[0, :, off:off + q], 9, 3, wp, c)
    y1 = jnp.dot(w1_ref[...], f_ref[...],
                 preferred_element_type=jnp.float32) + b1_ref[...]
    y1 = _layer_norm(y1, valid, cnt, g1_ref[...], be1_ref[...], eps)
    y1 = jnp.maximum(y1, 0.0)

    # ---- rebuild the reflect-padded conv2 input entirely in VMEM ------------
    # conv1's flat output already has row stride (w+2) == conv2's padded width,
    # so the interior of the padded image is one contiguous store.
    p_ref[:, wp + 1:wp + 1 + q] = y1.astype(p_ref.dtype)
    for r in range(1, h + 1):                       # reflect left/right edges
        base = r * wp
        p_ref[:, base:base + 1] = p_ref[:, base + 2:base + 3]
        p_ref[:, base + w + 1:base + w + 2] = p_ref[:, base + w - 1:base + w]
    p_ref[:, 0:wp] = p_ref[:, 2 * wp:3 * wp]        # reflect top row
    p_ref[:, (h + 1) * wp:(h + 2) * wp] = p_ref[:, (h - 1) * wp:h * wp]
    # zero the 2-element wrap tail so uninitialized VMEM can't produce NaNs
    p_ref[:, (h + 2) * wp:(h + 2) * wp + 2] = jnp.zeros((c, 2), jnp.bfloat16)

    # ---- conv2 (3x3) as a single matmul, LayerNorm, fused residual ----------
    _im2col(f_ref, lambda off: p_ref[:, off:off + q], 9, 3, wp, c)
    y2 = jnp.dot(w2_ref[...], f_ref[...],
                 preferred_element_type=jnp.float32) + b2_ref[...]
    y2 = _layer_norm(y2, valid, cnt, g2_ref[...], be2_ref[...], eps)
    # residual = interior of the already-resident reflect-padded block input
    y2 = y2 + x_ref[0, :, wp + 1:wp + 1 + q].astype(jnp.float32)
    o_ref[0] = y2.astype(o_ref.dtype)


# ----------------------------------------------------------------------------
# Host-side glue (pure layout work: padding, space-to-depth, weight folding)
# ----------------------------------------------------------------------------

def _space_to_depth(xp, w, s):
    """Rewrite a stride-s conv as a stride-1 conv over a pixel-unshuffled input."""
    n, c, hp, wp = xp.shape
    cout, _, kh, kw = w.shape
    assert hp % s == 0 and wp % s == 0 and kh % s == 0 and kw % s == 0
    xs = xp.reshape(n, c, hp // s, s, wp // s, s)
    xs = xs.transpose(0, 1, 3, 5, 2, 4).reshape(n, c * s * s, hp // s, wp // s)
    ws = w.reshape(cout, c, kh // s, s, kw // s, s)
    ws = ws.transpose(0, 1, 3, 5, 2, 4).reshape(cout, c * s * s, kh // s, kw // s)
    return xs, ws


def _fold_weights(w):
    cout, cin, kh, kw = w.shape
    wf = jnp.transpose(w, (0, 2, 3, 1)).reshape(cout, kh * kw * cin)
    return wf.astype(jnp.bfloat16)


def conv2d_block(x, params, stride, padding, norm, activation, pad_type):
    """Conv2dBlock forward: pad -> conv(bias) -> norm -> activation."""
    w, b = params["w"], params["b"]
    n = x.shape[0]

    if padding > 0:
        xp = jnp.pad(x, ((0, 0), (0, 0), (padding, padding), (padding, padding)),
                     mode=_PAD_MODE[pad_type])
    else:
        xp = x
    if stride > 1:
        xp, w = _space_to_depth(xp, w, stride)   # kernel only sees unit stride

    _, cin, hp, wp = xp.shape
    # Pad Cin to a multiple of 8 so every im2col sub-block store in the kernel
    # is sublane-aligned (only the small-channel stem needs this).
    if cin % 8:
        pad_c = (-cin) % 8
        xp = jnp.pad(xp, ((0, 0), (0, pad_c), (0, 0), (0, 0)))
        w = jnp.pad(w, ((0, 0), (0, pad_c), (0, 0), (0, 0)))
        cin += pad_c

    cout, _, kh, kw = w.shape
    oh, ow = hp - kh + 1, wp - kw + 1
    q = oh * wp                      # flat output row length (incl. wrap cols)
    lp = hp * wp + (kw - 1)          # flat padded input length (+ zero tail)
    taps = kh * kw
    k_dim = taps * cin

    x_flat = jnp.pad(xp.reshape(n, cin, hp * wp),
                     ((0, 0), (0, 0), (0, kw - 1))).astype(jnp.bfloat16)
    w_folded = _fold_weights(w)
    b_col = b.reshape(cout, 1).astype(jnp.float32)

    relu = activation == "relu"
    if activation not in ("relu", "none"):
        # TODO(synk): lrelu/prelu/selu/tanh/sigmoid unused by ContentEncoder default
        raise NotImplementedError(activation)
    if norm not in ("in", "ln", "none"):
        # TODO(synk): 'bn'/'grp'/'sn' unused by the ContentEncoder default path
        raise NotImplementedError(norm)

    args = [x_flat, w_folded, b_col]
    in_specs = [
        pl.BlockSpec((1, cin, lp), lambda i: (i, 0, 0)),
        pl.BlockSpec((cout, k_dim), lambda i: (0, 0)),
        pl.BlockSpec((cout, 1), lambda i: (0, 0)),
    ]
    if norm == "ln":
        args += [params["gamma"].reshape(cout, 1).astype(jnp.float32),
                 params["beta"].reshape(cout, 1).astype(jnp.float32)]
        in_specs += [pl.BlockSpec((cout, 1), lambda i: (0, 0)),
                     pl.BlockSpec((cout, 1), lambda i: (0, 0))]

    kern = functools.partial(_conv_block_kernel, taps=taps, kw=kw, wp=wp,
                             ow=ow, norm=norm, relu=relu, eps=1e-5)

    out_q = pl.pallas_call(
        kern,
        out_shape=jax.ShapeDtypeStruct((n, cout, q), jnp.bfloat16),
        grid=(n,),
        in_specs=in_specs,
        out_specs=pl.BlockSpec((1, cout, q), lambda i: (i, 0, 0)),
        scratch_shapes=[pltpu.VMEM((k_dim, q), jnp.bfloat16)],
        compiler_params=_compiler_params(),
    )(*args)

    # Drop the wrap/pad columns -> NCHW (free XLA reshape + slice).
    return out_q.reshape(n, cout, oh, wp)[:, :, :, :ow]


def res_block(x, params, activ, pad_type):
    """Fused ResBlock: conv1(LN, act) + conv2(LN, none) + residual, one call."""
    if activ != "relu":
        raise NotImplementedError(activ)
    n, c, h, w = x.shape
    assert c % 8 == 0, "res-block channels must be a multiple of 8"
    wp = w + 2
    q = h * wp
    lp = (h + 2) * wp + 2

    xp = jnp.pad(x, ((0, 0), (0, 0), (1, 1), (1, 1)), mode=_PAD_MODE[pad_type])
    x_flat = jnp.pad(xp.reshape(n, c, (h + 2) * wp),
                     ((0, 0), (0, 0), (0, 2))).astype(jnp.bfloat16)

    def col(v):
        return v.reshape(c, 1).astype(jnp.float32)

    p1, p2 = params["conv1"], params["conv2"]
    args = [x_flat,
            _fold_weights(p1["w"]), col(p1["b"]), col(p1["gamma"]), col(p1["beta"]),
            _fold_weights(p2["w"]), col(p2["b"]), col(p2["gamma"]), col(p2["beta"])]

    vec_spec = pl.BlockSpec((c, 1), lambda i: (0, 0))
    mat_spec = pl.BlockSpec((c, 9 * c), lambda i: (0, 0))
    in_specs = [pl.BlockSpec((1, c, lp), lambda i: (i, 0, 0)),
                mat_spec, vec_spec, vec_spec, vec_spec,
                mat_spec, vec_spec, vec_spec, vec_spec]

    kern = functools.partial(_res_block_kernel, h=h, w=w, eps=1e-5)

    out_q = pl.pallas_call(
        kern,
        out_shape=jax.ShapeDtypeStruct((n, c, q), jnp.bfloat16),
        grid=(n,),
        in_specs=in_specs,
        out_specs=pl.BlockSpec((1, c, q), lambda i: (i, 0, 0)),
        scratch_shapes=[pltpu.VMEM((9 * c, q), jnp.bfloat16),   # im2col operand
                        pltpu.VMEM((c, lp), jnp.bfloat16)],     # padded conv2 input
        compiler_params=_compiler_params(),
    )(*args)

    return out_q.reshape(n, c, h, wp)[:, :, :, :w]


def content_encoder_forward(x, params, n_downsample, n_res, norm, activ,
                            pad_type):
    x = conv2d_block(x, params["stem"], 1, 3, norm, activ, pad_type)
    for i in range(n_downsample):
        x = conv2d_block(x, params["down"][i], 2, 1, norm, activ, pad_type)
    for i in range(n_res):
        x = res_block(x, params["res"][i], activ, pad_type)
    if "final" in params:
        x = conv2d_block(x, params["final"], 1, 1, norm, activ, pad_type)
    return x.astype(jnp.float32)


# ----------------------------------------------------------------------------
# Deterministic parameter init (shapes follow the PyTorch __init__)
# ----------------------------------------------------------------------------

def _conv_params(key, cin, cout, k):
    k1, k2 = jax.random.split(key)
    scale = 1.0 / (cin * k * k) ** 0.5
    return {
        "w": jax.random.uniform(k1, (cout, cin, k, k), jnp.float32, -scale, scale),
        "b": jax.random.uniform(k2, (cout,), jnp.float32, -scale, scale),
    }


def init_params(key, n_downsample, n_res, input_dim, output_dim, dim):
    params = {}
    key, sub = jax.random.split(key)
    params["stem"] = _conv_params(sub, input_dim, dim, 7)

    d = dim
    params["down"] = []
    for _ in range(n_downsample):
        key, sub = jax.random.split(key)
        params["down"].append(_conv_params(sub, d, 2 * d, 4))
        d *= 2

    params["res"] = []
    for _ in range(n_res):
        blk = {}
        for name in ("conv1", "conv2"):
            key, s1, s2 = jax.random.split(key, 3)
            p = _conv_params(s1, d, d, 3)
            p["gamma"] = jax.random.uniform(s2, (d,), jnp.float32)  # uniform_() in [0,1)
            p["beta"] = jnp.zeros((d,), jnp.float32)
            blk[name] = p
        params["res"].append(blk)

    if d != output_dim:
        key, sub = jax.random.split(key)
        params["final"] = _conv_params(sub, d, output_dim, 3)
    return params


# ----------------------------------------------------------------------------
if __name__ == "__main__":
    # ContentEncoder(n_downsample=2, n_res=2, input_dim=4, output_dim=32, dim=8,
    #                norm='in', activ='relu', pad_type='reflect')
    n_downsample, n_res = 2, 2
    input_dim, dim = 4, 8
    output_dim = dim * (2 ** n_downsample)   # == 32 -> no trailing conv block
    norm, activ, pad_type = "in", "relu", "reflect"

    key = jax.random.PRNGKey(0)
    key, xkey = jax.random.split(key)
    x = jax.random.normal(xkey, (2, input_dim, 16, 16), jnp.float32)   # NCHW

    params = init_params(key, n_downsample, n_res, input_dim, output_dim, dim)

    fwd = jax.jit(functools.partial(
        content_encoder_forward, n_downsample=n_downsample, n_res=n_res,
        norm=norm, activ=activ, pad_type=pad_type))
    out = jax.block_until_ready(fwd(x, params))

    assert out.shape == (2, dim * (2 ** n_downsample), 4, 4), out.shape
    assert bool(jnp.all(jnp.isfinite(out)))
    print("KERNEL_OK")
</pallas_src>

<mosaic_0001>
module attributes {stable_mosaic.version = 11 : i64} {
  func.func @_conv_block_kernel(%arg0: i32, %arg1: memref<1x8x490xbf16, #tpu.memory_space<vmem>>, %arg2: memref<8x392xbf16, #tpu.memory_space<vmem>>, %arg3: memref<8x1xf32, #tpu.memory_space<vmem>>, %arg4: memref<1x8x352xbf16, #tpu.memory_space<vmem>>, %arg5: memref<392x352xbf16, #tpu.memory_space<vmem>>) attributes {dimension_semantics = [#tpu.dimension_semantics<parallel>], iteration_bounds = array<i64: 2>, scalar_prefetch = 0 : i64, scratch_operands = 1 : i64, tpu.core_type = #tpu.core_type<tc>, window_params = [{transform_indices = @transform_0, window_bounds = array<i64: 1, 8, 490>}, {pipeline_mode = #tpu.pipeline_mode<synchronous>, transform_indices = @transform_1, window_bounds = array<i64: 8, 392>}, {pipeline_mode = #tpu.pipeline_mode<synchronous>, transform_indices = @transform_2, window_bounds = array<i64: 8, 1>}, {transform_indices = @transform_3, window_bounds = array<i64: 1, 8, 352>}]} {
    %c0 = arith.constant 0 : index
    %c0_0 = arith.constant 0 : index
    %c0_1 = arith.constant 0 : index
    %0 = vector.load %arg1[%c0, %c0_0, %c0_1] : memref<1x8x490xbf16, #tpu.memory_space<vmem>>, vector<1x8x352xbf16>
    %1 = vector.shape_cast %0 : vector<1x8x352xbf16> to vector<8x352xbf16>
    %c0_2 = arith.constant 0 : index
    %c0_3 = arith.constant 0 : index
    %2 = vector.load %arg5[%c0_2, %c0_3] : memref<392x352xbf16, #tpu.memory_space<vmem>>, vector<8x352xbf16>
    tpu.vector_store %arg5[%c0_2, %c0_3], %1 {strides = array<i32>} : memref<392x352xbf16, #tpu.memory_space<vmem>>, vector<8x352xbf16>,
    %c0_4 = arith.constant 0 : index
    %c0_5 = arith.constant 0 : index
    %c1 = arith.constant 1 : index
    %3 = vector.load %arg1[%c0_4, %c0_5, %c1] : memref<1x8x490xbf16, #tpu.memory_space<vmem>>, vector<1x8x352xbf16>
    %4 = vector.shape_cast %3 : vector<1x8x352xbf16> to vector<8x352xbf16>
    %c8 = arith.constant 8 : index
    %c0_6 = arith.constant 0 : index
    %5 = vector.load %arg5[%c8, %c0_6] : memref<392x352xbf16, #tpu.memory_space<vmem>>, vector<8x352xbf16>
    tpu.vector_store %arg5[%c8, %c0_6], %4 {strides = array<i32>} : memref<392x352xbf16, #tpu.memory_space<vmem>>, vector<8x352xbf16>,
    %c0_7 = arith.constant 0 : index
    %c0_8 = arith.constant 0 : index
    %c2 = arith.constant 2 : index
    %6 = vector.load %arg1[%c0_7, %c0_8, %c2] : memref<1x8x490xbf16, #tpu.memory_space<vmem>>, vector<1x8x352xbf16>
    %7 = vector.shape_cast %6 : vector<1x8x352xbf16> to vector<8x352xbf16>
    %c16 = arith.constant 16 : index
    %c0_9 = arith.constant 0 : index
    %8 = vector.load %arg5[%c16, %c0_9] : memref<392x352xbf16, #tpu.memory_space<vmem>>, vector<8x352xbf16>
    tpu.vector_store %arg5[%c16, %c0_9], %7 {strides = array<i32>} : memref<392x352xbf16, #tpu.memory_space<vmem>>, vector<8x352xbf16>,
    %c0_10 = arith.constant 0 : index
    %c0_11 = arith.constant 0 : index
    %c3 = arith.constant 3 : index
    %9 = vector.load %arg1[%c0_10, %c0_11, %c3] : memref<1x8x490xbf16, #tpu.memory_space<vmem>>, vector<1x8x352xbf16>
    %10 = vector.shape_cast %9 : vector<1x8x352xbf16> to vector<8x352xbf16>
    %c24 = arith.constant 24 : index
    %c0_12 = arith.constant 0 : index
    %11 = vector.load %arg5[%c24, %c0_12] : memref<392x352xbf16, #tpu.memory_space<vmem>>, vector<8x352xbf16>
    tpu.vector_store %arg5[%c24, %c0_12], %10 {strides = array<i32>} : memref<392x352xbf16, #tpu.memory_space<vmem>>, vector<8x352xbf16>,
    %c0_13 = arith.constant 0 : index
    %c0_14 = arith.constant 0 : index
    %c4 = arith.constant 4 : index
    %12 = vector.load %arg1[%c0_13, %c0_14, %c4] : memref<1x8x490xbf16, #tpu.memory_space<vmem>>, vector<1x8x352xbf16>
    %13 = vector.shape_cast %12 : vector<1x8x352xbf16> to vector<8x352xbf16>
    %c32 = arith.constant 32 : index
    %c0_15 = arith.constant 0 : index
    %14 = vector.load %arg5[%c32, %c0_15] : memref<392x352xbf16, #tpu.memory_space<vmem>>, vector<8x352xbf16>
    tpu.vector_store %arg5[%c32, %c0_15], %13 {strides = array<i32>} : memref<392x352xbf16, #tpu.memory_space<vmem>>, vector<8x352xbf16>,
    %c0_16 = arith.constant 0 : index
    %c0_17 = arith.constant 0 : index
    %c5 = arith.constant 5 : index
    %15 = vector.load %arg1[%c0_16, %c0_17, %c5] : memref<1x8x490xbf16, #tpu.memory_space<vmem>>, vector<1x8x352xbf16>
    %16 = vector.shape_cast %15 : vector<1x8x352xbf16> to vector<8x352xbf16>
    %c40 = arith.constant 40 : index
    %c0_18 = arith.constant 0 : index
    %17 = vector.load %arg5[%c40, %c0_18] : memref<392x352xbf16, #tpu.memory_space<vmem>>, vector<8x352xbf16>
    tpu.vector_store %arg5[%c40, %c0_18], %16 {strides = array<i32>} : memref<392x352xbf16, #tpu.memory_space<vmem>>, vector<8x352xbf16>,
    %c0_19 = arith.constant 0 : index
    %c0_20 = arith.constant 0 : index
    %c6 = arith.constant 6 : index
    %18 = vector.load %arg1[%c0_19, %c0_20, %c6] : memref<1x8x490xbf16, #tpu.memory_space<vmem>>, vector<1x8x352xbf16>
    %19 = vector.shape_cast %18 : vector<1x8x352xbf16> to vector<8x352xbf16>
    %c48 = arith.constant 48 : index
    %c0_21 = arith.constant 0 : index
    %20 = vector.load %arg5[%c48, %c0_21] : memref<392x352xbf16, #tpu.memory_space<vmem>>, vector<8x352xbf16>
    tpu.vector_store %arg5[%c48, %c0_21], %19 {strides = array<i32>} : memref<392x352xbf16, #tpu.memory_space<vmem>>, vector<8x352xbf16>,
    %c0_22 = arith.constant 0 : index
    %c0_23 = arith.constant 0 : index
    %c22 = arith.constant 22 : index
    %21 = vector.load %arg1[%c0_22, %c0_23, %c22] : memref<1x8x490xbf16, #tpu.memory_space<vmem>>, vector<1x8x352xbf16>
    %22 = vector.shape_cast %21 : vector<1x8x352xbf16> to vector<8x352xbf16>
    %c56 = arith.constant 56 : index
    %c0_24 = arith.constant 0 : index
    %23 = vector.load %arg5[%c56, %c0_24] : memref<392x352xbf16, #tpu.memory_space<vmem>>, vector<8x352xbf16>
    tpu.vector_store %arg5[%c56, %c0_24], %22 {strides = array<i32>} : memref<392x352xbf16, #tpu.memory_space<vmem>>, vector<8x352xbf16>,
    %c0_25 = arith.constant 0 : index
    %c0_26 = arith.constant 0 : index
    %c23 = arith.constant 23 : index
    %24 = vector.load %arg1[%c0_25, %c0_26, %c23] : memref<1x8x490xbf16, #tpu.memory_space<vmem>>, vector<1x8x352xbf16>
    %25 = vector.shape_cast %24 : vector<1x8x352xbf16> to vector<8x352xbf16>
    %c64 = arith.constant 64 : index
    %c0_27 = arith.constant 0 : index
    %26 = vector.load %arg5[%c64, %c0_27] : memref<392x352xbf16, #tpu.memory_space<vmem>>, vector<8x352xbf16>
    tpu.vector_store %arg5[%c64, %c0_27], %25 {strides = array<i32>} : memref<392x352xbf16, #tpu.memory_space<vmem>>, vector<8x352xbf16>,
    %c0_28 = arith.constant 0 : index
    %c0_29 = arith.constant 0 : index
    %c24_30 = arith.constant 24 : index
    %27 = vector.load %arg1[%c0_28, %c0_29, %c24_30] : memref<1x8x490xbf16, #tpu.memory_space<vmem>>, vector<1x8x352xbf16>
    %28 = vector.shape_cast %27 : vector<1x8x352xbf16> to vector<8x352xbf16>
    %c72 = arith.constant 72 : index
    %c0_31 = arith.constant 0 : index
    %29 = vector.load %arg5[%c72, %c0_31] : memref<392x352xbf16, #tpu.memory_space<vmem>>, vector<8x352xbf16>
    tpu.vector_store %arg5[%c72, %c0_31], %28 {strides = array<i32>} : memref<392x352xbf16, #tpu.memory_space<vmem>>, vector<8x352xbf16>,
    %c0_32 = arith.constant 0 : index
    %c0_33 = arith.constant 0 : index
    %c25 = arith.constant 25 : index
    %30 = vector.load %arg1[%c0_32, %c0_33, %c25] : memref<1x8x490xbf16, #tpu.memory_space<vmem>>, vector<1x8x352xbf16>
    %31 = vector.shape_cast %30 : vector<1x8x352xbf16> to vector<8x352xbf16>
    %c80 = arith.constant 80 : index
    %c0_34 = arith.constant 0 : index
    %32 = vector.load %arg5[%c80, %c0_34] : memref<392x352xbf16, #tpu.memory_space<vmem>>, vector<8x352xbf16>
    tpu.vector_store %arg5[%c80, %c0_34], %31 {strides = array<i32>} : memref<392x352xbf16, #tpu.memory_space<vmem>>, vector<8x352xbf16>,
    %c0_35 = arith.constant 0 : index
    %c0_36 = arith.constant 0 : index
    %c26 = arith.constant 26 : index
    %33 = vector.load %arg1[%c0_35, %c0_36, %c26] : memref<1x8x490xbf16, #tpu.memory_space<vmem>>, vector<1x8x352xbf16>
    %34 = vector.shape_cast %33 : vector<1x8x352xbf16> to vector<8x352xbf16>
    %c88 = arith.constant 88 : index
    %c0_37 = arith.constant 0 : index
    %35 = vector.load %arg5[%c88, %c0_37] : memref<392x352xbf16, #tpu.memory_space<vmem>>, vector<8x352xbf16>
    tpu.vector_store %arg5[%c88, %c0_37], %34 {strides = array<i32>} : memref<392x352xbf16, #tpu.memory_space<vmem>>, vector<8x352xbf16>,
    %c0_38 = arith.constant 0 : index
    %c0_39 = arith.constant 0 : index
    %c27 = arith.constant 27 : index
    %36 = vector.load %arg1[%c0_38, %c0_39, %c27] : memref<1x8x490xbf16, #tpu.memory_space<vmem>>, vector<1x8x352xbf16>
    %37 = vector.shape_cast %36 : vector<1x8x352xbf16> to vector<8x352xbf16>
    %c96 = arith.constant 96 : index
    %c0_40 = arith.constant 0 : index
    %38 = vector.load %arg5[%c96, %c0_40] : memref<392x352xbf16, #tpu.memory_space<vmem>>, vector<8x352xbf16>
    tpu.vector_store %arg5[%c96, %c0_40], %37 {strides = array<i32>} : memref<392x352xbf16, #tpu.memory_space<vmem>>, vector<8x352xbf16>,
    %c0_41 = arith.constant 0 : index
    %c0_42 = arith.constant 0 : index
    %c28 = arith.constant 28 : index
    %39 = vector.load %arg1[%c0_41, %c0_42, %c28] : memref<1x8x490xbf16, #tpu.memory_space<vmem>>, vector<1x8x352xbf16>
    %40 = vector.shape_cast %39 : vector<1x8x352xbf16> to vector<8x352xbf16>
    %c104 = arith.constant 104 : index
    %c0_43 = arith.constant 0 : index
    %41 = vector.load %arg5[%c104, %c0_43] : memref<392x352xbf16, #tpu.memory_space<vmem>>, vector<8x352xbf16>
    tpu.vector_store %arg5[%c104, %c0_43], %40 {strides = array<i32>} : memref<392x352xbf16, #tpu.memory_space<vmem>>, vector<8x352xbf16>,
    %c0_44 = arith.constant 0 : index
    %c0_45 = arith.constant 0 : index
    %c44 = arith.constant 44 : index
    %42 = vector.load %arg1[%c0_44, %c0_45, %c44] : memref<1x8x490xbf16, #tpu.memory_space<vmem>>, vector<1x8x352xbf16>
    %43 = vector.shape_cast %42 : vector<1x8x352xbf16> to vector<8x352xbf16>
    %c112 = arith.constant 112 : index
    %c0_46 = arith.constant 0 : index
    %44 = vector.load %arg5[%c112, %c0_46] : memref<392x352xbf16, #tpu.memory_space<vmem>>, vector<8x352xbf16>
    tpu.vector_store %arg5[%c112, %c0_46], %43 {strides = array<i32>} : memref<392x352xbf16, #tpu.memory_space<vmem>>, vector<8x352xbf16>,
    %c0_47 = arith.constant 0 : index
    %c0_48 = arith.constant 0 : index
    %c45 = arith.constant 45 : index
    %45 = vector.load %arg1[%c0_47, %c0_48, %c45] : memref<1x8x490xbf16, #tpu.memory_space<vmem>>, vector<1x8x352xbf16>
    %46 = vector.shape_cast %45 : vector<1x8x352xbf16> to vector<8x352xbf16>
    %c120 = arith.constant 120 : index
    %c0_49 = arith.constant 0 : index
    %47 = vector.load %arg5[%c120, %c0_49] : memref<392x352xbf16, #tpu.memory_space<vmem>>, vector<8x352xbf16>
    tpu.vector_store %arg5[%c120, %c0_49], %46 {strides = array<i32>} : memref<392x352xbf16, #tpu.memory_space<vmem>>, vector<8x352xbf16>,
    %c0_50 = arith.constant 0 : index
    %c0_51 = arith.constant 0 : index
    %c46 = arith.constant 46 : index
    %48 = vector.load %arg1[%c0_50, %c0_51, %c46] : memref<1x8x490xbf16, #tpu.memory_space<vmem>>, vector<1x8x352xbf16>
    %49 = vector.shape_cast %48 : vector<1x8x352xbf16> to vector<8x352xbf16>
    %c128 = arith.constant 128 : index
    %c0_52 = arith.constant 0 : index
    %50 = vector.load %arg5[%c128, %c0_52] : memref<392x352xbf16, #tpu.memory_space<vmem>>, vector<8x352xbf16>
    tpu.vector_store %arg5[%c128, %c0_52], %49 {strides = array<i32>} : memref<392x352xbf16, #tpu.memory_space<vmem>>, vector<8x352xbf16>,
    %c0_53 = arith.constant 0 : index
    %c0_54 = arith.constant 0 : index
    %c47 = arith.constant 47 : index
    %51 = vector.load %arg1[%c0_53, %c0_54, %c47] : memref<1x8x490xbf16, #tpu.memory_space<vmem>>, vector<1x8x352xbf16>
    %52 = vector.shape_cast %51 : vector<1x8x352xbf16> to vector<8x352xbf16>
    %c136 = arith.constant 136 : index
    %c0_55 = arith.constant 0 : index
    %53 = vector.load %arg5[%c136, %c0_55] : memref<392x352xbf16, #tpu.memory_space<vmem>>, vector<8x352xbf16>
    tpu.vector_store %arg5[%c136, %c0_55], %52 {strides = array<i32>} : memref<392x352xbf16, #tpu.memory_space<vmem>>, vector<8x352xbf16>,
    %c0_56 = arith.constant 0 : index
    %c0_57 = arith.constant 0 : index
    %c48_58 = arith.constant 48 : index
    %54 = vector.load %arg1[%c0_56, %c0_57, %c48_58] : memref<1x8x490xbf16, #tpu.memory_space<vmem>>, vector<1x8x352xbf16>
    %55 = vector.shape_cast %54 : vector<1x8x352xbf16> to vector<8x352xbf16>
    %c144 = arith.constant 144 : index
    %c0_59 = arith.constant 0 : index
    %56 = vector.load %arg5[%c144, %c0_59] : memref<392x352xbf16, #tpu.memory_space<vmem>>, vector<8x352xbf16>
    tpu.vector_store %arg5[%c144, %c0_59], %55 {strides = array<i32>} : memref<392x352xbf16, #tpu.memory_space<vmem>>, vector<8x352xbf16>,
    %c0_60 = arith.constant 0 : index
    %c0_61 = arith.constant 0 : index
    %c49 = arith.constant 49 : index
    %57 = vector.load %arg1[%c0_60, %c0_61, %c49] : memref<1x8x490xbf16, #tpu.memory_space<vmem>>, vector<1x8x352xbf16>
    %58 = vector.shape_cast %57 : vector<1x8x352xbf16> to vector<8x352xbf16>
    %c152 = arith.constant 152 : index
    %c0_62 = arith.constant 0 : index
    %59 = vector.load %arg5[%c152, %c0_62] : memref<392x352xbf16, #tpu.memory_space<vmem>>, vector<8x352xbf16>
    tpu.vector_store %arg5[%c152, %c0_62], %58 {strides = array<i32>} : memref<392x352xbf16, #tpu.memory_space<vmem>>, vector<8x352xbf16>,
    %c0_63 = arith.constant 0 : index
    %c0_64 = arith.constant 0 : index
    %c50 = arith.constant 50 : index
    %60 = vector.load %arg1[%c0_63, %c0_64, %c50] : memref<1x8x490xbf16, #tpu.memory_space<vmem>>, vector<1x8x352xbf16>
    %61 = vector.shape_cast %60 : vector<1x8x352xbf16> to vector<8x352xbf16>
    %c160 = arith.constant 160 : index
    %c0_65 = arith.constant 0 : index
    %62 = vector.load %arg5[%c160, %c0_65] : memref<392x352xbf16, #tpu.memory_space<vmem>>, vector<8x352xbf16>
    tpu.vector_store %arg5[%c160, %c0_65], %61 {strides = array<i32>} : memref<392x352xbf16, #tpu.memory_space<vmem>>, vector<8x352xbf16>,
    %c0_66 = arith.constant 0 : index
    %c0_67 = arith.constant 0 : index
    %c66 = arith.constant 66 : index
    %63 = vector.load %arg1[%c0_66, %c0_67, %c66] : memref<1x8x490xbf16, #tpu.memory_space<vmem>>, vector<1x8x352xbf16>
    %64 = vector.shape_cast %63 : vector<1x8x352xbf16> to vector<8x352xbf16>
    %c168 = arith.constant 168 : index
    %c0_68 = arith.constant 0 : index
    %65 = vector.load %arg5[%c168, %c0_68] : memref<392x352xbf16, #tpu.memory_space<vmem>>, vector<8x352xbf16>
    tpu.vector_store %arg5[%c168, %c0_68], %64 {strides = array<i32>} : memref<392x352xbf16, #tpu.memory_space<vmem>>, vector<8x352xbf16>,
    %c0_69 = arith.constant 0 : index
    %c0_70 = arith.constant 0 : index
    %c67 = arith.constant 67 : index
    %66 = vector.load %arg1[%c0_69, %c0_70, %c67] : memref<1x8x490xbf16, #tpu.memory_space<vmem>>, vector<1x8x352xbf16>
    %67 = vector.shape_cast %66 : vector<1x8x352xbf16> to vector<8x352xbf16>
    %c176 = arith.constant 176 : index
    %c0_71 = arith.constant 0 : index
    %68 = vector.load %arg5[%c176, %c0_71] : memref<392x352xbf16, #tpu.memory_space<vmem>>, vector<8x352xbf16>
    tpu.vector_store %arg5[%c176, %c0_71], %67 {strides = array<i32>} : memref<392x352xbf16, #tpu.memory_space<vmem>>, vector<8x352xbf16>,
    %c0_72 = arith.constant 0 : index
    %c0_73 = arith.constant 0 : index
    %c68 = arith.constant 68 : index
    %69 = vector.load %arg1[%c0_72, %c0_73, %c68] : memref<1x8x490xbf16, #tpu.memory_space<vmem>>, vector<1x8x352xbf16>
    %70 = vector.shape_cast %69 : vector<1x8x352xbf16> to vector<8x352xbf16>
    %c184 = arith.constant 184 : index
    %c0_74 = arith.constant 0 : index
    %71 = vector.load %arg5[%c184, %c0_74] : memref<392x352xbf16, #tpu.memory_space<vmem>>, vector<8x352xbf16>
    tpu.vector_store %arg5[%c184, %c0_74], %70 {strides = array<i32>} : memref<392x352xbf16, #tpu.memory_space<vmem>>, vector<8x352xbf16>,
    %c0_75 = arith.constant 0 : index
    %c0_76 = arith.constant 0 : index
    %c69 = arith.constant 69 : index
    %72 = vector.load %arg1[%c0_75, %c0_76, %c69] : memref<1x8x490xbf16, #tpu.memory_space<vmem>>, vector<1x8x352xbf16>
    %73 = vector.shape_cast %72 : vector<1x8x352xbf16> to vector<8x352xbf16>
    %c192 = arith.constant 192 : index
    %c0_77 = arith.constant 0 : index
    %74 = vector.load %arg5[%c192, %c0_77] : memref<392x352xbf16, #tpu.memory_space<vmem>>, vector<8x352xbf16>
    tpu.vector_store %arg5[%c192, %c0_77], %73 {strides = array<i32>} : memref<392x352xbf16, #tpu.memory_space<vmem>>, vector<8x352xbf16>,
    %c0_78 = arith.constant 0 : index
    %c0_79 = arith.constant 0 : index
    %c70 = arith.constant 70 : index
    %75 = vector.load %arg1[%c0_78, %c0_79, %c70] : memref<1x8x490xbf16, #tpu.memory_space<vmem>>, vector<1x8x352xbf16>
    %76 = vector.shape_cast %75 : vector<1x8x352xbf16> to vector<8x352xbf16>
    %c200 = arith.constant 200 : index
    %c0_80 = arith.constant 0 : index
    %77 = vector.load %arg5[%c200, %c0_80] : memref<392x352xbf16, #tpu.memory_space<vmem>>, vector<8x352xbf16>
    tpu.vector_store %arg5[%c200, %c0_80], %76 {strides = array<i32>} : memref<392x352xbf16, #tpu.memory_space<vmem>>, vector<8x352xbf16>,
    %c0_81 = arith.constant 0 : index
    %c0_82 = arith.constant 0 : index
    %c71 = arith.constant 71 : index
    %78 = vector.load %arg1[%c0_81, %c0_82, %c71] : memref<1x8x490xbf16, #tpu.memory_space<vmem>>, vector<1x8x352xbf16>
    %79 = vector.shape_cast %78 : vector<1x8x352xbf16> to vector<8x352xbf16>
    %c208 = arith.constant 208 : index
    %c0_83 = arith.constant 0 : index
    %80 = vector.load %arg5[%c208, %c0_83] : memref<392x352xbf16, #tpu.memory_space<vmem>>, vector<8x352xbf16>
    tpu.vector_store %arg5[%c208, %c0_83], %79 {strides = array<i32>} : memref<392x352xbf16, #tpu.memory_space<vmem>>, vector<8x352xbf16>,
    %c0_84 = arith.constant 0 : index
    %c0_85 = arith.constant 0 : index
    %c72_86 = arith.constant 72 : index
    %81 = vector.load %arg1[%c0_84, %c0_85, %c72_86] : memref<1x8x490xbf16, #tpu.memory_space<vmem>>, vector<1x8x352xbf16>
    %82 = vector.shape_cast %81 : vector<1x8x352xbf16> to vector<8x352xbf16>
    %c216 = arith.constant 216 : index
    %c0_87 = arith.constant 0 : index
    %83 = vector.load %arg5[%c216, %c0_87] : memref<392x352xbf16, #tpu.memory_space<vmem>>, vector<8x352xbf16>
    tpu.vector_store %arg5[%c216, %c0_87], %82 {strides = array<i32>} : memref<392x352xbf16, #tpu.memory_space<vmem>>, vector<8x352xbf16>,
    %c0_88 = arith.constant 0 : index
    %c0_89 = arith.constant 0 : index
    %c88_90 = arith.constant 88 : index
    %84 = vector.load %arg1[%c0_88, %c0_89, %c88_90] : memref<1x8x490xbf16, #tpu.memory_space<vmem>>, vector<1x8x352xbf16>
    %85 = vector.shape_cast %84 : vector<1x8x352xbf16> to vector<8x352xbf16>
    %c224 = arith.constant 224 : index
    %c0_91 = arith.constant 0 : index
    %86 = vector.load %arg5[%c224, %c0_91] : memref<392x352xbf16, #tpu.memory_space<vmem>>, vector<8x352xbf16>
    tpu.vector_store %arg5[%c224, %c0_91], %85 {strides = array<i32>} : memref<392x352xbf16, #tpu.memory_space<vmem>>, vector<8x352xbf16>,
    %c0_92 = arith.constant 0 : index
    %c0_93 = arith.constant 0 : index
    %c89 = arith.constant 89 : index
    %87 = vector.load %arg1[%c0_92, %c0_93, %c89] : memref<1x8x490xbf16, #tpu.memory_space<vmem>>, vector<1x8x352xbf16>
    %88 = vector.shape_cast %87 : vector<1x8x352xbf16> to vector<8x352xbf16>
    %c232 = arith.constant 232 : index
    %c0_94 = arith.constant 0 : index
    %89 = vector.load %arg5[%c232, %c0_94] : memref<392x352xbf16, #tpu.memory_space<vmem>>, vector<8x352xbf16>
    tpu.vector_store %arg5[%c232, %c0_94], %88 {strides = array<i32>} : memref<392x352xbf16, #tpu.memory_space<vmem>>, vector<8x352xbf16>,
    %c0_95 = arith.constant 0 : index
    %c0_96 = arith.constant 0 : index
    %c90 = arith.constant 90 : index
    %90 = vector.load %arg1[%c0_95, %c0_96, %c90] : memref<1x8x490xbf16, #tpu.memory_space<vmem>>, vector<1x8x352xbf16>
    %91 = vector.shape_cast %90 : vector<1x8x352xbf16> to vector<8x352xbf16>
    %c240 = arith.constant 240 : index
    %c0_97 = arith.constant 0 : index
    %92 = vector.load %arg5[%c240, %c0_97] : memref<392x352xbf16, #tpu.memory_space<vmem>>, vector<8x352xbf16>
    tpu.vector_store %arg5[%c240, %c0_97], %91 {strides = array<i32>} : memref<392x352xbf16, #tpu.memory_space<vmem>>, vector<8x352xbf16>,
    %c0_98 = arith.constant 0 : index
    %c0_99 = arith.constant 0 : index
    %c91 = arith.constant 91 : index
    %93 = vector.load %arg1[%c0_98, %c0_99, %c91] : memref<1x8x490xbf16, #tpu.memory_space<vmem>>, vector<1x8x352xbf16>
    %94 = vector.shape_cast %93 : vector<1x8x352xbf16> to vector<8x352xbf16>
    %c248 = arith.constant 248 : index
    %c0_100 = arith.constant 0 : index
    %95 = vector.load %arg5[%c248, %c0_100] : memref<392x352xbf16, #tpu.memory_space<vmem>>, vector<8x352xbf16>
    tpu.vector_store %arg5[%c248, %c0_100], %94 {strides = array<i32>} : memref<392x352xbf16, #tpu.memory_space<vmem>>, vector<8x352xbf16>,
    %c0_101 = arith.constant 0 : index
    %c0_102 = arith.constant 0 : index
    %c92 = arith.constant 92 : index
    %96 = vector.load %arg1[%c0_101, %c0_102, %c92] : memref<1x8x490xbf16, #tpu.memory_space<vmem>>, vector<1x8x352xbf16>
    %97 = vector.shape_cast %96 : vector<1x8x352xbf16> to vector<8x352xbf16>
    %c256 = arith.constant 256 : index
    %c0_103 = arith.constant 0 : index
    %98 = vector.load %arg5[%c256, %c0_103] : memref<392x352xbf16, #tpu.memory_space<vmem>>, vector<8x352xbf16>
    tpu.vector_store %arg5[%c256, %c0_103], %97 {strides = array<i32>} : memref<392x352xbf16, #tpu.memory_space<vmem>>, vector<8x352xbf16>,
    %c0_104 = arith.constant 0 : index
    %c0_105 = arith.constant 0 : index
    %c93 = arith.constant 93 : index
    %99 = vector.load %arg1[%c0_104, %c0_105, %c93] : memref<1x8x490xbf16, #tpu.memory_space<vmem>>, vector<1x8x352xbf16>
    %100 = vector.shape_cast %99 : vector<1x8x352xbf16> to vector<8x352xbf16>
    %c264 = arith.constant 264 : index
    %c0_106 = arith.constant 0 : index
    %101 = vector.load %arg5[%c264, %c0_106] : memref<392x352xbf16, #tpu.memory_space<vmem>>, vector<8x352xbf16>
    tpu.vector_store %arg5[%c264, %c0_106], %100 {strides = array<i32>} : memref<392x352xbf16, #tpu.memory_space<vmem>>, vector<8x352xbf16>,
    %c0_107 = arith.constant 0 : index
    %c0_108 = arith.constant 0 : index
    %c94 = arith.constant 94 : index
    %102 = vector.load %arg1[%c0_107, %c0_108, %c94] : memref<1x8x490xbf16, #tpu.memory_space<vmem>>, vector<1x8x352xbf16>
    %103 = vector.shape_cast %102 : vector<1x8x352xbf16> to vector<8x352xbf16>
    %c272 = arith.constant 272 : index
    %c0_109 = arith.constant 0 : index
    %104 = vector.load %arg5[%c272, %c0_109] : memref<392x352xbf16, #tpu.memory_space<vmem>>, vector<8x352xbf16>
    tpu.vector_store %arg5[%c272, %c0_109], %103 {strides = array<i32>} : memref<392x352xbf16, #tpu.memory_space<vmem>>, vector<8x352xbf16>,
    %c0_110 = arith.constant 0 : index
    %c0_111 = arith.constant 0 : index
    %c110 = arith.constant 110 : index
    %105 = vector.load %arg1[%c0_110, %c0_111, %c110] : memref<1x8x490xbf16, #tpu.memory_space<vmem>>, vector<1x8x352xbf16>
    %106 = vector.shape_cast %105 : vector<1x8x352xbf16> to vector<8x352xbf16>
    %c280 = arith.constant 280 : index
    %c0_112 = arith.constant 0 : index
    %107 = vector.load %arg5[%c280, %c0_112] : memref<392x352xbf16, #tpu.memory_space<vmem>>, vector<8x352xbf16>
    tpu.vector_store %arg5[%c280, %c0_112], %106 {strides = array<i32>} : memref<392x352xbf16, #tpu.memory_space<vmem>>, vector<8x352xbf16>,
    %c0_113 = arith.constant 0 : index
    %c0_114 = arith.constant 0 : index
    %c111 = arith.constant 111 : index
    %108 = vector.load %arg1[%c0_113, %c0_114, %c111] : memref<1x8x490xbf16, #tpu.memory_space<vmem>>, vector<1x8x352xbf16>
    %109 = vector.shape_cast %108 : vector<1x8x352xbf16> to vector<8x352xbf16>
    %c288 = arith.constant 288 : index
    %c0_115 = arith.constant 0 : index
    %110 = vector.load %arg5[%c288, %c0_115] : memref<392x352xbf16, #tpu.memory_space<vmem>>, vector<8x352xbf16>
    tpu.vector_store %arg5[%c288, %c0_115], %109 {strides = array<i32>} : memref<392x352xbf16, #tpu.memory_space<vmem>>, vector<8x352xbf16>,
    %c0_116 = arith.constant 0 : index
    %c0_117 = arith.constant 0 : index
    %c112_118 = arith.constant 112 : index
    %111 = vector.load %arg1[%c0_116, %c0_117, %c112_118] : memref<1x8x490xbf16, #tpu.memory_space<vmem>>, vector<1x8x352xbf16>
    %112 = vector.shape_cast %111 : vector<1x8x352xbf16> to vector<8x352xbf16>
    %c296 = arith.constant 296 : index
    %c0_119 = arith.constant 0 : index
    %113 = vector.load %arg5[%c296, %c0_119] : memref<392x352xbf16, #tpu.memory_space<vmem>>, vector<8x352xbf16>
    tpu.vector_store %arg5[%c296, %c0_119], %112 {strides = array<i32>} : memref<392x352xbf16, #tpu.memory_space<vmem>>, vector<8x352xbf16>,
    %c0_120 = arith.constant 0 : index
    %c0_121 = arith.constant 0 : index
    %c113 = arith.constant 113 : index
    %114 = vector.load %arg1[%c0_120, %c0_121, %c113] : memref<1x8x490xbf16, #tpu.memory_space<vmem>>, vector<1x8x352xbf16>
    %115 = vector.shape_cast %114 : vector<1x8x352xbf16> to vector<8x352xbf16>
    %c304 = arith.constant 304 : index
    %c0_122 = arith.constant 0 : index
    %116 = vector.load %arg5[%c304, %c0_122] : memref<392x352xbf16, #tpu.memory_space<vmem>>, vector<8x352xbf16>
    tpu.vector_store %arg5[%c304, %c0_122], %115 {strides = array<i32>} : memref<392x352xbf16, #tpu.memory_space<vmem>>, vector<8x352xbf16>,
    %c0_123 = arith.constant 0 : index
    %c0_124 = arith.constant 0 : index
    %c114 = arith.constant 114 : index
    %117 = vector.load %arg1[%c0_123, %c0_124, %c114] : memref<1x8x490xbf16, #tpu.memory_space<vmem>>, vector<1x8x352xbf16>
    %118 = vector.shape_cast %117 : vector<1x8x352xbf16> to vector<8x352xbf16>
    %c312 = arith.constant 312 : index
    %c0_125 = arith.constant 0 : index
    %119 = vector.load %arg5[%c312, %c0_125] : memref<392x352xbf16, #tpu.memory_space<vmem>>, vector<8x352xbf16>
    tpu.vector_store %arg5[%c312, %c0_125], %118 {strides = array<i32>} : memref<392x352xbf16, #tpu.memory_space<vmem>>, vector<8x352xbf16>,
    %c0_126 = arith.constant 0 : index
    %c0_127 = arith.constant 0 : index
    %c115 = arith.constant 115 : index
    %120 = vector.load %arg1[%c0_126, %c0_127, %c115] : memref<1x8x490xbf16, #tpu.memory_space<vmem>>, vector<1x8x352xbf16>
    %121 = vector.shape_cast %120 : vector<1x8x352xbf16> to vector<8x352xbf16>
    %c320 = arith.constant 320 : index
    %c0_128 = arith.constant 0 : index
    %122 = vector.load %arg5[%c320, %c0_128] : memref<392x352xbf16, #tpu.memory_space<vmem>>, vector<8x352xbf16>
    tpu.vector_store %arg5[%c320, %c0_128], %121 {strides = array<i32>} : memref<392x352xbf16, #tpu.memory_space<vmem>>, vector<8x352xbf16>,
    %c0_129 = arith.constant 0 : index
    %c0_130 = arith.constant 0 : index
    %c116 = arith.constant 116 : index
    %123 = vector.load %arg1[%c0_129, %c0_130, %c116] : memref<1x8x490xbf16, #tpu.memory_space<vmem>>, vector<1x8x352xbf16>
    %124 = vector.shape_cast %123 : vector<1x8x352xbf16> to vector<8x352xbf16>
    %c328 = arith.constant 328 : index
    %c0_131 = arith.constant 0 : index
    %125 = vector.load %arg5[%c328, %c0_131] : memref<392x352xbf16, #tpu.memory_space<vmem>>, vector<8x352xbf16>
    tpu.vector_store %arg5[%c328, %c0_131], %124 {strides = array<i32>} : memref<392x352xbf16, #tpu.memory_space<vmem>>, vector<8x352xbf16>,
    %c0_132 = arith.constant 0 : index
    %c0_133 = arith.constant 0 : index
    %c132 = arith.constant 132 : index
    %126 = vector.load %arg1[%c0_132, %c0_133, %c132] : memref<1x8x490xbf16, #tpu.memory_space<vmem>>, vector<1x8x352xbf16>
    %127 = vector.shape_cast %126 : vector<1x8x352xbf16> to vector<8x352xbf16>
    %c336 = arith.constant 336 : index
    %c0_134 = arith.constant 0 : index
    %128 = vector.load %arg5[%c336, %c0_134] : memref<392x352xbf16, #tpu.memory_space<vmem>>, vector<8x352xbf16>
    tpu.vector_store %arg5[%c336, %c0_134], %127 {strides = array<i32>} : memref<392x352xbf16, #tpu.memory_space<vmem>>, vector<8x352xbf16>,
    %c0_135 = arith.constant 0 : index
    %c0_136 = arith.constant 0 : index
    %c133 = arith.constant 133 : index
    %129 = vector.load %arg1[%c0_135, %c0_136, %c133] : memref<1x8x490xbf16, #tpu.memory_space<vmem>>, vector<1x8x352xbf16>
    %130 = vector.shape_cast %129 : vector<1x8x352xbf16> to vector<8x352xbf16>
    %c344 = arith.constant 344 : index
    %c0_137 = arith.constant 0 : index
    %131 = vector.load %arg5[%c344, %c0_137] : memref<392x352xbf16, #tpu.memory_space<vmem>>, vector<8x352xbf16>
    tpu.vector_store %arg5[%c344, %c0_137], %130 {strides = array<i32>} : memref<392x352xbf16, #tpu.memory_space<vmem>>, vector<8x352xbf16>,
    %c0_138 = arith.constant 0 : index
    %c0_139 = arith.constant 0 : index
    %c134 = arith.constant 134 : index
    %132 = vector.load %arg1[%c0_138, %c0_139, %c134] : memref<1x8x490xbf16, #tpu.memory_space<vmem>>, vector<1x8x352xbf16>
    %133 = vector.shape_cast %132 : vector<1x8x352xbf16> to vector<8x352xbf16>
    %c352 = arith.constant 352 : index
    %c0_140 = arith.constant 0 : index
    %134 = vector.load %arg5[%c352, %c0_140] : memref<392x352xbf16, #tpu.memory_space<vmem>>, vector<8x352xbf16>
    tpu.vector_store %arg5[%c352, %c0_140], %133 {strides = array<i32>} : memref<392x352xbf16, #tpu.memory_space<vmem>>, vector<8x352xbf16>,
    %c0_141 = arith.constant 0 : index
    %c0_142 = arith.constant 0 : index
    %c135 = arith.constant 135 : index
    %135 = vector.load %arg1[%c0_141, %c0_142, %c135] : memref<1x8x490xbf16, #tpu.memory_space<vmem>>, vector<1x8x352xbf16>
    %136 = vector.shape_cast %135 : vector<1x8x352xbf16> to vector<8x352xbf16>
    %c360 = arith.constant 360 : index
    %c0_143 = arith.constant 0 : index
    %137 = vector.load %arg5[%c360, %c0_143] : memref<392x352xbf16, #tpu.memory_space<vmem>>, vector<8x352xbf16>
    tpu.vector_store %arg5[%c360, %c0_143], %136 {strides = array<i32>} : memref<392x352xbf16, #tpu.memory_space<vmem>>, vector<8x352xbf16>,
    %c0_144 = arith.constant 0 : index
    %c0_145 = arith.constant 0 : index
    %c136_146 = arith.constant 136 : index
    %138 = vector.load %arg1[%c0_144, %c0_145, %c136_146] : memref<1x8x490xbf16, #tpu.memory_space<vmem>>, vector<1x8x352xbf16>
    %139 = vector.shape_cast %138 : vector<1x8x352xbf16> to vector<8x352xbf16>
    %c368 = arith.constant 368 : index
    %c0_147 = arith.constant 0 : index
    %140 = vector.load %arg5[%c368, %c0_147] : memref<392x352xbf16, #tpu.memory_space<vmem>>, vector<8x352xbf16>
    tpu.vector_store %arg5[%c368, %c0_147], %139 {strides = array<i32>} : memref<392x352xbf16, #tpu.memory_space<vmem>>, vector<8x352xbf16>,
    %c0_148 = arith.constant 0 : index
    %c0_149 = arith.constant 0 : index
    %c137 = arith.constant 137 : index
    %141 = vector.load %arg1[%c0_148, %c0_149, %c137] : memref<1x8x490xbf16, #tpu.memory_space<vmem>>, vector<1x8x352xbf16>
    %142 = vector.shape_cast %141 : vector<1x8x352xbf16> to vector<8x352xbf16>
    %c376 = arith.constant 376 : index
    %c0_150 = arith.constant 0 : index
    %143 = vector.load %arg5[%c376, %c0_150] : memref<392x352xbf16, #tpu.memory_space<vmem>>, vector<8x352xbf16>
    tpu.vector_store %arg5[%c376, %c0_150], %142 {strides = array<i32>} : memref<392x352xbf16, #tpu.memory_space<vmem>>, vector<8x352xbf16>,
    %c0_151 = arith.constant 0 : index
    %c0_152 = arith.constant 0 : index
    %c138 = arith.constant 138 : index
    %144 = vector.load %arg1[%c0_151, %c0_152, %c138] : memref<1x8x490xbf16, #tpu.memory_space<vmem>>, vector<1x8x352xbf16>
    %145 = vector.shape_cast %144 : vector<1x8x352xbf16> to vector<8x352xbf16>
    %c384 = arith.constant 384 : index
    %c0_153 = arith.constant 0 : index
    %146 = vector.load %arg5[%c384, %c0_153] : memref<392x352xbf16, #tpu.memory_space<vmem>>, vector<8x352xbf16>
    tpu.vector_store %arg5[%c384, %c0_153], %145 {strides = array<i32>} : memref<392x352xbf16, #tpu.memory_space<vmem>>, vector<8x352xbf16>,
    %c0_154 = arith.constant 0 : index
    %c0_155 = arith.constant 0 : index
    %147 = vector.load %arg2[%c0_154, %c0_155] : memref<8x392xbf16, #tpu.memory_space<vmem>>, vector<8x392xbf16>
    %c0_156 = arith.constant 0 : index
    %c0_157 = arith.constant 0 : index
    %148 = vector.load %arg5[%c0_156, %c0_157] : memref<392x352xbf16, #tpu.memory_space<vmem>>, vector<392x352xbf16>
    %cst = arith.constant dense<0.000000e+00> : vector<8x352xf32>
    %149 = tpu.matmul %147, %148, %cst {dimension_numbers = #tpu.dot_dimension_numbers<[1], [0], [0], [1], [0, 0, 1, 1], [], []>} : vector<8x392xbf16>, vector<392x352xbf16>, vector<8x352xf32> -> vector<8x352xf32>
    %c0_158 = arith.constant 0 : index
    %c0_159 = arith.constant 0 : index
    %150 = vector.load %arg3[%c0_158, %c0_159] : memref<8x1xf32, #tpu.memory_space<vmem>>, vector<8x1xf32>
    %151 = vector.broadcast %150 : vector<8x1xf32> to vector<8x352xf32>
    %152 = arith.addf %149, %151 : vector<8x352xf32>
    %153 = tpu.iota {dimensions = array<i32: 1>} : vector<1x352xi32>
    %c22_i32 = arith.constant 22 : i32
    %c0_i32 = arith.constant 0 : i32
    %154 = arith.cmpi eq, %c22_i32, %c0_i32 : i32
    %c1_i32 = arith.constant 1 : i32
    %155 = arith.select %154, %c1_i32, %c22_i32 : i32
    %156 = vector.broadcast %155 : i32 to vector<1x352xi32>
    %157 = arith.remsi %153, %156 : vector<1x352xi32>
    %c0_i32_160 = arith.constant 0 : i32
    %158 = vector.broadcast %c0_i32_160 : i32 to vector<1x352xi32>
    %159 = arith.cmpi ne, %157, %158 : vector<1x352xi32>
    %c0_i32_161 = arith.constant 0 : i32
    %160 = vector.broadcast %c0_i32_161 : i32 to vector<1x352xi32>
    %161 = arith.cmpi slt, %157, %160 : vector<1x352xi32>
    %c0_i32_162 = arith.constant 0 : i32
    %162 = arith.cmpi slt, %155, %c0_i32_162 : i32
    %163 = vector.broadcast %162 : i1 to vector<1x352xi1>
    %164 = vector.broadcast %163 : vector<1x352xi1> to vector<1x352xi1>
    %165 = arith.xori %161, %164 : vector<1x352xi1>
    %166 = arith.andi %165, %159 : vector<1x352xi1>
    %167 = vector.broadcast %155 : i32 to vector<1x352xi32>
    %168 = arith.addi %157, %167 : vector<1x352xi32>
    %169 = arith.select %166, %168, %157 : vector<1x352xi1>, vector<1x352xi32>
    %c16_i32 = arith.constant 16 : i32
    %170 = vector.broadcast %c16_i32 : i32 to vector<1x352xi32>
    %171 = arith.cmpi slt, %169, %170 : vector<1x352xi32>
    %cst_163 = arith.constant 0.000000e+00 : f32
    %172 = vector.shape_cast %171 : vector<1x352xi1> to vector<1x352xi1>
    %173 = vector.broadcast %172 : vector<1x352xi1> to vector<8x352xi1>
    %174 = vector.broadcast %cst_163 : f32 to vector<8x352xf32>
    %175 = arith.select %173, %152, %174 : vector<8x352xi1>, vector<8x352xf32>
    %cst_164 = arith.constant dense<0.000000e+00> : vector<8xf32>
    %176 = vector.multi_reduction <add>, %175, %cst_164 [1] : vector<8x352xf32> to vector<8xf32>
    %177 = vector.shape_cast %176 : vector<8xf32> to vector<8x1xf32>
    %cst_165 = arith.constant 2.560000e+02 : f32
    %178 = vector.broadcast %cst_165 : f32 to vector<8x1xf32>
    %179 = arith.divf %177, %178 : vector<8x1xf32>
    %180 = vector.broadcast %179 : vector<8x1xf32> to vector<8x352xf32>
    %181 = arith.subf %152, %180 : vector<8x352xf32>
    %cst_166 = arith.constant 0.000000e+00 : f32
    %182 = vector.shape_cast %171 : vector<1x352xi1> to vector<1x352xi1>
    %183 = vector.broadcast %182 : vector<1x352xi1> to vector<8x352xi1>
    %184 = vector.broadcast %cst_166 : f32 to vector<8x352xf32>
    %185 = arith.select %183, %181, %184 : vector<8x352xi1>, vector<8x352xf32>
    %186 = arith.mulf %185, %185 : vector<8x352xf32>
    %cst_167 = arith.constant dense<0.000000e+00> : vector<8xf32>
    %187 = vector.multi_reduction <add>, %186, %cst_167 [1] : vector<8x352xf32> to vector<8xf32>
    %188 = vector.shape_cast %187 : vector<8xf32> to vector<8x1xf32>
    %cst_168 = arith.constant 2.560000e+02 : f32
    %189 = vector.broadcast %cst_168 : f32 to vector<8x1xf32>
    %190 = arith.divf %188, %189 : vector<8x1xf32>
    %191 = vector.broadcast %179 : vector<8x1xf32> to vector<8x352xf32>
    %192 = arith.subf %152, %191 : vector<8x352xf32>
    %cst_169 = arith.constant 9.99999974E-6 : f32
    %193 = vector.broadcast %cst_169 : f32 to vector<8x1xf32>
    %194 = arith.addf %190, %193 : vector<8x1xf32>
    %195 = math.rsqrt %194 : vector<8x1xf32>
    %196 = vector.broadcast %195 : vector<8x1xf32> to vector<8x352xf32>
    %197 = arith.mulf %192, %196 : vector<8x352xf32>
    %cst_170 = arith.constant 0.000000e+00 : f32
    %198 = vector.broadcast %cst_170 : f32 to vector<8x352xf32>
    %199 = arith.maximumf %197, %198 : vector<8x352xf32>
    %200 = arith.truncf %199 : vector<8x352xf32> to vector<8x352xbf16>
    %c0_171 = arith.constant 0 : index
    %c0_172 = arith.constant 0 : index
    %c0_173 = arith.constant 0 : index
    %201 = vector.load %arg4[%c0_171, %c0_172, %c0_173] : memref<1x8x352xbf16, #tpu.memory_space<vmem>>, vector<1x8x352xbf16>
    %202 = vector.shape_cast %201 : vector<1x8x352xbf16> to vector<8x352xbf16>
    %203 = vector.shape_cast %200 : vector<8x352xbf16> to vector<1x8x352xbf16>
    tpu.vector_store %arg4[%c0_171, %c0_172, %c0_173], %203 {strides = array<i32>} : memref<1x8x352xbf16, #tpu.memory_space<vmem>>, vector<1x8x352xbf16>,
    return
  }
  func.func @transform_0(%arg0: i32) -> (i32, i32, i32) {
    %c0_i32 = arith.constant 0 : i32
    %c0_i32_0 = arith.constant 0 : i32
    %c0_i32_1 = arith.constant 0 : i32
    return %arg0, %c0_i32, %c0_i32_0 : i32, i32, i32
  }
  func.func @transform_1(%arg0: i32) -> (i32, i32) {
    %c0_i32 = arith.constant 0 : i32
    %c0_i32_0 = arith.constant 0 : i32
    %c0_i32_1 = arith.constant 0 : i32
    return %c0_i32, %c0_i32_0 : i32, i32
  }
  func.func @transform_2(%arg0: i32) -> (i32, i32) {
    %c0_i32 = arith.constant 0 : i32
    %c0_i32_0 = arith.constant 0 : i32
    %c0_i32_1 = arith.constant 0 : i32
    return %c0_i32, %c0_i32_0 : i32, i32
  }
  func.func @transform_3(%arg0: i32) -> (i32, i32, i32) {
    %c0_i32 = arith.constant 0 : i32
    %c0_i32_0 = arith.constant 0 : i32
    %c0_i32_1 = arith.constant 0 : i32
    return %arg0, %c0_i32, %c0_i32_0 : i32, i32, i32
  }
}

module attributes {stable_mosaic.version = 11 : i64} {
  func.func @_conv_block_kernel(%arg0: i32, %arg1: memref<1x32x82xbf16, #tpu.memory_space<vmem>>, %arg2: memref<16x128xbf16, #tpu.memory_space<vmem>>, %arg3: memref<16x1xf32, #tpu.memory_space<vmem>>, %arg4: memref<1x16x72xbf16, #tpu.memory_space<vmem>>, %arg5: memref<128x72xbf16, #tpu.memory_space<vmem>>) attributes {dimension_semantics = [#tpu.dimension_semantics<parallel>], iteration_bounds = array<i64: 2>, scalar_prefetch = 0 : i64, scratch_operands = 1 : i64, tpu.core_type = #tpu.core_type<tc>, window_params = [{transform_indices = @transform_0, window_bounds = array<i64: 1, 32, 82>}, {pipeline_mode = #tpu.pipeline_mode<synchronous>, transform_indices = @transform_1, window_bounds = array<i64: 16, 128>}, {pipeline_mode = #tpu.pipeline_mode<synchronous>, transform_indices = @transform_2, window_bounds = array<i64: 16, 1>}, {transform_indices = @transform_3, window_bounds = array<i64: 1, 16, 72>}]} {
    %c0 = arith.constant 0 : index
    %c0_0 = arith.constant 0 : index
    %c0_1 = arith.constant 0 : index
    %0 = vector.load %arg1[%c0, %c0_0, %c0_1] : memref<1x32x82xbf16, #tpu.memory_space<vmem>>, vector<1x32x72xbf16>
    %1 = vector.shape_cast %0 : vector<1x32x72xbf16> to vector<32x72xbf16>
    %c0_2 = arith.constant 0 : index
    %c0_3 = arith.constant 0 : index
    %2 = vector.load %arg5[%c0_2, %c0_3] : memref<128x72xbf16, #tpu.memory_space<vmem>>, vector<32x72xbf16>
    tpu.vector_store %arg5[%c0_2, %c0_3], %1 {strides = array<i32>} : memref<128x72xbf16, #tpu.memory_space<vmem>>, vector<32x72xbf16>,
    %c0_4 = arith.constant 0 : index
    %c0_5 = arith.constant 0 : index
    %c1 = arith.constant 1 : index
    %3 = vector.load %arg1[%c0_4, %c0_5, %c1] : memref<1x32x82xbf16, #tpu.memory_space<vmem>>, vector<1x32x72xbf16>
    %4 = vector.shape_cast %3 : vector<1x32x72xbf16> to vector<32x72xbf16>
    %c32 = arith.constant 32 : index
    %c0_6 = arith.constant 0 : index
    %5 = vector.load %arg5[%c32, %c0_6] : memref<128x72xbf16, #tpu.memory_space<vmem>>, vector<32x72xbf16>
    tpu.vector_store %arg5[%c32, %c0_6], %4 {strides = array<i32>} : memref<128x72xbf16, #tpu.memory_space<vmem>>, vector<32x72xbf16>,
    %c0_7 = arith.constant 0 : index
    %c0_8 = arith.constant 0 : index
    %c9 = arith.constant 9 : index
    %6 = vector.load %arg1[%c0_7, %c0_8, %c9] : memref<1x32x82xbf16, #tpu.memory_space<vmem>>, vector<1x32x72xbf16>
    %7 = vector.shape_cast %6 : vector<1x32x72xbf16> to vector<32x72xbf16>
    %c64 = arith.constant 64 : index
    %c0_9 = arith.constant 0 : index
    %8 = vector.load %arg5[%c64, %c0_9] : memref<128x72xbf16, #tpu.memory_space<vmem>>, vector<32x72xbf16>
    tpu.vector_store %arg5[%c64, %c0_9], %7 {strides = array<i32>} : memref<128x72xbf16, #tpu.memory_space<vmem>>, vector<32x72xbf16>,
    %c0_10 = arith.constant 0 : index
    %c0_11 = arith.constant 0 : index
    %c10 = arith.constant 10 : index
    %9 = vector.load %arg1[%c0_10, %c0_11, %c10] : memref<1x32x82xbf16, #tpu.memory_space<vmem>>, vector<1x32x72xbf16>
    %10 = vector.shape_cast %9 : vector<1x32x72xbf16> to vector<32x72xbf16>
    %c96 = arith.constant 96 : index
    %c0_12 = arith.constant 0 : index
    %11 = vector.load %arg5[%c96, %c0_12] : memref<128x72xbf16, #tpu.memory_space<vmem>>, vector<32x72xbf16>
    tpu.vector_store %arg5[%c96, %c0_12], %10 {strides = array<i32>} : memref<128x72xbf16, #tpu.memory_space<vmem>>, vector<32x72xbf16>,
    %c0_13 = arith.constant 0 : index
    %c0_14 = arith.constant 0 : index
    %12 = vector.load %arg2[%c0_13, %c0_14] : memref<16x128xbf16, #tpu.memory_space<vmem>>, vector<16x128xbf16>
    %c0_15 = arith.constant 0 : index
    %c0_16 = arith.constant 0 : index
    %13 = vector.load %arg5[%c0_15, %c0_16] : memref<128x72xbf16, #tpu.memory_space<vmem>>, vector<128x72xbf16>
    %cst = arith.constant dense<0.000000e+00> : vector<16x72xf32>
    %14 = tpu.matmul %12, %13, %cst {dimension_numbers = #tpu.dot_dimension_numbers<[1], [0], [0], [1], [0, 0, 1, 1], [], []>} : vector<16x128xbf16>, vector<128x72xbf16>, vector<16x72xf32> -> vector<16x72xf32>
    %c0_17 = arith.constant 0 : index
    %c0_18 = arith.constant 0 : index
    %15 = vector.load %arg3[%c0_17, %c0_18] : memref<16x1xf32, #tpu.memory_space<vmem>>, vector<16x1xf32>
    %16 = vector.broadcast %15 : vector<16x1xf32> to vector<16x72xf32>
    %17 = arith.addf %14, %16 : vector<16x72xf32>
    %18 = tpu.iota {dimensions = array<i32: 1>} : vector<1x72xi32>
    %c9_i32 = arith.constant 9 : i32
    %c0_i32 = arith.constant 0 : i32
    %19 = arith.cmpi eq, %c9_i32, %c0_i32 : i32
    %c1_i32 = arith.constant 1 : i32
    %20 = arith.select %19, %c1_i32, %c9_i32 : i32
    %21 = vector.broadcast %20 : i32 to vector<1x72xi32>
    %22 = arith.remsi %18, %21 : vector<1x72xi32>
    %c0_i32_19 = arith.constant 0 : i32
    %23 = vector.broadcast %c0_i32_19 : i32 to vector<1x72xi32>
    %24 = arith.cmpi ne, %22, %23 : vector<1x72xi32>
    %c0_i32_20 = arith.constant 0 : i32
    %25 = vector.broadcast %c0_i32_20 : i32 to vector<1x72xi32>
    %26 = arith.cmpi slt, %22, %25 : vector<1x72xi32>
    %c0_i32_21 = arith.constant 0 : i32
    %27 = arith.cmpi slt, %20, %c0_i32_21 : i32
    %28 = vector.broadcast %27 : i1 to vector<1x72xi1>
    %29 = vector.broadcast %28 : vector<1x72xi1> to vector<1x72xi1>
    %30 = arith.xori %26, %29 : vector<1x72xi1>
    %31 = arith.andi %30, %24 : vector<1x72xi1>
    %32 = vector.broadcast %20 : i32 to vector<1x72xi32>
    %33 = arith.addi %22, %32 : vector<1x72xi32>
    %34 = arith.select %31, %33, %22 : vector<1x72xi1>, vector<1x72xi32>
    %c8_i32 = arith.constant 8 : i32
    %35 = vector.broadcast %c8_i32 : i32 to vector<1x72xi32>
    %36 = arith.cmpi slt, %34, %35 : vector<1x72xi32>
    %cst_22 = arith.constant 0.000000e+00 : f32
    %37 = vector.shape_cast %36 : vector<1x72xi1> to vector<1x72xi1>
    %38 = vector.broadcast %37 : vector<1x72xi1> to vector<16x72xi1>
    %39 = vector.broadcast %cst_22 : f32 to vector<16x72xf32>
    %40 = arith.select %38, %17, %39 : vector<16x72xi1>, vector<16x72xf32>
    %cst_23 = arith.constant dense<0.000000e+00> : vector<16xf32>
    %41 = vector.multi_reduction <add>, %40, %cst_23 [1] : vector<16x72xf32> to vector<16xf32>
    %42 = vector.shape_cast %41 : vector<16xf32> to vector<16x1xf32>
    %cst_24 = arith.constant 6.400000e+01 : f32
    %43 = vector.broadcast %cst_24 : f32 to vector<16x1xf32>
    %44 = arith.divf %42, %43 : vector<16x1xf32>
    %45 = vector.broadcast %44 : vector<16x1xf32> to vector<16x72xf32>
    %46 = arith.subf %17, %45 : vector<16x72xf32>
    %cst_25 = arith.constant 0.000000e+00 : f32
    %47 = vector.shape_cast %36 : vector<1x72xi1> to vector<1x72xi1>
    %48 = vector.broadcast %47 : vector<1x72xi1> to vector<16x72xi1>
    %49 = vector.broadcast %cst_25 : f32 to vector<16x72xf32>
    %50 = arith.select %48, %46, %49 : vector<16x72xi1>, vector<16x72xf32>
    %51 = arith.mulf %50, %50 : vector<16x72xf32>
    %cst_26 = arith.constant dense<0.000000e+00> : vector<16xf32>
    %52 = vector.multi_reduction <add>, %51, %cst_26 [1] : vector<16x72xf32> to vector<16xf32>
    %53 = vector.shape_cast %52 : vector<16xf32> to vector<16x1xf32>
    %cst_27 = arith.constant 6.400000e+01 : f32
    %54 = vector.broadcast %cst_27 : f32 to vector<16x1xf32>
    %55 = arith.divf %53, %54 : vector<16x1xf32>
    %56 = vector.broadcast %44 : vector<16x1xf32> to vector<16x72xf32>
    %57 = arith.subf %17, %56 : vector<16x72xf32>
    %cst_28 = arith.constant 9.99999974E-6 : f32
    %58 = vector.broadcast %cst_28 : f32 to vector<16x1xf32>
    %59 = arith.addf %55, %58 : vector<16x1xf32>
    %60 = math.rsqrt %59 : vector<16x1xf32>
    %61 = vector.broadcast %60 : vector<16x1xf32> to vector<16x72xf32>
    %62 = arith.mulf %57, %61 : vector<16x72xf32>
    %cst_29 = arith.constant 0.000000e+00 : f32
    %63 = vector.broadcast %cst_29 : f32 to vector<16x72xf32>
    %64 = arith.maximumf %62, %63 : vector<16x72xf32>
    %65 = arith.truncf %64 : vector<16x72xf32> to vector<16x72xbf16>
    %c0_30 = arith.constant 0 : index
    %c0_31 = arith.constant 0 : index
    %c0_32 = arith.constant 0 : index
    %66 = vector.load %arg4[%c0_30, %c0_31, %c0_32] : memref<1x16x72xbf16, #tpu.memory_space<vmem>>, vector<1x16x72xbf16>
    %67 = vector.shape_cast %66 : vector<1x16x72xbf16> to vector<16x72xbf16>
    %68 = vector.shape_cast %65 : vector<16x72xbf16> to vector<1x16x72xbf16>
    tpu.vector_store %arg4[%c0_30, %c0_31, %c0_32], %68 {strides = array<i32>} : memref<1x16x72xbf16, #tpu.memory_space<vmem>>, vector<1x16x72xbf16>,
    return
  }
  func.func @transform_0(%arg0: i32) -> (i32, i32, i32) {
    %c0_i32 = arith.constant 0 : i32
    %c0_i32_0 = arith.constant 0 : i32
    %c0_i32_1 = arith.constant 0 : i32
    return %arg0, %c0_i32, %c0_i32_0 : i32, i32, i32
  }
  func.func @transform_1(%arg0: i32) -> (i32, i32) {
    %c0_i32 = arith.constant 0 : i32
    %c0_i32_0 = arith.constant 0 : i32
    %c0_i32_1 = arith.constant 0 : i32
    return %c0_i32, %c0_i32_0 : i32, i32
  }
  func.func @transform_2(%arg0: i32) -> (i32, i32) {
    %c0_i32 = arith.constant 0 : i32
    %c0_i32_0 = arith.constant 0 : i32
    %c0_i32_1 = arith.constant 0 : i32
    return %c0_i32, %c0_i32_0 : i32, i32
  }
  func.func @transform_3(%arg0: i32) -> (i32, i32, i32) {
    %c0_i32 = arith.constant 0 : i32
    %c0_i32_0 = arith.constant 0 : i32
    %c0_i32_1 = arith.constant 0 : i32
    return %arg0, %c0_i32, %c0_i32_0 : i32, i32, i32
  }
}

module attributes {stable_mosaic.version = 11 : i64} {
  func.func @_conv_block_kernel(%arg0: i32, %arg1: memref<1x64x26xbf16, #tpu.memory_space<vmem>>, %arg2: memref<32x256xbf16, #tpu.memory_space<vmem>>, %arg3: memref<32x1xf32, #tpu.memory_space<vmem>>, %arg4: memref<1x32x20xbf16, #tpu.memory_space<vmem>>, %arg5: memref<256x20xbf16, #tpu.memory_space<vmem>>) attributes {dimension_semantics = [#tpu.dimension_semantics<parallel>], iteration_bounds = array<i64: 2>, scalar_prefetch = 0 : i64, scratch_operands = 1 : i64, tpu.core_type = #tpu.core_type<tc>, window_params = [{transform_indices = @transform_0, window_bounds = array<i64: 1, 64, 26>}, {pipeline_mode = #tpu.pipeline_mode<synchronous>, transform_indices = @transform_1, window_bounds = array<i64: 32, 256>}, {pipeline_mode = #tpu.pipeline_mode<synchronous>, transform_indices = @transform_2, window_bounds = array<i64: 32, 1>}, {transform_indices = @transform_3, window_bounds = array<i64: 1, 32, 20>}]} {
    %c0 = arith.constant 0 : index
    %c0_0 = arith.constant 0 : index
    %c0_1 = arith.constant 0 : index
    %0 = vector.load %arg1[%c0, %c0_0, %c0_1] : memref<1x64x26xbf16, #tpu.memory_space<vmem>>, vector<1x64x20xbf16>
    %1 = vector.shape_cast %0 : vector<1x64x20xbf16> to vector<64x20xbf16>
    %c0_2 = arith.constant 0 : index
    %c0_3 = arith.constant 0 : index
    %2 = vector.load %arg5[%c0_2, %c0_3] : memref<256x20xbf16, #tpu.memory_space<vmem>>, vector<64x20xbf16>
    tpu.vector_store %arg5[%c0_2, %c0_3], %1 {strides = array<i32>} : memref<256x20xbf16, #tpu.memory_space<vmem>>, vector<64x20xbf16>,
    %c0_4 = arith.constant 0 : index
    %c0_5 = arith.constant 0 : index
    %c1 = arith.constant 1 : index
    %3 = vector.load %arg1[%c0_4, %c0_5, %c1] : memref<1x64x26xbf16, #tpu.memory_space<vmem>>, vector<1x64x20xbf16>
    %4 = vector.shape_cast %3 : vector<1x64x20xbf16> to vector<64x20xbf16>
    %c64 = arith.constant 64 : index
    %c0_6 = arith.constant 0 : index
    %5 = vector.load %arg5[%c64, %c0_6] : memref<256x20xbf16, #tpu.memory_space<vmem>>, vector<64x20xbf16>
    tpu.vector_store %arg5[%c64, %c0_6], %4 {strides = array<i32>} : memref<256x20xbf16, #tpu.memory_space<vmem>>, vector<64x20xbf16>,
    %c0_7 = arith.constant 0 : index
    %c0_8 = arith.constant 0 : index
    %c5 = arith.constant 5 : index
    %6 = vector.load %arg1[%c0_7, %c0_8, %c5] : memref<1x64x26xbf16, #tpu.memory_space<vmem>>, vector<1x64x20xbf16>
    %7 = vector.shape_cast %6 : vector<1x64x20xbf16> to vector<64x20xbf16>
    %c128 = arith.constant 128 : index
    %c0_9 = arith.constant 0 : index
    %8 = vector.load %arg5[%c128, %c0_9] : memref<256x20xbf16, #tpu.memory_space<vmem>>, vector<64x20xbf16>
    tpu.vector_store %arg5[%c128, %c0_9], %7 {strides = array<i32>} : memref<256x20xbf16, #tpu.memory_space<vmem>>, vector<64x20xbf16>,
    %c0_10 = arith.constant 0 : index
    %c0_11 = arith.constant 0 : index
    %c6 = arith.constant 6 : index
    %9 = vector.load %arg1[%c0_10, %c0_11, %c6] : memref<1x64x26xbf16, #tpu.memory_space<vmem>>, vector<1x64x20xbf16>
    %10 = vector.shape_cast %9 : vector<1x64x20xbf16> to vector<64x20xbf16>
    %c192 = arith.constant 192 : index
    %c0_12 = arith.constant 0 : index
    %11 = vector.load %arg5[%c192, %c0_12] : memref<256x20xbf16, #tpu.memory_space<vmem>>, vector<64x20xbf16>
    tpu.vector_store %arg5[%c192, %c0_12], %10 {strides = array<i32>} : memref<256x20xbf16, #tpu.memory_space<vmem>>, vector<64x20xbf16>,
    %c0_13 = arith.constant 0 : index
    %c0_14 = arith.constant 0 : index
    %12 = vector.load %arg2[%c0_13, %c0_14] : memref<32x256xbf16, #tpu.memory_space<vmem>>, vector<32x256xbf16>
    %c0_15 = arith.constant 0 : index
    %c0_16 = arith.constant 0 : index
    %13 = vector.load %arg5[%c0_15, %c0_16] : memref<256x20xbf16, #tpu.memory_space<vmem>>, vector<256x20xbf16>
    %cst = arith.constant dense<0.000000e+00> : vector<32x20xf32>
    %14 = tpu.matmul %12, %13, %cst {dimension_numbers = #tpu.dot_dimension_numbers<[1], [0], [0], [1], [0, 0, 1, 1], [], []>} : vector<32x256xbf16>, vector<256x20xbf16>, vector<32x20xf32> -> vector<32x20xf32>
    %c0_17 = arith.constant 0 : index
    %c0_18 = arith.constant 0 : index
    %15 = vector.load %arg3[%c0_17, %c0_18] : memref<32x1xf32, #tpu.memory_space<vmem>>, vector<32x1xf32>
    %16 = vector.broadcast %15 : vector<32x1xf32> to vector<32x20xf32>
    %17 = arith.addf %14, %16 : vector<32x20xf32>
    %18 = tpu.iota {dimensions = array<i32: 1>} : vector<1x20xi32>
    %c5_i32 = arith.constant 5 : i32
    %c0_i32 = arith.constant 0 : i32
    %19 = arith.cmpi eq, %c5_i32, %c0_i32 : i32
    %c1_i32 = arith.constant 1 : i32
    %20 = arith.select %19, %c1_i32, %c5_i32 : i32
    %21 = vector.broadcast %20 : i32 to vector<1x20xi32>
    %22 = arith.remsi %18, %21 : vector<1x20xi32>
    %c0_i32_19 = arith.constant 0 : i32
    %23 = vector.broadcast %c0_i32_19 : i32 to vector<1x20xi32>
    %24 = arith.cmpi ne, %22, %23 : vector<1x20xi32>
    %c0_i32_20 = arith.constant 0 : i32
    %25 = vector.broadcast %c0_i32_20 : i32 to vector<1x20xi32>
    %26 = arith.cmpi slt, %22, %25 : vector<1x20xi32>
    %c0_i32_21 = arith.constant 0 : i32
    %27 = arith.cmpi slt, %20, %c0_i32_21 : i32
    %28 = vector.broadcast %27 : i1 to vector<1x20xi1>
    %29 = vector.broadcast %28 : vector<1x20xi1> to vector<1x20xi1>
    %30 = arith.xori %26, %29 : vector<1x20xi1>
    %31 = arith.andi %30, %24 : vector<1x20xi1>
    %32 = vector.broadcast %20 : i32 to vector<1x20xi32>
    %33 = arith.addi %22, %32 : vector<1x20xi32>
    %34 = arith.select %31, %33, %22 : vector<1x20xi1>, vector<1x20xi32>
    %c4_i32 = arith.constant 4 : i32
    %35 = vector.broadcast %c4_i32 : i32 to vector<1x20xi32>
    %36 = arith.cmpi slt, %34, %35 : vector<1x20xi32>
    %cst_22 = arith.constant 0.000000e+00 : f32
    %37 = vector.shape_cast %36 : vector<1x20xi1> to vector<1x20xi1>
    %38 = vector.broadcast %37 : vector<1x20xi1> to vector<32x20xi1>
    %39 = vector.broadcast %cst_22 : f32 to vector<32x20xf32>
    %40 = arith.select %38, %17, %39 : vector<32x20xi1>, vector<32x20xf32>
    %cst_23 = arith.constant dense<0.000000e+00> : vector<32xf32>
    %41 = vector.multi_reduction <add>, %40, %cst_23 [1] : vector<32x20xf32> to vector<32xf32>
    %42 = vector.shape_cast %41 : vector<32xf32> to vector<32x1xf32>
    %cst_24 = arith.constant 1.600000e+01 : f32
    %43 = vector.broadcast %cst_24 : f32 to vector<32x1xf32>
    %44 = arith.divf %42, %43 : vector<32x1xf32>
    %45 = vector.broadcast %44 : vector<32x1xf32> to vector<32x20xf32>
    %46 = arith.subf %17, %45 : vector<32x20xf32>
    %cst_25 = arith.constant 0.000000e+00 : f32
    %47 = vector.shape_cast %36 : vector<1x20xi1> to vector<1x20xi1>
    %48 = vector.broadcast %47 : vector<1x20xi1> to vector<32x20xi1>
    %49 = vector.broadcast %cst_25 : f32 to vector<32x20xf32>
    %50 = arith.select %48, %46, %49 : vector<32x20xi1>, vector<32x20xf32>
    %51 = arith.mulf %50, %50 : vector<32x20xf32>
    %cst_26 = arith.constant dense<0.000000e+00> : vector<32xf32>
    %52 = vector.multi_reduction <add>, %51, %cst_26 [1] : vector<32x20xf32> to vector<32xf32>
    %53 = vector.shape_cast %52 : vector<32xf32> to vector<32x1xf32>
    %cst_27 = arith.constant 1.600000e+01 : f32
    %54 = vector.broadcast %cst_27 : f32 to vector<32x1xf32>
    %55 = arith.divf %53, %54 : vector<32x1xf32>
    %56 = vector.broadcast %44 : vector<32x1xf32> to vector<32x20xf32>
    %57 = arith.subf %17, %56 : vector<32x20xf32>
    %cst_28 = arith.constant 9.99999974E-6 : f32
    %58 = vector.broadcast %cst_28 : f32 to vector<32x1xf32>
    %59 = arith.addf %55, %58 : vector<32x1xf32>
    %60 = math.rsqrt %59 : vector<32x1xf32>
    %61 = vector.broadcast %60 : vector<32x1xf32> to vector<32x20xf32>
    %62 = arith.mulf %57, %61 : vector<32x20xf32>
    %cst_29 = arith.constant 0.000000e+00 : f32
    %63 = vector.broadcast %cst_29 : f32 to vector<32x20xf32>
    %64 = arith.maximumf %62, %63 : vector<32x20xf32>
    %65 = arith.truncf %64 : vector<32x20xf32> to vector<32x20xbf16>
    %c0_30 = arith.constant 0 : index
    %c0_31 = arith.constant 0 : index
    %c0_32 = arith.constant 0 : index
    %66 = vector.load %arg4[%c0_30, %c0_31, %c0_32] : memref<1x32x20xbf16, #tpu.memory_space<vmem>>, vector<1x32x20xbf16>
    %67 = vector.shape_cast %66 : vector<1x32x20xbf16> to vector<32x20xbf16>
    %68 = vector.shape_cast %65 : vector<32x20xbf16> to vector<1x32x20xbf16>
    tpu.vector_store %arg4[%c0_30, %c0_31, %c0_32], %68 {strides = array<i32>} : memref<1x32x20xbf16, #tpu.memory_space<vmem>>, vector<1x32x20xbf16>,
    return
  }
  func.func @transform_0(%arg0: i32) -> (i32, i32, i32) {
    %c0_i32 = arith.constant 0 : i32
    %c0_i32_0 = arith.constant 0 : i32
    %c0_i32_1 = arith.constant 0 : i32
    return %arg0, %c0_i32, %c0_i32_0 : i32, i32, i32
  }
  func.func @transform_1(%arg0: i32) -> (i32, i32) {
    %c0_i32 = arith.constant 0 : i32
    %c0_i32_0 = arith.constant 0 : i32
    %c0_i32_1 = arith.constant 0 : i32
    return %c0_i32, %c0_i32_0 : i32, i32
  }
  func.func @transform_2(%arg0: i32) -> (i32, i32) {
    %c0_i32 = arith.constant 0 : i32
    %c0_i32_0 = arith.constant 0 : i32
    %c0_i32_1 = arith.constant 0 : i32
    return %c0_i32, %c0_i32_0 : i32, i32
  }
  func.func @transform_3(%arg0: i32) -> (i32, i32, i32) {
    %c0_i32 = arith.constant 0 : i32
    %c0_i32_0 = arith.constant 0 : i32
    %c0_i32_1 = arith.constant 0 : i32
    return %arg0, %c0_i32, %c0_i32_0 : i32, i32, i32
  }
}

module attributes {stable_mosaic.version = 11 : i64} {
  func.func @_res_block_kernel(%arg0: i32, %arg1: memref<1x32x38xbf16, #tpu.memory_space<vmem>>, %arg2: memref<32x288xbf16, #tpu.memory_space<vmem>>, %arg3: memref<32x1xf32, #tpu.memory_space<vmem>>, %arg4: memref<32x1xf32, #tpu.memory_space<vmem>>, %arg5: memref<32x1xf32, #tpu.memory_space<vmem>>, %arg6: memref<32x288xbf16, #tpu.memory_space<vmem>>, %arg7: memref<32x1xf32, #tpu.memory_space<vmem>>, %arg8: memref<32x1xf32, #tpu.memory_space<vmem>>, %arg9: memref<32x1xf32, #tpu.memory_space<vmem>>, %arg10: memref<1x32x24xbf16, #tpu.memory_space<vmem>>, %arg11: memref<288x24xbf16, #tpu.memory_space<vmem>>, %arg12: memref<32x38xbf16, #tpu.memory_space<vmem>>) attributes {dimension_semantics = [#tpu.dimension_semantics<parallel>], iteration_bounds = array<i64: 2>, scalar_prefetch = 0 : i64, scratch_operands = 2 : i64, tpu.core_type = #tpu.core_type<tc>, window_params = [{transform_indices = @transform_0, window_bounds = array<i64: 1, 32, 38>}, {pipeline_mode = #tpu.pipeline_mode<synchronous>, transform_indices = @transform_1, window_bounds = array<i64: 32, 288>}, {pipeline_mode = #tpu.pipeline_mode<synchronous>, transform_indices = @transform_2, window_bounds = array<i64: 32, 1>}, {pipeline_mode = #tpu.pipeline_mode<synchronous>, transform_indices = @transform_3, window_bounds = array<i64: 32, 1>}, {pipeline_mode = #tpu.pipeline_mode<synchronous>, transform_indices = @transform_4, window_bounds = array<i64: 32, 1>}, {pipeline_mode = #tpu.pipeline_mode<synchronous>, transform_indices = @transform_5, window_bounds = array<i64: 32, 288>}, {pipeline_mode = #tpu.pipeline_mode<synchronous>, transform_indices = @transform_6, window_bounds = array<i64: 32, 1>}, {pipeline_mode = #tpu.pipeline_mode<synchronous>, transform_indices = @transform_7, window_bounds = array<i64: 32, 1>}, {pipeline_mode = #tpu.pipeline_mode<synchronous>, transform_indices = @transform_8, window_bounds = array<i64: 32, 1>}, {transform_indices = @transform_9, window_bounds = array<i64: 1, 32, 24>}]} {
    %0 = tpu.iota {dimensions = array<i32: 1>} : vector<1x24xi32>
    %c6_i32 = arith.constant 6 : i32
    %c0_i32 = arith.constant 0 : i32
    %1 = arith.cmpi eq, %c6_i32, %c0_i32 : i32
    %c1_i32 = arith.constant 1 : i32
    %2 = arith.select %1, %c1_i32, %c6_i32 : i32
    %3 = vector.broadcast %2 : i32 to vector<1x24xi32>
    %4 = arith.remsi %0, %3 : vector<1x24xi32>
    %c0_i32_0 = arith.constant 0 : i32
    %5 = vector.broadcast %c0_i32_0 : i32 to vector<1x24xi32>
    %6 = arith.cmpi ne, %4, %5 : vector<1x24xi32>
    %c0_i32_1 = arith.constant 0 : i32
    %7 = vector.broadcast %c0_i32_1 : i32 to vector<1x24xi32>
    %8 = arith.cmpi slt, %4, %7 : vector<1x24xi32>
    %c0_i32_2 = arith.constant 0 : i32
    %9 = arith.cmpi slt, %2, %c0_i32_2 : i32
    %10 = vector.broadcast %9 : i1 to vector<1x24xi1>
    %11 = vector.broadcast %10 : vector<1x24xi1> to vector<1x24xi1>
    %12 = arith.xori %8, %11 : vector<1x24xi1>
    %13 = arith.andi %12, %6 : vector<1x24xi1>
    %14 = vector.broadcast %2 : i32 to vector<1x24xi32>
    %15 = arith.addi %4, %14 : vector<1x24xi32>
    %16 = arith.select %13, %15, %4 : vector<1x24xi1>, vector<1x24xi32>
    %c4_i32 = arith.constant 4 : i32
    %17 = vector.broadcast %c4_i32 : i32 to vector<1x24xi32>
    %18 = arith.cmpi slt, %16, %17 : vector<1x24xi32>
    %c0 = arith.constant 0 : index
    %c0_3 = arith.constant 0 : index
    %c0_4 = arith.constant 0 : index
    %19 = vector.load %arg1[%c0, %c0_3, %c0_4] : memref<1x32x38xbf16, #tpu.memory_space<vmem>>, vector<1x32x24xbf16>
    %20 = vector.shape_cast %19 : vector<1x32x24xbf16> to vector<32x24xbf16>
    %c0_5 = arith.constant 0 : index
    %c0_6 = arith.constant 0 : index
    %21 = vector.load %arg11[%c0_5, %c0_6] : memref<288x24xbf16, #tpu.memory_space<vmem>>, vector<32x24xbf16>
    tpu.vector_store %arg11[%c0_5, %c0_6], %20 {strides = array<i32>} : memref<288x24xbf16, #tpu.memory_space<vmem>>, vector<32x24xbf16>,
    %c0_7 = arith.constant 0 : index
    %c0_8 = arith.constant 0 : index
    %c1 = arith.constant 1 : index
    %22 = vector.load %arg1[%c0_7, %c0_8, %c1] : memref<1x32x38xbf16, #tpu.memory_space<vmem>>, vector<1x32x24xbf16>
    %23 = vector.shape_cast %22 : vector<1x32x24xbf16> to vector<32x24xbf16>
    %c32 = arith.constant 32 : index
    %c0_9 = arith.constant 0 : index
    %24 = vector.load %arg11[%c32, %c0_9] : memref<288x24xbf16, #tpu.memory_space<vmem>>, vector<32x24xbf16>
    tpu.vector_store %arg11[%c32, %c0_9], %23 {strides = array<i32>} : memref<288x24xbf16, #tpu.memory_space<vmem>>, vector<32x24xbf16>,
    %c0_10 = arith.constant 0 : index
    %c0_11 = arith.constant 0 : index
    %c2 = arith.constant 2 : index
    %25 = vector.load %arg1[%c0_10, %c0_11, %c2] : memref<1x32x38xbf16, #tpu.memory_space<vmem>>, vector<1x32x24xbf16>
    %26 = vector.shape_cast %25 : vector<1x32x24xbf16> to vector<32x24xbf16>
    %c64 = arith.constant 64 : index
    %c0_12 = arith.constant 0 : index
    %27 = vector.load %arg11[%c64, %c0_12] : memref<288x24xbf16, #tpu.memory_space<vmem>>, vector<32x24xbf16>
    tpu.vector_store %arg11[%c64, %c0_12], %26 {strides = array<i32>} : memref<288x24xbf16, #tpu.memory_space<vmem>>, vector<32x24xbf16>,
    %c0_13 = arith.constant 0 : index
    %c0_14 = arith.constant 0 : index
    %c6 = arith.constant 6 : index
    %28 = vector.load %arg1[%c0_13, %c0_14, %c6] : memref<1x32x38xbf16, #tpu.memory_space<vmem>>, vector<1x32x24xbf16>
    %29 = vector.shape_cast %28 : vector<1x32x24xbf16> to vector<32x24xbf16>
    %c96 = arith.constant 96 : index
    %c0_15 = arith.constant 0 : index
    %30 = vector.load %arg11[%c96, %c0_15] : memref<288x24xbf16, #tpu.memory_space<vmem>>, vector<32x24xbf16>
    tpu.vector_store %arg11[%c96, %c0_15], %29 {strides = array<i32>} : memref<288x24xbf16, #tpu.memory_space<vmem>>, vector<32x24xbf16>,
    %c0_16 = arith.constant 0 : index
    %c0_17 = arith.constant 0 : index
    %c7 = arith.constant 7 : index
    %31 = vector.load %arg1[%c0_16, %c0_17, %c7] : memref<1x32x38xbf16, #tpu.memory_space<vmem>>, vector<1x32x24xbf16>
    %32 = vector.shape_cast %31 : vector<1x32x24xbf16> to vector<32x24xbf16>
    %c128 = arith.constant 128 : index
    %c0_18 = arith.constant 0 : index
    %33 = vector.load %arg11[%c128, %c0_18] : memref<288x24xbf16, #tpu.memory_space<vmem>>, vector<32x24xbf16>
    tpu.vector_store %arg11[%c128, %c0_18], %32 {strides = array<i32>} : memref<288x24xbf16, #tpu.memory_space<vmem>>, vector<32x24xbf16>,
    %c0_19 = arith.constant 0 : index
    %c0_20 = arith.constant 0 : index
    %c8 = arith.constant 8 : index
    %34 = vector.load %arg1[%c0_19, %c0_20, %c8] : memref<1x32x38xbf16, #tpu.memory_space<vmem>>, vector<1x32x24xbf16>
    %35 = vector.shape_cast %34 : vector<1x32x24xbf16> to vector<32x24xbf16>
    %c160 = arith.constant 160 : index
    %c0_21 = arith.constant 0 : index
    %36 = vector.load %arg11[%c160, %c0_21] : memref<288x24xbf16, #tpu.memory_space<vmem>>, vector<32x24xbf16>
    tpu.vector_store %arg11[%c160, %c0_21], %35 {strides = array<i32>} : memref<288x24xbf16, #tpu.memory_space<vmem>>, vector<32x24xbf16>,
    %c0_22 = arith.constant 0 : index
    %c0_23 = arith.constant 0 : index
    %c12 = arith.constant 12 : index
    %37 = vector.load %arg1[%c0_22, %c0_23, %c12] : memref<1x32x38xbf16, #tpu.memory_space<vmem>>, vector<1x32x24xbf16>
    %38 = vector.shape_cast %37 : vector<1x32x24xbf16> to vector<32x24xbf16>
    %c192 = arith.constant 192 : index
    %c0_24 = arith.constant 0 : index
    %39 = vector.load %arg11[%c192, %c0_24] : memref<288x24xbf16, #tpu.memory_space<vmem>>, vector<32x24xbf16>
    tpu.vector_store %arg11[%c192, %c0_24], %38 {strides = array<i32>} : memref<288x24xbf16, #tpu.memory_space<vmem>>, vector<32x24xbf16>,
    %c0_25 = arith.constant 0 : index
    %c0_26 = arith.constant 0 : index
    %c13 = arith.constant 13 : index
    %40 = vector.load %arg1[%c0_25, %c0_26, %c13] : memref<1x32x38xbf16, #tpu.memory_space<vmem>>, vector<1x32x24xbf16>
    %41 = vector.shape_cast %40 : vector<1x32x24xbf16> to vector<32x24xbf16>
    %c224 = arith.constant 224 : index
    %c0_27 = arith.constant 0 : index
    %42 = vector.load %arg11[%c224, %c0_27] : memref<288x24xbf16, #tpu.memory_space<vmem>>, vector<32x24xbf16>
    tpu.vector_store %arg11[%c224, %c0_27], %41 {strides = array<i32>} : memref<288x24xbf16, #tpu.memory_space<vmem>>, vector<32x24xbf16>,
    %c0_28 = arith.constant 0 : index
    %c0_29 = arith.constant 0 : index
    %c14 = arith.constant 14 : index
    %43 = vector.load %arg1[%c0_28, %c0_29, %c14] : memref<1x32x38xbf16, #tpu.memory_space<vmem>>, vector<1x32x24xbf16>
    %44 = vector.shape_cast %43 : vector<1x32x24xbf16> to vector<32x24xbf16>
    %c256 = arith.constant 256 : index
    %c0_30 = arith.constant 0 : index
    %45 = vector.load %arg11[%c256, %c0_30] : memref<288x24xbf16, #tpu.memory_space<vmem>>, vector<32x24xbf16>
    tpu.vector_store %arg11[%c256, %c0_30], %44 {strides = array<i32>} : memref<288x24xbf16, #tpu.memory_space<vmem>>, vector<32x24xbf16>,
    %c0_31 = arith.constant 0 : index
    %c0_32 = arith.constant 0 : index
    %46 = vector.load %arg2[%c0_31, %c0_32] : memref<32x288xbf16, #tpu.memory_space<vmem>>, vector<32x288xbf16>
    %c0_33 = arith.constant 0 : index
    %c0_34 = arith.constant 0 : index
    %47 = vector.load %arg11[%c0_33, %c0_34] : memref<288x24xbf16, #tpu.memory_space<vmem>>, vector<288x24xbf16>
    %cst = arith.constant dense<0.000000e+00> : vector<32x24xf32>
    %48 = tpu.matmul %46, %47, %cst {dimension_numbers = #tpu.dot_dimension_numbers<[1], [0], [0], [1], [0, 0, 1, 1], [], []>} : vector<32x288xbf16>, vector<288x24xbf16>, vector<32x24xf32> -> vector<32x24xf32>
    %c0_35 = arith.constant 0 : index
    %c0_36 = arith.constant 0 : index
    %49 = vector.load %arg3[%c0_35, %c0_36] : memref<32x1xf32, #tpu.memory_space<vmem>>, vector<32x1xf32>
    %50 = vector.broadcast %49 : vector<32x1xf32> to vector<32x24xf32>
    %51 = arith.addf %48, %50 : vector<32x24xf32>
    %c0_37 = arith.constant 0 : index
    %c0_38 = arith.constant 0 : index
    %52 = vector.load %arg4[%c0_37, %c0_38] : memref<32x1xf32, #tpu.memory_space<vmem>>, vector<32x1xf32>
    %c0_39 = arith.constant 0 : index
    %c0_40 = arith.constant 0 : index
    %53 = vector.load %arg5[%c0_39, %c0_40] : memref<32x1xf32, #tpu.memory_space<vmem>>, vector<32x1xf32>
    %cst_41 = arith.constant 0.000000e+00 : f32
    %54 = vector.shape_cast %18 : vector<1x24xi1> to vector<1x24xi1>
    %55 = vector.broadcast %54 : vector<1x24xi1> to vector<32x24xi1>
    %56 = vector.broadcast %cst_41 : f32 to vector<32x24xf32>
    %57 = arith.select %55, %51, %56 : vector<32x24xi1>, vector<32x24xf32>
    %cst_42 = arith.constant dense<0.000000e+00> : vector<32xf32>
    %58 = vector.multi_reduction <add>, %57, %cst_42 [1] : vector<32x24xf32> to vector<32xf32>
    %59 = vector.shape_cast %58 : vector<32xf32> to vector<32x1xf32>
    %cst_43 = arith.constant dense<0.000000e+00> : vector<1xf32>
    %60 = vector.multi_reduction <add>, %59, %cst_43 [0] : vector<32x1xf32> to vector<1xf32>
    %61 = vector.shape_cast %60 : vector<1xf32> to vector<1x1xf32>
    %cst_44 = arith.constant 5.120000e+02 : f32
    %62 = vector.broadcast %cst_44 : f32 to vector<1x1xf32>
    %63 = arith.divf %61, %62 : vector<1x1xf32>
    %64 = vector.broadcast %63 : vector<1x1xf32> to vector<32x24xf32>
    %65 = arith.subf %51, %64 : vector<32x24xf32>
    %cst_45 = arith.constant 0.000000e+00 : f32
    %66 = vector.shape_cast %18 : vector<1x24xi1> to vector<1x24xi1>
    %67 = vector.broadcast %66 : vector<1x24xi1> to vector<32x24xi1>
    %68 = vector.broadcast %cst_45 : f32 to vector<32x24xf32>
    %69 = arith.select %67, %65, %68 : vector<32x24xi1>, vector<32x24xf32>
    %70 = arith.mulf %69, %69 : vector<32x24xf32>
    %cst_46 = arith.constant dense<0.000000e+00> : vector<32xf32>
    %71 = vector.multi_reduction <add>, %70, %cst_46 [1] : vector<32x24xf32> to vector<32xf32>
    %72 = vector.shape_cast %71 : vector<32xf32> to vector<32x1xf32>
    %cst_47 = arith.constant dense<0.000000e+00> : vector<1xf32>
    %73 = vector.multi_reduction <add>, %72, %cst_47 [0] : vector<32x1xf32> to vector<1xf32>
    %74 = vector.shape_cast %73 : vector<1xf32> to vector<1x1xf32>
    %cst_48 = arith.constant 5.110000e+02 : f32
    %75 = vector.broadcast %cst_48 : f32 to vector<1x1xf32>
    %76 = arith.divf %74, %75 : vector<1x1xf32>
    %77 = math.sqrt %76 : vector<1x1xf32>
    %78 = vector.broadcast %63 : vector<1x1xf32> to vector<32x24xf32>
    %79 = arith.subf %51, %78 : vector<32x24xf32>
    %cst_49 = arith.constant 9.99999974E-6 : f32
    %80 = vector.broadcast %cst_49 : f32 to vector<1x1xf32>
    %81 = arith.addf %77, %80 : vector<1x1xf32>
    %82 = vector.broadcast %81 : vector<1x1xf32> to vector<32x24xf32>
    %83 = arith.divf %79, %82 : vector<32x24xf32>
    %84 = vector.broadcast %52 : vector<32x1xf32> to vector<32x24xf32>
    %85 = arith.mulf %83, %84 : vector<32x24xf32>
    %86 = vector.broadcast %53 : vector<32x1xf32> to vector<32x24xf32>
    %87 = arith.addf %85, %86 : vector<32x24xf32>
    %cst_50 = arith.constant 0.000000e+00 : f32
    %88 = vector.broadcast %cst_50 : f32 to vector<32x24xf32>
    %89 = arith.maximumf %87, %88 : vector<32x24xf32>
    %90 = arith.truncf %89 : vector<32x24xf32> to vector<32x24xbf16>
    %c0_51 = arith.constant 0 : index
    %c7_52 = arith.constant 7 : index
    %91 = vector.load %arg12[%c0_51, %c7_52] : memref<32x38xbf16, #tpu.memory_space<vmem>>, vector<32x24xbf16>
    tpu.vector_store %arg12[%c0_51, %c7_52], %90 {strides = array<i32>} : memref<32x38xbf16, #tpu.memory_space<vmem>>, vector<32x24xbf16>,
    %c0_53 = arith.constant 0 : index
    %c8_54 = arith.constant 8 : index
    %92 = vector.load %arg12[%c0_53, %c8_54] : memref<32x38xbf16, #tpu.memory_space<vmem>>, vector<32x1xbf16>
    %c0_55 = arith.constant 0 : index
    %c6_56 = arith.constant 6 : index
    %93 = vector.load %arg12[%c0_55, %c6_56] : memref<32x38xbf16, #tpu.memory_space<vmem>>, vector<32x1xbf16>
    tpu.vector_store %arg12[%c0_55, %c6_56], %92 {strides = array<i32>} : memref<32x38xbf16, #tpu.memory_space<vmem>>, vector<32x1xbf16>,
    %c0_57 = arith.constant 0 : index
    %c9 = arith.constant 9 : index
    %94 = vector.load %arg12[%c0_57, %c9] : memref<32x38xbf16, #tpu.memory_space<vmem>>, vector<32x1xbf16>
    %c0_58 = arith.constant 0 : index
    %c11 = arith.constant 11 : index
    %95 = vector.load %arg12[%c0_58, %c11] : memref<32x38xbf16, #tpu.memory_space<vmem>>, vector<32x1xbf16>
    tpu.vector_store %arg12[%c0_58, %c11], %94 {strides = array<i32>} : memref<32x38xbf16, #tpu.memory_space<vmem>>, vector<32x1xbf16>,
    %c0_59 = arith.constant 0 : index
    %c14_60 = arith.constant 14 : index
    %96 = vector.load %arg12[%c0_59, %c14_60] : memref<32x38xbf16, #tpu.memory_space<vmem>>, vector<32x1xbf16>
    %c0_61 = arith.constant 0 : index
    %c12_62 = arith.constant 12 : index
    %97 = vector.load %arg12[%c0_61, %c12_62] : memref<32x38xbf16, #tpu.memory_space<vmem>>, vector<32x1xbf16>
    tpu.vector_store %arg12[%c0_61, %c12_62], %96 {strides = array<i32>} : memref<32x38xbf16, #tpu.memory_space<vmem>>, vector<32x1xbf16>,
    %c0_63 = arith.constant 0 : index
    %c15 = arith.constant 15 : index
    %98 = vector.load %arg12[%c0_63, %c15] : memref<32x38xbf16, #tpu.memory_space<vmem>>, vector<32x1xbf16>
    %c0_64 = arith.constant 0 : index
    %c17 = arith.constant 17 : index
    %99 = vector.load %arg12[%c0_64, %c17] : memref<32x38xbf16, #tpu.memory_space<vmem>>, vector<32x1xbf16>
    tpu.vector_store %arg12[%c0_64, %c17], %98 {strides = array<i32>} : memref<32x38xbf16, #tpu.memory_space<vmem>>, vector<32x1xbf16>,
    %c0_65 = arith.constant 0 : index
    %c20 = arith.constant 20 : index
    %100 = vector.load %arg12[%c0_65, %c20] : memref<32x38xbf16, #tpu.memory_space<vmem>>, vector<32x1xbf16>
    %c0_66 = arith.constant 0 : index
    %c18 = arith.constant 18 : index
    %101 = vector.load %arg12[%c0_66, %c18] : memref<32x38xbf16, #tpu.memory_space<vmem>>, vector<32x1xbf16>
    tpu.vector_store %arg12[%c0_66, %c18], %100 {strides = array<i32>} : memref<32x38xbf16, #tpu.memory_space<vmem>>, vector<32x1xbf16>,
    %c0_67 = arith.constant 0 : index
    %c21 = arith.constant 21 : index
    %102 = vector.load %arg12[%c0_67, %c21] : memref<32x38xbf16, #tpu.memory_space<vmem>>, vector<32x1xbf16>
    %c0_68 = arith.constant 0 : index
    %c23 = arith.constant 23 : index
    %103 = vector.load %arg12[%c0_68, %c23] : memref<32x38xbf16, #tpu.memory_space<vmem>>, vector<32x1xbf16>
    tpu.vector_store %arg12[%c0_68, %c23], %102 {strides = array<i32>} : memref<32x38xbf16, #tpu.memory_space<vmem>>, vector<32x1xbf16>,
    %c0_69 = arith.constant 0 : index
    %c26 = arith.constant 26 : index
    %104 = vector.load %arg12[%c0_69, %c26] : memref<32x38xbf16, #tpu.memory_space<vmem>>, vector<32x1xbf16>
    %c0_70 = arith.constant 0 : index
    %c24 = arith.constant 24 : index
    %105 = vector.load %arg12[%c0_70, %c24] : memref<32x38xbf16, #tpu.memory_space<vmem>>, vector<32x1xbf16>
    tpu.vector_store %arg12[%c0_70, %c24], %104 {strides = array<i32>} : memref<32x38xbf16, #tpu.memory_space<vmem>>, vector<32x1xbf16>,
    %c0_71 = arith.constant 0 : index
    %c27 = arith.constant 27 : index
    %106 = vector.load %arg12[%c0_71, %c27] : memref<32x38xbf16, #tpu.memory_space<vmem>>, vector<32x1xbf16>
    %c0_72 = arith.constant 0 : index
    %c29 = arith.constant 29 : index
    %107 = vector.load %arg12[%c0_72, %c29] : memref<32x38xbf16, #tpu.memory_space<vmem>>, vector<32x1xbf16>
    tpu.vector_store %arg12[%c0_72, %c29], %106 {strides = array<i32>} : memref<32x38xbf16, #tpu.memory_space<vmem>>, vector<32x1xbf16>,
    %c0_73 = arith.constant 0 : index
    %c12_74 = arith.constant 12 : index
    %108 = vector.load %arg12[%c0_73, %c12_74] : memref<32x38xbf16, #tpu.memory_space<vmem>>, vector<32x6xbf16>
    %c0_75 = arith.constant 0 : index
    %c0_76 = arith.constant 0 : index
    %109 = vector.load %arg12[%c0_75, %c0_76] : memref<32x38xbf16, #tpu.memory_space<vmem>>, vector<32x6xbf16>
    tpu.vector_store %arg12[%c0_75, %c0_76], %108 {strides = array<i32>} : memref<32x38xbf16, #tpu.memory_space<vmem>>, vector<32x6xbf16>,
    %c0_77 = arith.constant 0 : index
    %c18_78 = arith.constant 18 : index
    %110 = vector.load %arg12[%c0_77, %c18_78] : memref<32x38xbf16, #tpu.memory_space<vmem>>, vector<32x6xbf16>
    %c0_79 = arith.constant 0 : index
    %c30 = arith.constant 30 : index
    %111 = vector.load %arg12[%c0_79, %c30] : memref<32x38xbf16, #tpu.memory_space<vmem>>, vector<32x6xbf16>
    tpu.vector_store %arg12[%c0_79, %c30], %110 {strides = array<i32>} : memref<32x38xbf16, #tpu.memory_space<vmem>>, vector<32x6xbf16>,
    %cst_80 = arith.constant 0.000000e+00 : bf16
    %112 = vector.broadcast %cst_80 : bf16 to vector<32x2xbf16>
    %c0_81 = arith.constant 0 : index
    %c36 = arith.constant 36 : index
    %113 = vector.load %arg12[%c0_81, %c36] : memref<32x38xbf16, #tpu.memory_space<vmem>>, vector<32x2xbf16>
    tpu.vector_store %arg12[%c0_81, %c36], %112 {strides = array<i32>} : memref<32x38xbf16, #tpu.memory_space<vmem>>, vector<32x2xbf16>,
    %c0_82 = arith.constant 0 : index
    %c0_83 = arith.constant 0 : index
    %114 = vector.load %arg12[%c0_82, %c0_83] : memref<32x38xbf16, #tpu.memory_space<vmem>>, vector<32x24xbf16>
    %c0_84 = arith.constant 0 : index
    %c0_85 = arith.constant 0 : index
    %115 = vector.load %arg11[%c0_84, %c0_85] : memref<288x24xbf16, #tpu.memory_space<vmem>>, vector<32x24xbf16>
    tpu.vector_store %arg11[%c0_84, %c0_85], %114 {strides = array<i32>} : memref<288x24xbf16, #tpu.memory_space<vmem>>, vector<32x24xbf16>,
    %c0_86 = arith.constant 0 : index
    %c1_87 = arith.constant 1 : index
    %116 = vector.load %arg12[%c0_86, %c1_87] : memref<32x38xbf16, #tpu.memory_space<vmem>>, vector<32x24xbf16>
    %c32_88 = arith.constant 32 : index
    %c0_89 = arith.constant 0 : index
    %117 = vector.load %arg11[%c32_88, %c0_89] : memref<288x24xbf16, #tpu.memory_space<vmem>>, vector<32x24xbf16>
    tpu.vector_store %arg11[%c32_88, %c0_89], %116 {strides = array<i32>} : memref<288x24xbf16, #tpu.memory_space<vmem>>, vector<32x24xbf16>,
    %c0_90 = arith.constant 0 : index
    %c2_91 = arith.constant 2 : index
    %118 = vector.load %arg12[%c0_90, %c2_91] : memref<32x38xbf16, #tpu.memory_space<vmem>>, vector<32x24xbf16>
    %c64_92 = arith.constant 64 : index
    %c0_93 = arith.constant 0 : index
    %119 = vector.load %arg11[%c64_92, %c0_93] : memref<288x24xbf16, #tpu.memory_space<vmem>>, vector<32x24xbf16>
    tpu.vector_store %arg11[%c64_92, %c0_93], %118 {strides = array<i32>} : memref<288x24xbf16, #tpu.memory_space<vmem>>, vector<32x24xbf16>,
    %c0_94 = arith.constant 0 : index
    %c6_95 = arith.constant 6 : index
    %120 = vector.load %arg12[%c0_94, %c6_95] : memref<32x38xbf16, #tpu.memory_space<vmem>>, vector<32x24xbf16>
    %c96_96 = arith.constant 96 : index
    %c0_97 = arith.constant 0 : index
    %121 = vector.load %arg11[%c96_96, %c0_97] : memref<288x24xbf16, #tpu.memory_space<vmem>>, vector<32x24xbf16>
    tpu.vector_store %arg11[%c96_96, %c0_97], %120 {strides = array<i32>} : memref<288x24xbf16, #tpu.memory_space<vmem>>, vector<32x24xbf16>,
    %c0_98 = arith.constant 0 : index
    %c7_99 = arith.constant 7 : index
    %122 = vector.load %arg12[%c0_98, %c7_99] : memref<32x38xbf16, #tpu.memory_space<vmem>>, vector<32x24xbf16>
    %c128_100 = arith.constant 128 : index
    %c0_101 = arith.constant 0 : index
    %123 = vector.load %arg11[%c128_100, %c0_101] : memref<288x24xbf16, #tpu.memory_space<vmem>>, vector<32x24xbf16>
    tpu.vector_store %arg11[%c128_100, %c0_101], %122 {strides = array<i32>} : memref<288x24xbf16, #tpu.memory_space<vmem>>, vector<32x24xbf16>,
    %c0_102 = arith.constant 0 : index
    %c8_103 = arith.constant 8 : index
    %124 = vector.load %arg12[%c0_102, %c8_103] : memref<32x38xbf16, #tpu.memory_space<vmem>>, vector<32x24xbf16>
    %c160_104 = arith.constant 160 : index
    %c0_105 = arith.constant 0 : index
    %125 = vector.load %arg11[%c160_104, %c0_105] : memref<288x24xbf16, #tpu.memory_space<vmem>>, vector<32x24xbf16>
    tpu.vector_store %arg11[%c160_104, %c0_105], %124 {strides = array<i32>} : memref<288x24xbf16, #tpu.memory_space<vmem>>, vector<32x24xbf16>,
    %c0_106 = arith.constant 0 : index
    %c12_107 = arith.constant 12 : index
    %126 = vector.load %arg12[%c0_106, %c12_107] : memref<32x38xbf16, #tpu.memory_space<vmem>>, vector<32x24xbf16>
    %c192_108 = arith.constant 192 : index
    %c0_109 = arith.constant 0 : index
    %127 = vector.load %arg11[%c192_108, %c0_109] : memref<288x24xbf16, #tpu.memory_space<vmem>>, vector<32x24xbf16>
    tpu.vector_store %arg11[%c192_108, %c0_109], %126 {strides = array<i32>} : memref<288x24xbf16, #tpu.memory_space<vmem>>, vector<32x24xbf16>,
    %c0_110 = arith.constant 0 : index
    %c13_111 = arith.constant 13 : index
    %128 = vector.load %arg12[%c0_110, %c13_111] : memref<32x38xbf16, #tpu.memory_space<vmem>>, vector<32x24xbf16>
    %c224_112 = arith.constant 224 : index
    %c0_113 = arith.constant 0 : index
    %129 = vector.load %arg11[%c224_112, %c0_113] : memref<288x24xbf16, #tpu.memory_space<vmem>>, vector<32x24xbf16>
    tpu.vector_store %arg11[%c224_112, %c0_113], %128 {strides = array<i32>} : memref<288x24xbf16, #tpu.memory_space<vmem>>, vector<32x24xbf16>,
    %c0_114 = arith.constant 0 : index
    %c14_115 = arith.constant 14 : index
    %130 = vector.load %arg12[%c0_114, %c14_115] : memref<32x38xbf16, #tpu.memory_space<vmem>>, vector<32x24xbf16>
    %c256_116 = arith.constant 256 : index
    %c0_117 = arith.constant 0 : index
    %131 = vector.load %arg11[%c256_116, %c0_117] : memref<288x24xbf16, #tpu.memory_space<vmem>>, vector<32x24xbf16>
    tpu.vector_store %arg11[%c256_116, %c0_117], %130 {strides = array<i32>} : memref<288x24xbf16, #tpu.memory_space<vmem>>, vector<32x24xbf16>,
    %c0_118 = arith.constant 0 : index
    %c0_119 = arith.constant 0 : index
    %132 = vector.load %arg6[%c0_118, %c0_119] : memref<32x288xbf16, #tpu.memory_space<vmem>>, vector<32x288xbf16>
    %c0_120 = arith.constant 0 : index
    %c0_121 = arith.constant 0 : index
    %133 = vector.load %arg11[%c0_120, %c0_121] : memref<288x24xbf16, #tpu.memory_space<vmem>>, vector<288x24xbf16>
    %cst_122 = arith.constant dense<0.000000e+00> : vector<32x24xf32>
    %134 = tpu.matmul %132, %133, %cst_122 {dimension_numbers = #tpu.dot_dimension_numbers<[1], [0], [0], [1], [0, 0, 1, 1], [], []>} : vector<32x288xbf16>, vector<288x24xbf16>, vector<32x24xf32> -> vector<32x24xf32>
    %c0_123 = arith.constant 0 : index
    %c0_124 = arith.constant 0 : index
    %135 = vector.load %arg7[%c0_123, %c0_124] : memref<32x1xf32, #tpu.memory_space<vmem>>, vector<32x1xf32>
    %136 = vector.broadcast %135 : vector<32x1xf32> to vector<32x24xf32>
    %137 = arith.addf %134, %136 : vector<32x24xf32>
    %c0_125 = arith.constant 0 : index
    %c0_126 = arith.constant 0 : index
    %138 = vector.load %arg8[%c0_125, %c0_126] : memref<32x1xf32, #tpu.memory_space<vmem>>, vector<32x1xf32>
    %c0_127 = arith.constant 0 : index
    %c0_128 = arith.constant 0 : index
    %139 = vector.load %arg9[%c0_127, %c0_128] : memref<32x1xf32, #tpu.memory_space<vmem>>, vector<32x1xf32>
    %cst_129 = arith.constant 0.000000e+00 : f32
    %140 = vector.shape_cast %18 : vector<1x24xi1> to vector<1x24xi1>
    %141 = vector.broadcast %140 : vector<1x24xi1> to vector<32x24xi1>
    %142 = vector.broadcast %cst_129 : f32 to vector<32x24xf32>
    %143 = arith.select %141, %137, %142 : vector<32x24xi1>, vector<32x24xf32>
    %cst_130 = arith.constant dense<0.000000e+00> : vector<32xf32>
    %144 = vector.multi_reduction <add>, %143, %cst_130 [1] : vector<32x24xf32> to vector<32xf32>
    %145 = vector.shape_cast %144 : vector<32xf32> to vector<32x1xf32>
    %cst_131 = arith.constant dense<0.000000e+00> : vector<1xf32>
    %146 = vector.multi_reduction <add>, %145, %cst_131 [0] : vector<32x1xf32> to vector<1xf32>
    %147 = vector.shape_cast %146 : vector<1xf32> to vector<1x1xf32>
    %cst_132 = arith.constant 5.120000e+02 : f32
    %148 = vector.broadcast %cst_132 : f32 to vector<1x1xf32>
    %149 = arith.divf %147, %148 : vector<1x1xf32>
    %150 = vector.broadcast %149 : vector<1x1xf32> to vector<32x24xf32>
    %151 = arith.subf %137, %150 : vector<32x24xf32>
    %cst_133 = arith.constant 0.000000e+00 : f32
    %152 = vector.shape_cast %18 : vector<1x24xi1> to vector<1x24xi1>
    %153 = vector.broadcast %152 : vector<1x24xi1> to vector<32x24xi1>
    %154 = vector.broadcast %cst_133 : f32 to vector<32x24xf32>
    %155 = arith.select %153, %151, %154 : vector<32x24xi1>, vector<32x24xf32>
    %156 = arith.mulf %155, %155 : vector<32x24xf32>
    %cst_134 = arith.constant dense<0.000000e+00> : vector<32xf32>
    %157 = vector.multi_reduction <add>, %156, %cst_134 [1] : vector<32x24xf32> to vector<32xf32>
    %158 = vector.shape_cast %157 : vector<32xf32> to vector<32x1xf32>
    %cst_135 = arith.constant dense<0.000000e+00> : vector<1xf32>
    %159 = vector.multi_reduction <add>, %158, %cst_135 [0] : vector<32x1xf32> to vector<1xf32>
    %160 = vector.shape_cast %159 : vector<1xf32> to vector<1x1xf32>
    %cst_136 = arith.constant 5.110000e+02 : f32
    %161 = vector.broadcast %cst_136 : f32 to vector<1x1xf32>
    %162 = arith.divf %160, %161 : vector<1x1xf32>
    %163 = math.sqrt %162 : vector<1x1xf32>
    %164 = vector.broadcast %149 : vector<1x1xf32> to vector<32x24xf32>
    %165 = arith.subf %137, %164 : vector<32x24xf32>
    %cst_137 = arith.constant 9.99999974E-6 : f32
    %166 = vector.broadcast %cst_137 : f32 to vector<1x1xf32>
    %167 = arith.addf %163, %166 : vector<1x1xf32>
    %168 = vector.broadcast %167 : vector<1x1xf32> to vector<32x24xf32>
    %169 = arith.divf %165, %168 : vector<32x24xf32>
    %170 = vector.broadcast %138 : vector<32x1xf32> to vector<32x24xf32>
    %171 = arith.mulf %169, %170 : vector<32x24xf32>
    %172 = vector.broadcast %139 : vector<32x1xf32> to vector<32x24xf32>
    %173 = arith.addf %171, %172 : vector<32x24xf32>
    %c0_138 = arith.constant 0 : index
    %c0_139 = arith.constant 0 : index
    %c7_140 = arith.constant 7 : index
    %174 = vector.load %arg1[%c0_138, %c0_139, %c7_140] : memref<1x32x38xbf16, #tpu.memory_space<vmem>>, vector<1x32x24xbf16>
    %175 = vector.shape_cast %174 : vector<1x32x24xbf16> to vector<32x24xbf16>
    %176 = arith.extf %175 : vector<32x24xbf16> to vector<32x24xf32>
    %177 = arith.addf %173, %176 : vector<32x24xf32>
    %178 = arith.truncf %177 : vector<32x24xf32> to vector<32x24xbf16>
    %c0_141 = arith.constant 0 : index
    %c0_142 = arith.constant 0 : index
    %c0_143 = arith.constant 0 : index
    %179 = vector.load %arg10[%c0_141, %c0_142, %c0_143] : memref<1x32x24xbf16, #tpu.memory_space<vmem>>, vector<1x32x24xbf16>
    %180 = vector.shape_cast %179 : vector<1x32x24xbf16> to vector<32x24xbf16>
    %181 = vector.shape_cast %178 : vector<32x24xbf16> to vector<1x32x24xbf16>
    tpu.vector_store %arg10[%c0_141, %c0_142, %c0_143], %181 {strides = array<i32>} : memref<1x32x24xbf16, #tpu.memory_space<vmem>>, vector<1x32x24xbf16>,
    return
  }
  func.func @transform_0(%arg0: i32) -> (i32, i32, i32) {
    %c0_i32 = arith.constant 0 : i32
    %c0_i32_0 = arith.constant 0 : i32
    %c0_i32_1 = arith.constant 0 : i32
    return %arg0, %c0_i32, %c0_i32_0 : i32, i32, i32
  }
  func.func @transform_1(%arg0: i32) -> (i32, i32) {
    %c0_i32 = arith.constant 0 : i32
    %c0_i32_0 = arith.constant 0 : i32
    %c0_i32_1 = arith.constant 0 : i32
    return %c0_i32, %c0_i32_0 : i32, i32
  }
  func.func @transform_2(%arg0: i32) -> (i32, i32) {
    %c0_i32 = arith.constant 0 : i32
    %c0_i32_0 = arith.constant 0 : i32
    %c0_i32_1 = arith.constant 0 : i32
    return %c0_i32, %c0_i32_0 : i32, i32
  }
  func.func @transform_3(%arg0: i32) -> (i32, i32) {
    %c0_i32 = arith.constant 0 : i32
    %c0_i32_0 = arith.constant 0 : i32
    %c0_i32_1 = arith.constant 0 : i32
    return %c0_i32, %c0_i32_0 : i32, i32
  }
  func.func @transform_4(%arg0: i32) -> (i32, i32) {
    %c0_i32 = arith.constant 0 : i32
    %c0_i32_0 = arith.constant 0 : i32
    %c0_i32_1 = arith.constant 0 : i32
    return %c0_i32, %c0_i32_0 : i32, i32
  }
  func.func @transform_5(%arg0: i32) -> (i32, i32) {
    %c0_i32 = arith.constant 0 : i32
    %c0_i32_0 = arith.constant 0 : i32
    %c0_i32_1 = arith.constant 0 : i32
    return %c0_i32, %c0_i32_0 : i32, i32
  }
  func.func @transform_6(%arg0: i32) -> (i32, i32) {
    %c0_i32 = arith.constant 0 : i32
    %c0_i32_0 = arith.constant 0 : i32
    %c0_i32_1 = arith.constant 0 : i32
    return %c0_i32, %c0_i32_0 : i32, i32
  }
  func.func @transform_7(%arg0: i32) -> (i32, i32) {
    %c0_i32 = arith.constant 0 : i32
    %c0_i32_0 = arith.constant 0 : i32
    %c0_i32_1 = arith.constant 0 : i32
    return %c0_i32, %c0_i32_0 : i32, i32
  }
  func.func @transform_8(%arg0: i32) -> (i32, i32) {
    %c0_i32 = arith.constant 0 : i32
    %c0_i32_0 = arith.constant 0 : i32
    %c0_i32_1 = arith.constant 0 : i32
    return %c0_i32, %c0_i32_0 : i32, i32
  }
  func.func @transform_9(%arg0: i32) -> (i32, i32, i32) {
    %c0_i32 = arith.constant 0 : i32
    %c0_i32_0 = arith.constant 0 : i32
    %c0_i32_1 = arith.constant 0 : i32
    return %arg0, %c0_i32, %c0_i32_0 : i32, i32, i32
  }
}

</mosaic_0001>

<bundles_post_ra>
// kernel: content_encoder_forward.5
= control target key start
LH: loop header
LB: loop body
LE: loop exit
PB: predicated region body
PF: predicated region fallthrough
CT: control target
= control target key end

     0   :  { %s2163_s12 = smov 0   ;;  %s2490_s0 = inlined_call_operand.vmem [shape: bf16[2,8,490], index: 0, kind: input, shape index: {}]   ;;  %s2491_s1 = inlined_call_operand.vmem [shape: bf16[8,392], index: 1, kind: input, shape index: {}]   ;;  %s2492_s2 = inlined_call_operand.vmem [shape: f32[8,1], index: 2, kind: input, shape index: {}]   ;;  %s2493_s3 = inlined_call_operand.vmem [shape: bf16[2,8,352], index: 3, kind: output, shape index: {}]  }
   0x1 LB: > { %s1871_s13 = sadd.s32 4294967295, %s2095_s12   ;;  %p1875_p0 = scmp.ge.s32.totalorder %s2095_s12, 1  ;;  %s2095_s12 = sphi %s2163_s12, %s13_s12  }
   0x2   : > { %p137_p1 = scmp.lt.s32.totalorder %s2095_s12, 3 }
   0x4   : > { %p138_p2 = pnand %p1875_p0, %p137_p1 }
   0x5   : > { %p161_p3 = scmp.lt.s32.totalorder (!%p138_p2), %s1871_s13, 1  ;;  %s2097_s18 = smov (!%p138_p2), 126   ;;  %vm175_vm0 = vcmask (!%p138_p2), 781312   ;;  %vm187_vm1 = vcmask (!%p138_p2), 1043456   ;;  %vm206_vm2 = vcmask (!%p138_p2), 1031168   ;;  %vm189_vm3 = vcmask (!%p138_p2), 1039360  }
   0x6   : > { %141 = sbr.rel (%p138_p2) target bundleno = 867 (0x363), region = 32  ;;  %s2098_s19 = smov (!%p138_p2), 127   ;;  %v2256_v21 = vld [vmem:[%s2491_s1] sm:$0xff] (!%p138_p2)  ;;  %vm223_vm4 = vcmask (!%p138_p2), 1022976   ;;  %vm240_vm5 = vcmask (!%p138_p2), 1014784   ;;  %v2129_v40 = vmov (!%p138_p2), 0  }
   0x7   : > { %s2099_s20 = smov (!%p138_p2), 125   ;;  %s2100_s21 = smov (!%p138_p2), 124   ;;  %v1880_v25 = vcombine.high (!%p138_p2), %v2256_v21, %v2256_v21  ;;  %2057 = vset.pattern.permute.xlu0 (!%p138_p2), %v2129_v40  ;;  %vm257_vm6 = vcmask (!%p138_p2), 1006592   ;;  %vm274_vm7 = vcmask (!%p138_p2), 998400   ;;  %vm291_vm8 = vcmask (!%p138_p2), 867328  }
   0x8   : > { %s2101_s22 = smov (!%p138_p2), 123   ;;  %s2102_s23 = smov (!%p138_p2), 122   ;;  %vm308_vm9 = vcmask (!%p138_p2), 859136   ;;  %vm325_vm10 = vcmask (!%p138_p2), 850944   ;;  %vm342_vm11 = vcmask (!%p138_p2), 842752   ;;  %vm359_vm12 = vcmask (!%p138_p2), 834560  }
   0x9   : > { %s2103_s24 = smov (!%p138_p2), 106   ;;  %s2104_s25 = smov (!%p138_p2), 105   ;;  %1658 = vmatprep.mubr.bf16.mxu1 (!%p138_p2), %v1880_v25  ;;  %1576 = vmatprep.mubr.bf16.mxu0 (!%p138_p2), %v1880_v25  ;;  %vm376_vm13 = vcmask (!%p138_p2), 826368   ;;  %vm393_vm14 = vcmask (!%p138_p2), 818176   ;;  %vm410_vm15 = vcmask (!%p138_p2), 687104  }
   0xa   : > { %s2105_s26 = smov (!%p138_p2), 104   ;;  %s2106_s27 = smov (!%p138_p2), 103  }
   0xb   : > { %s2107_s28 = smov (!%p138_p2), 102   ;;  %s2108_s29 = smov (!%p138_p2), 101  }
   0xc   : > { %s2109_s30 = smov (!%p138_p2), 100   ;;  %s2110_s4 = smov (!%p138_p2), 84  }
   0xd   : > { %s2501_s13 = smov (!%p161_p3, %s1871_s13), 1  ;;  %s2111_s5 = smov 83  }
   0xe   : > { %s1965_s14 = sshll.u32 %s2501_s13, 4  ;;  %s2112_s6 = smov 82  }
   0xf   : > { %s2177_s17 = scalar_lea.vmem %s2490_s0, %s1965_s14  ;;  %s2113_s7 = smov 81  }
  0x10   : > { %v2180_v0 = vld [vmem:[%s2177_s17] sm:$0xff]  ;;  %v196_v1 = vld [vmem:[%s2177_s17 + $0x8] sm:$0xf]  ;;  %s2114_s8 = smov 80   ;;  %s2115_s9 = smov 79  }
  0x11   : > { %199 = vrot.lane.b32.xlu1 %v2180_v0, %s2097_s18  ;;  %181 = vrot.lane.b32.xlu0 %v2180_v0, %s2098_s19  ;;  %v178_v2 = vld [vmem:[%s2177_s17 + $0x8] sm:$0xf]  ;;  %s2116_s10 = smov 78   ;;  %s2117_s11 = smov 62  }
  0x12   : > { %v213_v3 = vld [vmem:[%s2177_s17 + $0x8] sm:$0xf]  ;;  %s2118_s14 = smov 61   ;;  %s2119_s15 = smov 60  }
  0x13   : > { %v173_v4 = vld [vmem:[%s2177_s17 + $0x8] sm:$0xf]  ;;  %s2120_s16 = smov 59  }
  0x14   : > { %176 = vst.msk [vmem:[#allocation2 + $0x8] sm:$0xf] %vm175_vm0, %v173_v4  ;;  %v230_v5 = vld [vmem:[%s2177_s17 + $0x8] sm:$0xf] }
  0x15   : > { %201 = vrot.lane.b32.xlu1 %v196_v1, %s2097_s18  ;;  %183 = vrot.lane.b32.xlu0 %v178_v2, %s2098_s19  ;;  %v247_v6 = vld [vmem:[%s2177_s17 + $0x8] sm:$0xf]  ;;  %s2121_s18 = smov 58   ;;  %s2122_s19 = smov 57  }
  0x16   : > { %v264_v7 = vld [vmem:[%s2177_s17 + $0x8] sm:$0xf] }
  0x17   : > { %v281_v8 = vld [vmem:[%s2177_s17 + $0x8] sm:$0xf] }
  0x18   : > { %v298_v9 = vld [vmem:[%s2177_s17 + $0x8] sm:$0xf] }
  0x19   : > { %218 = vrot.lane.b32.xlu1 %v213_v3, %s2099_s20  ;;  %216 = vrot.lane.b32.xlu0 %v2180_v0, %s2099_s20  ;;  %v315_v10 = vld [vmem:[%s2177_s17 + $0x8] sm:$0xf]  ;;  %s2123_s20 = smov 56  }
  0x1a   : > { %v332_v11 = vld [vmem:[%s2177_s17 + $0x8] sm:$0xf] }
  0x1b   : > { %v349_v12 = vld [vmem:[%s2177_s17 + $0x8] sm:$0xf] }
  0x1c   : > { %v366_v13 = vld [vmem:[%s2177_s17 + $0x8] sm:$0xf] }
  0x1d   : > { %235 = vrot.lane.b32.xlu1 %v230_v5, %s2100_s21  ;;  %233 = vrot.lane.b32.xlu0 %v2180_v0, %s2100_s21  ;;  %v383_v14 = vld [vmem:[%s2177_s17 + $0x8] sm:$0xf] }
  0x1e   : > { %v2217_v15 = vld [vmem:[%s2177_s17 + $0x8] sm:$0xff] }
  0x21   : > { %252 = vrot.lane.b32.xlu1 %v247_v6, %s2101_s22  ;;  %250 = vrot.lane.b32.xlu0 %v2180_v0, %s2101_s22 }
  0x25   : > { %269 = vrot.lane.b32.xlu1 %v264_v7, %s2102_s23  ;;  %267 = vrot.lane.b32.xlu0 %v2180_v0, %s2102_s23 }
  0x29   : > { %286 = vrot.lane.b32.xlu1 %v281_v8, %s2103_s24  ;;  %284 = vrot.lane.b32.xlu0 %v2180_v0, %s2103_s24  ;;  %s2124_s24 = smov 40  }
  0x2d   : > { %303 = vrot.lane.b32.xlu1 %v298_v9, %s2104_s25  ;;  %301 = vrot.lane.b32.xlu0 %v2180_v0, %s2104_s25  ;;  %s2125_s25 = smov 39  }
  0x31   : > { %320 = vrot.lane.b32.xlu1 %v315_v10, %s2105_s26  ;;  %318 = vrot.lane.b32.xlu0 %v2180_v0, %s2105_s26  ;;  %s2126_s26 = smov 38  }
  0x35   : > { %337 = vrot.lane.b32.xlu1 %v332_v11, %s2106_s27  ;;  %335 = vrot.lane.b32.xlu0 %v2180_v0, %s2106_s27 }
  0x39   : > { %354 = vrot.lane.b32.xlu1 %v349_v12, %s2107_s28  ;;  %352 = vrot.lane.b32.xlu0 %v2180_v0, %s2107_s28 }
  0x3d   : > { %371 = vrot.lane.b32.xlu1 %v366_v13, %s2108_s29  ;;  %369 = vrot.lane.b32.xlu0 %v2180_v0, %s2108_s29  ;;  %s2127_s29 = smov 37  }
  0x41   : > { %388 = vrot.lane.b32.xlu1 %v383_v14, %s2109_s30  ;;  %386 = vrot.lane.b32.xlu0 %v2180_v0, %s2109_s30  ;;  %s2128_s30 = smov 36  }
  0x45   : > { %405 = vrot.lane.b32.xlu1 %v2217_v15, %s2110_s4  ;;  %403 = vrot.lane.b32.xlu0 %v2180_v0, %s2110_s4  ;;  %s2130_s4 = smov 35  }
  0x49   : > { %423 = vrot.lane.b32.xlu1 %v2217_v15, %s2111_s5  ;;  %421 = vrot.lane.b32.xlu0 %v2180_v0, %s2111_s5  ;;  %s2131_s5 = smov 34  }
  0x4d   : > { %441 = vrot.lane.b32.xlu1 %v2217_v15, %s2112_s6  ;;  %439 = vrot.lane.b32.xlu0 %v2180_v0, %s2112_s6  ;;  %s2132_s6 = smov 18  }
  0x51   : > { %459 = vrot.lane.b32.xlu1 %v2217_v15, %s2113_s7  ;;  %457 = vrot.lane.b32.xlu0 %v2180_v0, %s2113_s7  ;;  %s2133_s7 = smov 17  }
  0x55   : > { %477 = vrot.lane.b32.xlu1 %v2217_v15, %s2114_s8  ;;  %475 = vrot.lane.b32.xlu0 %v2180_v0, %s2114_s8  ;;  %s2134_s8 = smov 16  }
  0x59   : > { %495 = vrot.lane.b32.xlu1 %v2217_v15, %s2115_s9  ;;  %493 = vrot.lane.b32.xlu0 %v2180_v0, %s2115_s9  ;;  %s2135_s9 = smov 15  }
  0x5d   : > { %513 = vrot.lane.b32.xlu1 %v2217_v15, %s2116_s10  ;;  %511 = vrot.lane.b32.xlu0 %v2180_v0, %s2116_s10  ;;  %s2136_s10 = smov 14  }
  0x61   : > { %531 = vrot.lane.b32.xlu1 %v2217_v15, %s2117_s11  ;;  %529 = vrot.lane.b32.xlu0 %v2180_v0, %s2117_s11  ;;  %s2137_s11 = smov 13  }
  0x65   : > { %549 = vrot.lane.b32.xlu1 %v2217_v15, %s2118_s14  ;;  %547 = vrot.lane.b32.xlu0 %v2180_v0, %s2118_s14  ;;  %s2138_s14 = smov 12  }
  0x69   : > { %567 = vrot.lane.b32.xlu1 %v2217_v15, %s2119_s15  ;;  %565 = vrot.lane.b32.xlu0 %v2180_v0, %s2119_s15  ;;  %s2142_s15 = smov 118  }
  0x6d   : > { %585 = vrot.lane.b32.xlu1 %v2217_v15, %s2120_s16  ;;  %583 = vrot.lane.b32.xlu0 %v2180_v0, %s2120_s16 }
  0x71   : > { %603 = vrot.lane.b32.xlu1 %v2217_v15, %s2121_s18  ;;  %601 = vrot.lane.b32.xlu0 %v2180_v0, %s2121_s18 }
  0x75   : > { %621 = vrot.lane.b32.xlu1 %v2217_v15, %s2122_s19  ;;  %619 = vrot.lane.b32.xlu0 %v2180_v0, %s2122_s19 }
  0x79   : > { %639 = vrot.lane.b32.xlu1 %v2217_v15, %s2123_s20  ;;  %637 = vrot.lane.b32.xlu0 %v2180_v0, %s2123_s20  ;;  %s1996_s20 = smul.u32 12, %s2501_s13 }
  0x7d   : > { %657 = vrot.lane.b32.xlu1 %v2217_v15, %s2124_s24  ;;  %655 = vrot.lane.b32.xlu0 %v2180_v0, %s2124_s24 }
  0x81   : > { %675 = vrot.lane.b32.xlu1 %v2217_v15, %s2125_s25  ;;  %673 = vrot.lane.b32.xlu0 %v2180_v0, %s2125_s25 }
  0x83   : > { %v200_v16 = vpop.permute.xlu1 %199  ;;  %v182_v17 = vpop.permute.xlu0 %181 }
  0x84   : > { %v203_v18 = vrot.slane %v200_v16, 4  ;;  %v185_v22 = vrot.slane %v182_v17, 4 }
  0x85   : > { %693 = vrot.lane.b32.xlu1 %v2217_v15, %s2126_s26  ;;  %691 = vrot.lane.b32.xlu0 %v2180_v0, %s2126_s26  ;;  %s170_s26 = scalar_lea.vmem %s2493_s3, %s1996_s20 }
  0x87   : > { %v202_v19 = vpop.permute.xlu1 %201  ;;  %v184_v20 = vpop.permute.xlu0 %183 }
  0x88   : > { %v204_v23 = vrot.slane %v202_v19, 4  ;;  %211 = vst.msk [vmem:[#allocation2 + $0x20] sm:$0xf] %vm175_vm0, %v202_v19  ;;  %v186_v24 = vrot.slane %v184_v20, 4  ;;  %194 = vst.msk [vmem:[#allocation2 + $0x14] sm:$0xf] %vm175_vm0, %v184_v20 }
  0x89   : > { %711 = vrot.lane.b32.xlu1 %v2217_v15, %s2127_s29  ;;  %709 = vrot.lane.b32.xlu0 %v2180_v0, %s2127_s29 }
  0x8a   : > { %v205_v26 = vsel %vm187_vm1, %v203_v18, %v204_v23  ;;  %v188_v27 = vsel %vm187_vm1, %v185_v22, %v186_v24 }
  0x8b   : > { %v207_v28 = vsel %vm206_vm2, %v200_v16, %v205_v26  ;;  %v190_v29 = vsel %vm189_vm3, %v182_v17, %v188_v27  ;;  %v219_v30 = vpop.permute.xlu1 %218  ;;  %v217_v31 = vpop.permute.xlu0 %216  ;;  %vm428_vm2 = vcmask 678912   ;;  %vm446_vm3 = vcmask 670720  }
  0x8c   : > { %v221_v32 = vrot.slane %v219_v30, 4  ;;  %228 = vst.msk [vmem:[#allocation2 + $0x2c] sm:$0xf] %vm175_vm0, %v219_v30  ;;  %v220_v33 = vrot.slane %v217_v31, 4  ;;  %v1884_v34 = vcombine.high %v2180_v0, %v190_v29  ;;  %v1883_v35 = vcombine.low %v2180_v0, %v190_v29 }
  0x8d   : > { %729 = vrot.lane.b32.xlu1 %v2217_v15, %s2128_s30  ;;  %727 = vrot.lane.b32.xlu0 %v2180_v0, %s2128_s30 }
  0x8e   : > { %v222_v36 = vsel %vm187_vm1, %v220_v33, %v221_v32  ;;  %1544 = vmatprep.subr.bf16.mxu0 %v1884_v34 }
  0x8f   : > { %v224_v37 = vsel %vm223_vm4, %v217_v31, %v222_v36  ;;  %v236_v38 = vpop.permute.xlu1 %235  ;;  %v234_v39 = vpop.permute.xlu0 %233  ;;  %1545 = vmatpush1.bf16.msra.mxu0 %v1883_v35  ;;  %vm464_vm4 = vcmask 662528  }
  0x90   : > { %v238_v41 = vrot.slane %v236_v38, 4  ;;  %245 = vst.msk [vmem:[#allocation2 + $0x38] sm:$0xf] %vm175_vm0, %v236_v38  ;;  %v237_v42 = vrot.slane %v234_v39, 4  ;;  %v1887_v43 = vcombine.high %v207_v28, %v224_v37  ;;  %v1886_v44 = vcombine.low %v207_v28, %v224_v37 }
  0x91   : > { %747 = vrot.lane.b32.xlu1 %v2217_v15, %s2130_s4  ;;  %745 = vrot.lane.b32.xlu0 %v2180_v0, %s2130_s4 }
  0x92   : > { %v239_v45 = vsel %vm187_vm1, %v237_v42, %v238_v41  ;;  %1546 = vmatprep.subr.bf16.mxu0 %v1887_v43  ;;  %v904_v42 = vld [vmem:[%s2177_s17 + $0xc] sm:$0xf]  ;;  %v2316_v43 = vld [vmem:[%s2177_s17 + $0x4] sm:$0xff] }
  0x93   : > { %v241_v46 = vsel %vm240_vm5, %v234_v39, %v239_v45  ;;  %v253_v47 = vpop.permute.xlu1 %252  ;;  %v251_v48 = vpop.permute.xlu0 %250  ;;  %1547 = vmatpush1.bf16.msra.mxu0 %v1886_v44 }
  0x94   : > { %v255_v49 = vrot.slane %v253_v47, 4  ;;  %262 = vst.msk [vmem:[#allocation2 + $0x44] sm:$0xf] %vm175_vm0, %v253_v47  ;;  %v254_v50 = vrot.slane %v251_v48, 4 }
  0x95   : > { %765 = vrot.lane.b32.xlu1 %v2217_v15, %s2131_s5  ;;  %763 = vrot.lane.b32.xlu0 %v2180_v0, %s2131_s5 }
  0x96   : > { %v256_v51 = vsel %vm187_vm1, %v254_v50, %v255_v49 }
  0x97   : > { %v258_v52 = vsel %vm257_vm6, %v251_v48, %v256_v51  ;;  %v270_v53 = vpop.permute.xlu1 %269  ;;  %v268_v54 = vpop.permute.xlu0 %267 }
  0x98   : > { %v272_v55 = vrot.slane %v270_v53, 4  ;;  %279 = vst.msk [vmem:[#allocation2 + $0x50] sm:$0xf] %vm175_vm0, %v270_v53  ;;  %v271_v56 = vrot.slane %v268_v54, 4  ;;  %v1890_v57 = vcombine.high %v241_v46, %v258_v52  ;;  %v1889_v58 = vcombine.low %v241_v46, %v258_v52 }
  0x99   : > { %783 = vrot.lane.b32.xlu1 %v2217_v15, %s2132_s6  ;;  %781 = vrot.lane.b32.xlu0 %v2180_v0, %s2132_s6 }
  0x9a   : > { %v273_v59 = vsel %vm187_vm1, %v271_v56, %v272_v55  ;;  %1548 = vmatprep.subr.bf16.mxu0 %v1890_v57 }
  0x9b   : > { %v275_v60 = vsel %vm274_vm7, %v268_v54, %v273_v59  ;;  %v287_v61 = vpop.permute.xlu1 %286  ;;  %v285_v62 = vpop.permute.xlu0 %284  ;;  %1549 = vmatpush1.bf16.msra.mxu0 %v1889_v58  ;;  %v936_v58 = vld [vmem:[%s2177_s17 + $0xc] sm:$0xf] }
  0x9c   : > { %v289_v63 = vrot.slane %v287_v61, 4  ;;  %296 = vst.msk [vmem:[#allocation2 + $0x5c] sm:$0xf] %vm175_vm0, %v287_v61  ;;  %v288_v1 = vrot.slane %v285_v62, 4 }
  0x9d   : > { %801 = vrot.lane.b32.xlu1 %v2217_v15, %s2133_s7  ;;  %799 = vrot.lane.b32.xlu0 %v2180_v0, %s2133_s7 }
  0x9e   : > { %v290_v2 = vsel %vm187_vm1, %v288_v1, %v289_v63 }
  0x9f   : > { %v292_v3 = vsel %vm291_vm8, %v285_v62, %v290_v2  ;;  %v304_v4 = vpop.permute.xlu1 %303  ;;  %v302_v5 = vpop.permute.xlu0 %301  ;;  %vm482_vm8 = vcmask 654336  }
  0xa0   : > { %v306_v6 = vrot.slane %v304_v4, 4  ;;  %313 = vst.msk [vmem:[#allocation2 + $0x68] sm:$0xf] %vm175_vm0, %v304_v4  ;;  %v305_v7 = vrot.slane %v302_v5, 4  ;;  %v1893_v8 = vcombine.high %v275_v60, %v292_v3  ;;  %v1892_v9 = vcombine.low %v275_v60, %v292_v3  ;;  %v952_v3 = vld [vmem:[%s2177_s17 + $0xc] sm:$0xf] }
  0xa1   : > { %819 = vrot.lane.b32.xlu1 %v2217_v15, %s2134_s8  ;;  %817 = vrot.lane.b32.xlu0 %v2180_v0, %s2134_s8 }
  0xa2   : > { %v307_v10 = vsel %vm187_vm1, %v305_v7, %v306_v6  ;;  %1550 = vmatprep.subr.bf16.mxu0 %v1893_v8 }
  0xa3   : > { %v309_v11 = vsel %vm308_vm9, %v302_v5, %v307_v10  ;;  %v321_v12 = vpop.permute.xlu1 %320  ;;  %v319_v13 = vpop.permute.xlu0 %318  ;;  %1551 = vmatpush1.bf16.msra.mxu0 %v1892_v9  ;;  %vm500_vm9 = vcmask 646144  }
  0xa4   : > { %v323_v14 = vrot.slane %v321_v12, 4  ;;  %330 = vst.msk [vmem:[#allocation2 + $0x74] sm:$0xf] %vm175_vm0, %v321_v12  ;;  %v322_v16 = vrot.slane %v319_v13, 4 }
  0xa5   : > { %837 = vrot.lane.b32.xlu1 %v2217_v15, %s2135_s9  ;;  %835 = vrot.lane.b32.xlu0 %v2180_v0, %s2135_s9 }
  0xa6   : > { %v324_v17 = vsel %vm187_vm1, %v322_v16, %v323_v14 }
  0xa7   : > { %v326_v18 = vsel %vm325_vm10, %v319_v13, %v324_v17  ;;  %v338_v19 = vpop.permute.xlu1 %337  ;;  %v336_v20 = vpop.permute.xlu0 %335  ;;  %v969_v13 = vld [vmem:[%s2177_s17 + $0xc] sm:$0xf]  ;;  %vm518_vm10 = vcmask 637952  }
  0xa8   : > { %v340_v22 = vrot.slane %v338_v19, 4  ;;  %347 = vst.msk [vmem:[#allocation2 + $0x80] sm:$0xf] %vm175_vm0, %v338_v19  ;;  %v339_v23 = vrot.slane %v336_v20, 4  ;;  %v1896_v24 = vcombine.high %v309_v11, %v326_v18  ;;  %v1895_v25 = vcombine.low %v309_v11, %v326_v18 }
  0xa9   : > { %855 = vrot.lane.b32.xlu1 %v2217_v15, %s2136_s10  ;;  %853 = vrot.lane.b32.xlu0 %v2180_v0, %s2136_s10 }
  0xaa   : > { %v341_v26 = vsel %vm187_vm1, %v339_v23, %v340_v22  ;;  %1552 = vmatprep.subr.bf16.mxu0 %v1896_v24  ;;  %v986_v23 = vld [vmem:[%s2177_s17 + $0xc] sm:$0xf] }
  0xab   : > { %v343_v27 = vsel %vm342_vm11, %v336_v20, %v341_v26  ;;  %v355_v28 = vpop.permute.xlu1 %354  ;;  %v353_v29 = vpop.permute.xlu0 %352  ;;  %1553 = vmatpush1.bf16.msra.mxu0 %v1895_v25  ;;  %vm536_vm11 = vcmask 506880  }
  0xac   : > { %v357_v30 = vrot.slane %v355_v28, 4  ;;  %364 = vst.msk [vmem:[#allocation2 + $0x8c] sm:$0xf] %vm175_vm0, %v355_v28  ;;  %v356_v31 = vrot.slane %v353_v29, 4 }
  0xad   : > { %873 = vrot.lane.b32.xlu1 %v2217_v15, %s2137_s11  ;;  %871 = vrot.lane.b32.xlu0 %v2180_v0, %s2137_s11 }
  0xae   : > { %v358_v32 = vsel %vm187_vm1, %v356_v31, %v357_v30 }
  0xaf   : > { %v360_v33 = vsel %vm359_vm12, %v353_v29, %v358_v32  ;;  %v372_v34 = vpop.permute.xlu1 %371  ;;  %v370_v35 = vpop.permute.xlu0 %369  ;;  %vm554_vm12 = vcmask 498688  }
  0xb0   : > { %v374_v36 = vrot.slane %v372_v34, 4  ;;  %381 = vst.msk [vmem:[#allocation2 + $0x98] sm:$0xf] %vm175_vm0, %v372_v34  ;;  %v373_v37 = vrot.slane %v370_v35, 4  ;;  %v1899_v38 = vcombine.high %v343_v27, %v360_v33  ;;  %v1898_v39 = vcombine.low %v343_v27, %v360_v33  ;;  %v1003_v33 = vld [vmem:[%s2177_s17 + $0xc] sm:$0xf] }
  0xb1   : > { %891 = vrot.lane.b32.xlu1 %v2217_v15, %s2138_s14  ;;  %889 = vrot.lane.b32.xlu0 %v2180_v0, %s2138_s14  ;;  %v920_v15 = vld [vmem:[%s2177_s17 + $0xc] sm:$0xf] }
  0xb2   : > { %v375_v41 = vsel %vm187_vm1, %v373_v37, %v374_v36  ;;  %1554 = vmatprep.subr.bf16.mxu0 %v1899_v38 }
  0xb3   : > { %v377_v44 = vsel %vm376_vm13, %v370_v35, %v375_v41  ;;  %v389_v45 = vpop.permute.xlu1 %388  ;;  %v387_v46 = vpop.permute.xlu0 %386  ;;  %1555 = vmatpush1.bf16.msra.mxu0 %v1898_v39  ;;  %vm572_vm13 = vcmask 490496  }
  0xb4   : > { %v391_v47 = vrot.slane %v389_v45, 4  ;;  %398 = vst.msk [vmem:[#allocation2 + $0xa4] sm:$0xf] %vm175_vm0, %v389_v45  ;;  %v390_v48 = vrot.slane %v387_v46, 4 }
  0xb5   : > { %909 = vrot.lane.b32.xlu1 %v904_v42, %s2100_s21  ;;  %907 = vrot.lane.b32.xlu0 %v2316_v43, %s2100_s21  ;;  %s2139_s21 = smov 121  }
  0xb6   : > { %v392_v0 = vsel %vm187_vm1, %v390_v48, %v391_v47  ;;  %v2059_v48 = vld [vmem:[#allocation2 + $0x8] ss:$12 sps:$4 sm:$0xff]  }
  0xb7   : > { %v394_v49 = vsel %vm393_vm14, %v387_v46, %v392_v0  ;;  %v406_v50 = vpop.permute.xlu1 %405  ;;  %v404_v51 = vpop.permute.xlu0 %403  ;;  %vm590_vm14 = vcmask 482304  }
  0xb8   : > { %v408_v52 = vrot.slane %v406_v50, 4  ;;  %v407_v53 = vrot.slane %v404_v51, 4  ;;  %v1902_v54 = vcombine.high %v377_v44, %v394_v49  ;;  %v1901_v55 = vcombine.low %v377_v44, %v394_v49  ;;  %v1119_v44 = vld [vmem:[%s2492_s2] sm:$0xff] }
  0xb9   : > { %925 = vrot.lane.b32.xlu1 %v920_v15, %s2101_s22  ;;  %923 = vrot.lane.b32.xlu0 %v2316_v43, %s2101_s22  ;;  %s2140_s22 = smov 120  }
  0xba   : > { %v412_v56 = vsel %vm410_vm15, %v406_v50, %v408_v52  ;;  %v409_v57 = vsel %vm187_vm1, %v407_v53, %v408_v52  ;;  %1556 = vmatprep.subr.bf16.mxu0 %v1902_v54 }
  0xbb   : > { %416 = vst.msk [vmem:[#allocation2 + $0xb0] sm:$0xf] %vm175_vm0, %v412_v56  ;;  %v411_v59 = vsel %vm410_vm15, %v404_v51, %v409_v57  ;;  %v424_v60 = vpop.permute.xlu1 %423  ;;  %v422_v61 = vpop.permute.xlu0 %421  ;;  %1557 = vmatpush1.bf16.msra.mxu0 %v1901_v55  ;;  %vm608_vm15 = vcmask 474112  }
  0xbc   : > { %v426_v62 = vrot.slane %v424_v60, 4  ;;  %v425_v63 = vrot.slane %v422_v61, 4 }
  0xbd   : > { %941 = vrot.lane.b32.xlu1 %v936_v58, %s2102_s23  ;;  %939 = vrot.lane.b32.xlu0 %v2316_v43, %s2102_s23  ;;  %s2141_s23 = smov 119  }
  0xbe   : > { %v430_v1 = vsel %vm428_vm2, %v424_v60, %v426_v62  ;;  %v427_v2 = vsel %vm187_vm1, %v425_v63, %v426_v62  ;;  %v2061_v63 = vld [vmem:[#allocation2 + $0x20] ss:$12 sps:$4 sm:$0xff]  }
  0xbf   : > { %434 = vst.msk [vmem:[#allocation2 + $0xbc] sm:$0xf] %vm175_vm0, %v430_v1  ;;  %v429_v4 = vsel %vm428_vm2, %v422_v61, %v427_v2  ;;  %v442_v5 = vpop.permute.xlu1 %441  ;;  %v440_v6 = vpop.permute.xlu0 %439  ;;  %vm626_vm2 = vcmask 465920  }
  0xc0   : > { %v444_v7 = vrot.slane %v442_v5, 4  ;;  %v443_v8 = vrot.slane %v440_v6, 4  ;;  %v1905_v9 = vcombine.high %v411_v59, %v429_v4  ;;  %v1904_v10 = vcombine.low %v411_v59, %v429_v4 }
  0xc1   : > { %957 = vrot.lane.b32.xlu1 %v952_v3, %s2139_s21  ;;  %955 = vrot.lane.b32.xlu0 %v2316_v43, %s2139_s21 }
  0xc2   : > { %v448_v11 = vsel %vm446_vm3, %v442_v5, %v444_v7  ;;  %v445_v12 = vsel %vm187_vm1, %v443_v8, %v444_v7  ;;  %1558 = vmatprep.subr.bf16.mxu0 %v1905_v9 }
  0xc3   : > { %452 = vst.msk [vmem:[#allocation2 + $0xc8] sm:$0xf] %vm175_vm0, %v448_v11  ;;  %v447_v14 = vsel %vm446_vm3, %v440_v6, %v445_v12  ;;  %v460_v16 = vpop.permute.xlu1 %459  ;;  %v458_v17 = vpop.permute.xlu0 %457  ;;  %1559 = vmatpush1.bf16.msra.mxu0 %v1904_v10  ;;  %vm644_vm3 = vcmask 457728  }
  0xc4   : > { %v462_v18 = vrot.slane %v460_v16, 4  ;;  %v461_v19 = vrot.slane %v458_v17, 4 }
  0xc5   : > { %974 = vrot.lane.b32.xlu1 %v969_v13, %s2140_s22  ;;  %972 = vrot.lane.b32.xlu0 %v2316_v43, %s2140_s22 }
  0xc6   : > { %v466_v20 = vsel %vm464_vm4, %v460_v16, %v462_v18  ;;  %v463_v22 = vsel %vm187_vm1, %v461_v19, %v462_v18  ;;  %v2063_v19 = vld [vmem:[#allocation2 + $0x38] ss:$12 sps:$4 sm:$0xff]  }
  0xc7   : > { %470 = vst.msk [vmem:[#allocation2 + $0xd4] sm:$0xf] %vm175_vm0, %v466_v20  ;;  %v465_v24 = vsel %vm464_vm4, %v458_v17, %v463_v22  ;;  %v478_v25 = vpop.permute.xlu1 %477  ;;  %v476_v26 = vpop.permute.xlu0 %475  ;;  %vm662_vm4 = vcmask 326656  }
  0xc8   : > { %v480_v27 = vrot.slane %v478_v25, 4  ;;  %v479_v28 = vrot.slane %v476_v26, 4  ;;  %v1908_v29 = vcombine.high %v447_v14, %v465_v24  ;;  %v1907_v30 = vcombine.low %v447_v14, %v465_v24 }
  0xc9   : > { %991 = vrot.lane.b32.xlu1 %v986_v23, %s2141_s23  ;;  %989 = vrot.lane.b32.xlu0 %v2316_v43, %s2141_s23 }
  0xca   : > { %v484_v31 = vsel %vm482_vm8, %v478_v25, %v480_v27  ;;  %v481_v32 = vsel %vm187_vm1, %v479_v28, %v480_v27  ;;  %1560 = vmatprep.subr.bf16.mxu0 %v1908_v29 }
  0xcb   : > { %488 = vst.msk [vmem:[#allocation2 + $0xe0] sm:$0xf] %vm175_vm0, %v484_v31  ;;  %v483_v34 = vsel %vm482_vm8, %v476_v26, %v481_v32  ;;  %v496_v35 = vpop.permute.xlu1 %495  ;;  %v494_v36 = vpop.permute.xlu0 %493  ;;  %1561 = vmatpush1.bf16.msra.mxu0 %v1907_v30  ;;  %vm680_vm8 = vcmask 318464  }
  0xcc   : > { %v498_v37 = vrot.slane %v496_v35, 4  ;;  %v497_v38 = vrot.slane %v494_v36, 4 }
  0xcd   : > { %1008 = vrot.lane.b32.xlu1 %v1003_v33, %s2142_s15  ;;  %1006 = vrot.lane.b32.xlu0 %v2316_v43, %s2142_s15 }
  0xce   : > { %v502_v39 = vsel %vm500_vm9, %v496_v35, %v498_v37  ;;  %v499_v41 = vsel %vm187_vm1, %v497_v38, %v498_v37  ;;  %v2058_v42 = vld [vmem:[#allocation2 + $0xc8] ss:$12 sps:$4 sm:$0xff]   ;;  %v2065_v38 = vld [vmem:[#allocation2 + $0x50] ss:$12 sps:$4 sm:$0xff]  }
  0xcf   : > { %506 = vst.msk [vmem:[#allocation2 + $0xec] sm:$0xf] %vm175_vm0, %v502_v39  ;;  %v501_v45 = vsel %vm500_vm9, %v494_v36, %v499_v41  ;;  %v514_v46 = vpop.permute.xlu1 %513  ;;  %v512_v47 = vpop.permute.xlu0 %511  ;;  %1968 = vmatprep.subr.bf16.mxu1 %v2058_v42  ;;  %vm698_vm9 = vcmask 310272  }
  0xd0   : > { %v516_v0 = vrot.slane %v514_v46, 4  ;;  %v515_v15 = vrot.slane %v512_v47, 4  ;;  %v1911_v49 = vcombine.high %v483_v34, %v501_v45  ;;  %v1910_v43 = vcombine.low %v483_v34, %v501_v45  ;;  %1969 = vmatpush3.bf16.msra.mxu1 %v2059_v48 }
  0xd1   : > { %1122 = vperm.xlu0 %2057, %v1119_v44  }
  0xd2   : > { %v520_v50 = vsel %vm518_vm10, %v514_v46, %v516_v0  ;;  %v517_v51 = vsel %vm187_vm1, %v515_v15, %v516_v0  ;;  %1562 = vmatprep.subr.bf16.mxu0 %v1911_v49 }
  0xd3   : > { %524 = vst.msk [vmem:[#allocation2 + $0xf8] sm:$0xf] %vm175_vm0, %v520_v50  ;;  %v519_v52 = vsel %vm518_vm10, %v512_v47, %v517_v51  ;;  %v532_v53 = vpop.permute.xlu1 %531  ;;  %v530_v54 = vpop.permute.xlu0 %529  ;;  %1563 = vmatpush1.bf16.msra.mxu0 %v1910_v43  ;;  %vm716_vm10 = vcmask 302080  }
  0xd4   : > { %v534_v55 = vrot.slane %v532_v53, 4  ;;  %v533_v56 = vrot.slane %v530_v54, 4 }
  0xd6   : > { %v538_v57 = vsel %vm536_vm11, %v532_v53, %v534_v55  ;;  %v535_v58 = vsel %vm187_vm1, %v533_v56, %v534_v55  ;;  %v2060_v59 = vld [vmem:[#allocation2 + $0xe0] ss:$12 sps:$4 sm:$0xff]   ;;  %v2067_v55 = vld [vmem:[#allocation2 + $0x68] ss:$12 sps:$4 sm:$0xff]  }
  0xd7   : > { %542 = vst.msk [vmem:[#allocation2 + $0x104] sm:$0xf] %vm175_vm0, %v538_v57  ;;  %v537_v60 = vsel %vm536_vm11, %v530_v54, %v535_v58  ;;  %v550_v61 = vpop.permute.xlu1 %549  ;;  %v548_v62 = vpop.permute.xlu0 %547  ;;  %1970 = vmatprep.subr.bf16.mxu1 %v2060_v59  ;;  %vm734_vm11 = vcmask 293888  }
  0xd8   : > { %v552_v1 = vrot.slane %v550_v61, 4  ;;  %v551_v2 = vrot.slane %v548_v62, 4  ;;  %v1914_v3 = vcombine.high %v519_v52, %v537_v60  ;;  %v1913_v4 = vcombine.low %v519_v52, %v537_v60  ;;  %1971 = vmatpush3.bf16.msra.mxu1 %v2061_v63 }
  0xda   : > { %v556_v5 = vsel %vm554_vm12, %v550_v61, %v552_v1  ;;  %v553_v6 = vsel %vm187_vm1, %v551_v2, %v552_v1  ;;  %1564 = vmatprep.subr.bf16.mxu0 %v1914_v3 }
  0xdb   : > { %560 = vst.msk [vmem:[#allocation2 + $0x110] sm:$0xf] %vm175_vm0, %v556_v5  ;;  %v555_v7 = vsel %vm554_vm12, %v548_v62, %v553_v6  ;;  %v568_v8 = vpop.permute.xlu1 %567  ;;  %v566_v9 = vpop.permute.xlu0 %565  ;;  %1565 = vmatpush1.bf16.msra.mxu0 %v1913_v4  ;;  %vm752_vm12 = vcmask 285696  }
  0xdc   : > { %v570_v10 = vrot.slane %v568_v8, 4  ;;  %v569_v11 = vrot.slane %v566_v9, 4 }
  0xde   : > { %v574_v12 = vsel %vm572_vm13, %v568_v8, %v570_v10  ;;  %v571_v13 = vsel %vm187_vm1, %v569_v11, %v570_v10  ;;  %v2062_v14 = vld [vmem:[#allocation2 + $0xf8] ss:$12 sps:$4 sm:$0xff]   ;;  %v2069_v10 = vld [vmem:[#allocation2 + $0x80] ss:$12 sps:$4 sm:$0xff]  }
  0xdf   : > { %578 = vst.msk [vmem:[#allocation2 + $0x11c] sm:$0xf] %vm175_vm0, %v574_v12  ;;  %v573_v16 = vsel %vm572_vm13, %v566_v9, %v571_v13  ;;  %v586_v17 = vpop.permute.xlu1 %585  ;;  %v584_v18 = vpop.permute.xlu0 %583  ;;  %1972 = vmatprep.subr.bf16.mxu1 %v2062_v14  ;;  %vm1530_vm13 = vcmask 64512  }
  0xe0   : > { %v588_v20 = vrot.slane %v586_v17, 4  ;;  %v587_v22 = vrot.slane %v584_v18, 4  ;;  %v1917_v23 = vcombine.high %v555_v7, %v573_v16  ;;  %v1916_v24 = vcombine.low %v555_v7, %v573_v16  ;;  %1973 = vmatpush3.bf16.msra.mxu1 %v2063_v19 }
  0xe2   : > { %v592_v25 = vsel %vm590_vm14, %v586_v17, %v588_v20  ;;  %v589_v26 = vsel %vm187_vm1, %v587_v22, %v588_v20  ;;  %1566 = vmatprep.subr.bf16.mxu0 %v1917_v23 }
  0xe3   : > { %596 = vst.msk [vmem:[#allocation2 + $0x128] sm:$0xf] %vm175_vm0, %v592_v25  ;;  %v591_v27 = vsel %vm590_vm14, %v584_v18, %v589_v26  ;;  %v604_v28 = vpop.permute.xlu1 %603  ;;  %v602_v29 = vpop.permute.xlu0 %601  ;;  %1567 = vmatpush1.bf16.msra.mxu0 %v1916_v24  ;;  %vm770_vm14 = vcmask 277504  }
  0xe4   : > { %v606_v30 = vrot.slane %v604_v28, 4  ;;  %v605_v31 = vrot.slane %v602_v29, 4 }
  0xe6   : > { %v610_v32 = vsel %vm608_vm15, %v604_v28, %v606_v30  ;;  %v607_v33 = vsel %vm187_vm1, %v605_v31, %v606_v30  ;;  %v2064_v34 = vld [vmem:[#allocation2 + $0x110] ss:$12 sps:$4 sm:$0xff]   ;;  %v2071_v30 = vld [vmem:[#allocation2 + $0x98] ss:$12 sps:$4 sm:$0xff]  }
  0xe7   : > { %614 = vst.msk [vmem:[#allocation2 + $0x134] sm:$0xf] %vm175_vm0, %v610_v32  ;;  %v609_v35 = vsel %vm608_vm15, %v602_v29, %v607_v33  ;;  %v622_v36 = vpop.permute.xlu1 %621  ;;  %v620_v37 = vpop.permute.xlu0 %619  ;;  %1974 = vmatprep.subr.bf16.mxu1 %v2064_v34  ;;  %vm788_vm15 = vcmask 146432  }
  0xe8   : > { %v624_v39 = vrot.slane %v622_v36, 4  ;;  %v623_v41 = vrot.slane %v620_v37, 4  ;;  %v1920_v42 = vcombine.high %v591_v27, %v609_v35  ;;  %v1919_v44 = vcombine.low %v591_v27, %v609_v35  ;;  %1975 = vmatpush3.bf16.msra.mxu1 %v2065_v38  ;;  %v2381_v35 = vld [vmem:[%s2491_s1 + $0x8] sm:$0xff] }
  0xe9   : > { %v1879_v38 = vcombine.low %v2256_v21, %v2256_v21 }
  0xea   : > { %v628_v45 = vsel %vm626_vm2, %v622_v36, %v624_v39  ;;  %v625_v46 = vsel %vm187_vm1, %v623_v41, %v624_v39  ;;  %1568 = vmatprep.subr.bf16.mxu0 %v1920_v42 }
  0xeb   : > { %632 = vst.msk [vmem:[#allocation2 + $0x140] sm:$0xf] %vm175_vm0, %v628_v45  ;;  %v627_v47 = vsel %vm626_vm2, %v620_v37, %v625_v46  ;;  %v640_v48 = vpop.permute.xlu1 %639  ;;  %v638_v0 = vpop.permute.xlu0 %637  ;;  %1569 = vmatpush1.bf16.msra.mxu0 %v1919_v44  ;;  %v1882_v44 = vcombine.high %v2381_v35, %v2381_v35  ;;  %vm806_vm2 = vcmask 138240  }
  0xec   : > { %v642_v15 = vrot.slane %v640_v48, 4  ;;  %v641_v49 = vrot.slane %v638_v0, 4 }
  0xee   : > { %v646_v43 = vsel %vm644_vm3, %v640_v48, %v642_v15  ;;  %v643_v50 = vsel %vm187_vm1, %v641_v49, %v642_v15  ;;  %v2066_v51 = vld [vmem:[#allocation2 + $0x128] ss:$12 sps:$4 sm:$0xff]  }
  0xef   : > { %650 = vst.msk [vmem:[#allocation2 + $0x14c] sm:$0xf] %vm175_vm0, %v646_v43  ;;  %v645_v52 = vsel %vm644_vm3, %v638_v0, %v643_v50  ;;  %v658_v53 = vpop.permute.xlu1 %657  ;;  %v656_v54 = vpop.permute.xlu0 %655  ;;  %1976 = vmatprep.subr.bf16.mxu1 %v2066_v51  ;;  %v2073_v43 = vld [vmem:[#allocation2 + $0xb0] ss:$12 sps:$4 sm:$0xff]   ;;  %vm824_vm3 = vcmask 130048  }
  0xf0   : > { %v660_v56 = vrot.slane %v658_v53, 4  ;;  %v659_v57 = vrot.slane %v656_v54, 4  ;;  %v1923_v58 = vcombine.high %v627_v47, %v645_v52  ;;  %v1922_v59 = vcombine.low %v627_v47, %v645_v52  ;;  %1977 = vmatpush3.bf16.msra.mxu1 %v2067_v55 }
  0xf2   : > { %v664_v60 = vsel %vm662_vm4, %v658_v53, %v660_v56  ;;  %v661_v61 = vsel %vm187_vm1, %v659_v57, %v660_v56  ;;  %1570 = vmatprep.subr.bf16.mxu0 %v1923_v58 }
  0xf3   : > { %668 = vst.msk [vmem:[#allocation2 + $0x158] sm:$0xf] %vm175_vm0, %v664_v60  ;;  %v663_v62 = vsel %vm662_vm4, %v656_v54, %v661_v61  ;;  %v676_v63 = vpop.permute.xlu1 %675  ;;  %v674_v1 = vpop.permute.xlu0 %673  ;;  %1571 = vmatpush1.bf16.msra.mxu0 %v1922_v59  ;;  %vm842_vm4 = vcmask 121856  }
  0xf4   : > { %v678_v2 = vrot.slane %v676_v63, 4  ;;  %v677_v3 = vrot.slane %v674_v1, 4 }
  0xf6   : > { %v682_v4 = vsel %vm680_vm8, %v676_v63, %v678_v2  ;;  %v679_v5 = vsel %vm187_vm1, %v677_v3, %v678_v2  ;;  %v2068_v6 = vld [vmem:[#allocation2 + $0x140] ss:$12 sps:$4 sm:$0xff]  }
  0xf7   : > { %686 = vst.msk [vmem:[#allocation2 + $0x164] sm:$0xf] %vm175_vm0, %v682_v4  ;;  %v681_v7 = vsel %vm680_vm8, %v674_v1, %v679_v5  ;;  %v694_v8 = vpop.permute.xlu1 %693  ;;  %v692_v9 = vpop.permute.xlu0 %691  ;;  %1978 = vmatprep.subr.bf16.mxu1 %v2068_v6  ;;  %vm860_vm8 = vcmask 113664  }
  0xf8   : > { %v696_v11 = vrot.slane %v694_v8, 4  ;;  %v695_v12 = vrot.slane %v692_v9, 4  ;;  %v1926_v13 = vcombine.high %v663_v62, %v681_v7  ;;  %v1925_v14 = vcombine.low %v663_v62, %v681_v7  ;;  %1979 = vmatpush3.bf16.msra.mxu1 %v2069_v10 }
  0xfa   : > { %v700_v16 = vsel %vm698_vm9, %v694_v8, %v696_v11  ;;  %v697_v17 = vsel %vm187_vm1, %v695_v12, %v696_v11  ;;  %1572 = vmatprep.subr.bf16.mxu0 %v1926_v13 }
  0xfb   : > { %704 = vst.msk [vmem:[#allocation2 + $0x170] sm:$0xf] %vm175_vm0, %v700_v16  ;;  %v699_v18 = vsel %vm698_vm9, %v692_v9, %v697_v17  ;;  %v712_v19 = vpop.permute.xlu1 %711  ;;  %v710_v20 = vpop.permute.xlu0 %709  ;;  %1573 = vmatpush1.bf16.msra.mxu0 %v1925_v14  ;;  %vm878_vm9 = vcmask 105472  }
  0xfc   : > { %v714_v22 = vrot.slane %v712_v19, 4  ;;  %v713_v23 = vrot.slane %v710_v20, 4 }
  0xfe   : > { %v718_v24 = vsel %vm716_vm10, %v712_v19, %v714_v22  ;;  %v715_v25 = vsel %vm187_vm1, %v713_v23, %v714_v22  ;;  %v2070_v26 = vld [vmem:[#allocation2 + $0x158] ss:$12 sps:$4 sm:$0xff]  }
  0xff   : > { %722 = vst.msk [vmem:[#allocation2 + $0x17c] sm:$0xf] %vm175_vm0, %v718_v24  ;;  %v717_v27 = vsel %vm716_vm10, %v710_v20, %v715_v25  ;;  %v730_v28 = vpop.permute.xlu1 %729  ;;  %v728_v29 = vpop.permute.xlu0 %727  ;;  %1980 = vmatprep.subr.bf16.mxu1 %v2070_v26  ;;  %vm896_vm10 = vcmask 97280  }
 0x100   : > { %v732_v31 = vrot.slane %v730_v28, 4  ;;  %v731_v32 = vrot.slane %v728_v29, 4  ;;  %v1929_v33 = vcombine.high %v699_v18, %v717_v27  ;;  %v1928_v34 = vcombine.low %v699_v18, %v717_v27  ;;  %1981 = vmatpush3.bf16.msra.mxu1 %v2071_v30 }
 0x102   : > { %v736_v36 = vsel %vm734_vm11, %v730_v28, %v732_v31  ;;  %v733_v37 = vsel %vm187_vm1, %v731_v32, %v732_v31  ;;  %1574 = vmatprep.subr.bf16.mxu0 %v1929_v33 }
 0x103   : > { %740 = vst.msk [vmem:[#allocation2 + $0x188] sm:$0xf] %vm175_vm0, %v736_v36  ;;  %v735_v39 = vsel %vm734_vm11, %v728_v29, %v733_v37  ;;  %v748_v41 = vpop.permute.xlu1 %747  ;;  %v746_v42 = vpop.permute.xlu0 %745  ;;  %1575 = vmatpush1.bf16.msra.mxu0 %v1928_v34  ;;  %vm1013_vm11 = vcmask 965632  }
 0x104   : > { %v750_v45 = vrot.slane %v748_v41, 4  ;;  %v749_v46 = vrot.slane %v746_v42, 4 }
 0x106   : > { %v754_v47 = vsel %vm752_vm12, %v748_v41, %v750_v45  ;;  %v751_v48 = vsel %vm187_vm1, %v749_v46, %v750_v45  ;;  %v2072_v0 = vld [vmem:[#allocation2 + $0x170] ss:$12 sps:$4 sm:$0xff]   ;;  %1577 = vmatmul.mubr.bf16.vlgmr.msra.gmra.mrb[0].mxu0 %v1879_v38 }
 0x107   : > { %758 = vst.msk [vmem:[#allocation2 + $0x194] sm:$0xf] %vm175_vm0, %v754_v47  ;;  %v753_v21 = vsel %vm752_vm12, %v746_v42, %v751_v48  ;;  %v766_v15 = vpop.permute.xlu1 %765  ;;  %v764_v49 = vpop.permute.xlu0 %763  ;;  %1959 = vmatprep.mubr.msk.bf16.mxu0 %vm1530_vm13, %v1882_v44  ;;  %1982 = vmatprep.subr.bf16.mxu1 %v2072_v0 }
 0x108   : > { %v768_v50 = vrot.slane %v766_v15, 4  ;;  %v767_v51 = vrot.slane %v764_v49, 4  ;;  %v1931_v52 = vcombine.low %v735_v39, %v753_v21  ;;  %v1932_v53 = vcombine.high %v735_v39, %v753_v21  ;;  %1983 = vmatpush3.bf16.msra.mxu1 %v2073_v43 }
 0x109   : > { %1666 = vmatprep.subr.bf16.mxu1 %v2129_v40 }
 0x10a   : > { %v772_v54 = vsel %vm770_vm14, %v766_v15, %v768_v50  ;;  %v769_v55 = vsel %vm187_vm1, %v767_v51, %v768_v50  ;;  %1585 = vmatprep.subr.bf16.mxu0 %v1932_v53 }
 0x10b   : > { %776 = vst.msk [vmem:[#allocation2 + $0x1a0] sm:$0xf] %vm175_vm0, %v772_v54  ;;  %v771_v56 = vsel %vm770_vm14, %v764_v49, %v769_v55  ;;  %v784_v57 = vpop.permute.xlu1 %783  ;;  %v782_v58 = vpop.permute.xlu0 %781  ;;  %1586 = vmatpush1.bf16.msra.mxu0 %v1931_v52  ;;  %1659 = vmatmul.mubr.bf16.vlgmr.msra.gmra.mrb[0].mxu1 %v1879_v38 }
 0x10c   : > { %v786_v59 = vrot.slane %v784_v57, 4  ;;  %v785_v60 = vrot.slane %v782_v58, 4  ;;  %1960 = vmatprep.mubr.msk.bf16.mxu1 %vm1530_vm13, %v1882_v44 }
 0x10e   : > { %v790_v61 = vsel %vm788_vm15, %v784_v57, %v786_v59  ;;  %v787_v62 = vsel %vm187_vm1, %v785_v60, %v786_v59  ;;  %v2076_v63 = vld [vmem:[#allocation2 + $0x188] ss:$12 sps:$4 sm:$0xff]  }
 0x10f   : > { %794 = vst.msk [vmem:[#allocation2 + $0x1ac] sm:$0xf] %vm175_vm0, %v790_v61  ;;  %v789_v1 = vsel %vm788_vm15, %v782_v58, %v787_v62  ;;  %v802_v2 = vpop.permute.xlu1 %801  ;;  %v800_v3 = vpop.permute.xlu0 %799  ;;  %1667 = vmatpush1.bf16.msra.mxu1 %v2076_v63 }
 0x110   : > { %v804_v4 = vrot.slane %v802_v2, 4  ;;  %v803_v5 = vrot.slane %v800_v3, 4  ;;  %v1934_v6 = vcombine.low %v771_v56, %v789_v1  ;;  %v1935_v7 = vcombine.high %v771_v56, %v789_v1  ;;  %1668 = vmatprep.subr.bf16.mxu1 %v2129_v40 }
 0x112   : > { %v808_v8 = vsel %vm806_vm2, %v802_v2, %v804_v4  ;;  %v805_v9 = vsel %vm187_vm1, %v803_v5, %v804_v4  ;;  %1587 = vmatprep.subr.bf16.mxu0 %v1935_v7 }
 0x113   : > { %812 = vst.msk [vmem:[#allocation2 + $0x1b8] sm:$0xf] %vm175_vm0, %v808_v8  ;;  %v807_v10 = vsel %vm806_vm2, %v800_v3, %v805_v9  ;;  %v820_v11 = vpop.permute.xlu1 %819  ;;  %v818_v12 = vpop.permute.xlu0 %817  ;;  %1588 = vmatpush1.bf16.msra.mxu0 %v1934_v6 }
 0x114   : > { %v822_v13 = vrot.slane %v820_v11, 4  ;;  %v821_v14 = vrot.slane %v818_v12, 4 }
 0x116   : > { %v826_v16 = vsel %vm824_vm3, %v820_v11, %v822_v13  ;;  %v823_v17 = vsel %vm187_vm1, %v821_v14, %v822_v13  ;;  %v2077_v18 = vld [vmem:[#allocation2 + $0x1a0] ss:$12 sps:$4 sm:$0xff]  }
 0x117   : > { %830 = vst.msk [vmem:[#allocation2 + $0x1c4] sm:$0xf] %vm175_vm0, %v826_v16  ;;  %v825_v19 = vsel %vm824_vm3, %v818_v12, %v823_v17  ;;  %v838_v20 = vpop.permute.xlu1 %837  ;;  %v836_v22 = vpop.permute.xlu0 %835  ;;  %1669 = vmatpush1.bf16.msra.mxu1 %v2077_v18 }
 0x118   : > { %v840_v23 = vrot.slane %v838_v20, 4  ;;  %v839_v24 = vrot.slane %v836_v22, 4  ;;  %v1937_v25 = vcombine.low %v807_v10, %v825_v19  ;;  %v1938_v26 = vcombine.high %v807_v10, %v825_v19  ;;  %1670 = vmatprep.subr.bf16.mxu1 %v2129_v40 }
 0x11a   : > { %v844_v27 = vsel %vm842_vm4, %v838_v20, %v840_v23  ;;  %v841_v28 = vsel %vm187_vm1, %v839_v24, %v840_v23  ;;  %1589 = vmatprep.subr.bf16.mxu0 %v1938_v26 }
 0x11b   : > { %848 = vst.msk [vmem:[#allocation2 + $0x1d0] sm:$0xf] %vm175_vm0, %v844_v27  ;;  %v843_v29 = vsel %vm842_vm4, %v836_v22, %v841_v28  ;;  %v856_v30 = vpop.permute.xlu1 %855  ;;  %v854_v31 = vpop.permute.xlu0 %853  ;;  %1590 = vmatpush1.bf16.msra.mxu0 %v1937_v25 }
 0x11c   : > { %v858_v32 = vrot.slane %v856_v30, 4  ;;  %v857_v33 = vrot.slane %v854_v31, 4 }
 0x11e   : > { %v862_v34 = vsel %vm860_vm8, %v856_v30, %v858_v32  ;;  %v859_v36 = vsel %vm187_vm1, %v857_v33, %v858_v32  ;;  %v2078_v37 = vld [vmem:[#allocation2 + $0x1b8] ss:$12 sps:$4 sm:$0xff]  }
 0x11f   : > { %866 = vst.msk [vmem:[#allocation2 + $0x1dc] sm:$0xf] %vm175_vm0, %v862_v34  ;;  %v861_v38 = vsel %vm860_vm8, %v854_v31, %v859_v36  ;;  %v874_v39 = vpop.permute.xlu1 %873  ;;  %v872_v41 = vpop.permute.xlu0 %871  ;;  %1671 = vmatpush1.bf16.msra.mxu1 %v2078_v37 }
 0x120   : > { %v876_v42 = vrot.slane %v874_v39, 4  ;;  %v875_v44 = vrot.slane %v872_v41, 4  ;;  %v1940_v45 = vcombine.low %v843_v29, %v861_v38  ;;  %v1941_v46 = vcombine.high %v843_v29, %v861_v38  ;;  %1672 = vmatprep.subr.bf16.mxu1 %v2129_v40 }
 0x122   : > { %v880_v47 = vsel %vm878_vm9, %v874_v39, %v876_v42  ;;  %v877_v48 = vsel %vm187_vm1, %v875_v44, %v876_v42  ;;  %1591 = vmatprep.subr.bf16.mxu0 %v1941_v46 }
 0x123   : > { %884 = vst.msk [vmem:[#allocation2 + $0x1e8] sm:$0xf] %vm175_vm0, %v880_v47  ;;  %v879_v0 = vsel %vm878_vm9, %v872_v41, %v877_v48  ;;  %v892_v21 = vpop.permute.xlu1 %891  ;;  %v890_v15 = vpop.permute.xlu0 %889  ;;  %1592 = vmatpush1.bf16.msra.mxu0 %v1940_v45 }
 0x124   : > { %v894_v49 = vrot.slane %v892_v21, 4  ;;  %v893_v43 = vrot.slane %v890_v15, 4 }
 0x126   : > { %v898_v50 = vsel %vm896_vm10, %v892_v21, %v894_v49  ;;  %v895_v51 = vsel %vm187_vm1, %v893_v43, %v894_v49  ;;  %v2079_v52 = vld [vmem:[#allocation2 + $0x1d0] ss:$12 sps:$4 sm:$0xff]   ;;  %v1881_v49 = vcombine.low %v2381_v35, %v2381_v35 }
 0x127   : > { %902 = vst.msk [vmem:[#allocation2 + $0x1f4] sm:$0xf] %vm175_vm0, %v898_v50  ;;  %v897_v53 = vsel %vm896_vm10, %v890_v15, %v895_v51  ;;  %v910_v54 = vpop.permute.xlu1 %909  ;;  %v908_v55 = vpop.permute.xlu0 %907  ;;  %1673 = vmatpush1.bf16.msra.mxu1 %v2079_v52 }
 0x128   : > { %v912_v56 = vrot.slane %v910_v54, 4  ;;  %918 = vst.msk [vmem:[#allocation2 + $0x200] sm:$0xf] %vm175_vm0, %v910_v54  ;;  %v911_v57 = vrot.slane %v908_v55, 4  ;;  %v1943_v58 = vcombine.low %v879_v0, %v897_v53  ;;  %v1944_v59 = vcombine.high %v879_v0, %v897_v53  ;;  %1674 = vmatprep.subr.bf16.mxu1 %v2129_v40 }
 0x12a   : > { %v913_v60 = vsel %vm187_vm1, %v911_v57, %v912_v56  ;;  %1593 = vmatprep.subr.bf16.mxu0 %v1944_v59 }
 0x12b   : > { %v914_v61 = vsel %vm240_vm5, %v908_v55, %v913_v60  ;;  %v926_v62 = vpop.permute.xlu1 %925  ;;  %v924_v63 = vpop.permute.xlu0 %923  ;;  %1594 = vmatpush1.bf16.msra.mxu0 %v1943_v58  ;;  %vm962_vm5 = vcmask 990208  }
 0x12c   : > { %v928_v1 = vrot.slane %v926_v62, 4  ;;  %934 = vst.msk [vmem:[#allocation2 + $0x20c] sm:$0xf] %vm175_vm0, %v926_v62  ;;  %v927_v2 = vrot.slane %v924_v63, 4 }
 0x12e   : > { %v929_v3 = vsel %vm187_vm1, %v927_v2, %v928_v1  ;;  %v2080_v4 = vld [vmem:[#allocation2 + $0x1e8] ss:$12 sps:$4 sm:$0xff]  }
 0x12f   : > { %v930_v5 = vsel %vm257_vm6, %v924_v63, %v929_v3  ;;  %v942_v6 = vpop.permute.xlu1 %941  ;;  %v940_v7 = vpop.permute.xlu0 %939  ;;  %1675 = vmatpush1.bf16.msra.mxu1 %v2080_v4  ;;  %vm979_vm6 = vcmask 982016  }
 0x130   : > { %v944_v8 = vrot.slane %v942_v6, 4  ;;  %950 = vst.msk [vmem:[#allocation2 + $0x218] sm:$0xf] %vm175_vm0, %v942_v6  ;;  %v943_v9 = vrot.slane %v940_v7, 4  ;;  %v1946_v10 = vcombine.low %v914_v61, %v930_v5  ;;  %v1947_v11 = vcombine.high %v914_v61, %v930_v5  ;;  %1676 = vmatprep.subr.bf16.mxu1 %v2129_v40 }
 0x132   : > { %v945_v12 = vsel %vm187_vm1, %v943_v9, %v944_v8  ;;  %1595 = vmatprep.subr.bf16.mxu0 %v1947_v11 }
 0x133   : > { %v946_v13 = vsel %vm274_vm7, %v940_v7, %v945_v12  ;;  %v958_v14 = vpop.permute.xlu1 %957  ;;  %v956_v16 = vpop.permute.xlu0 %955  ;;  %v2081_v17 = vld [vmem:[#allocation2 + $0x200] ss:$12 sps:$4 sm:$0xff]   ;;  %1596 = vmatpush1.bf16.msra.mxu0 %v1946_v10  ;;  %vm996_vm7 = vcmask 973824  }
 0x134   : > { %v960_v18 = vrot.slane %v958_v14, 4  ;;  %967 = vst.msk [vmem:[#allocation2 + $0x224] sm:$0xf] %vm175_vm0, %v958_v14  ;;  %v959_v19 = vrot.slane %v956_v16, 4  ;;  %1677 = vmatpush1.bf16.msra.mxu1 %v2081_v17 }
 0x135   : > { %1678 = vmatprep.subr.bf16.mxu1 %v2129_v40 }
 0x136   : > { %v961_v20 = vsel %vm187_vm1, %v959_v19, %v960_v18 }
 0x137   : > { %v963_v22 = vsel %vm962_vm5, %v956_v16, %v961_v20  ;;  %v975_v23 = vpop.permute.xlu1 %974  ;;  %v973_v24 = vpop.permute.xlu0 %972 }
 0x138   : > { %v977_v25 = vrot.slane %v975_v23, 4  ;;  %984 = vst.msk [vmem:[#allocation2 + $0x230] sm:$0xf] %vm175_vm0, %v975_v23  ;;  %v976_v26 = vrot.slane %v973_v24, 4  ;;  %v1949_v27 = vcombine.low %v946_v13, %v963_v22  ;;  %v1950_v28 = vcombine.high %v946_v13, %v963_v22 }
 0x13a   : > { %v978_v29 = vsel %vm187_vm1, %v976_v26, %v977_v25  ;;  %1597 = vmatprep.subr.bf16.mxu0 %v1950_v28 }
 0x13b   : > { %v980_v30 = vsel %vm979_vm6, %v973_v24, %v978_v29  ;;  %v992_v31 = vpop.permute.xlu1 %991  ;;  %v990_v32 = vpop.permute.xlu0 %989  ;;  %v2082_v33 = vld [vmem:[#allocation2 + $0x218] ss:$12 sps:$4 sm:$0xff]   ;;  %1598 = vmatpush1.bf16.msra.mxu0 %v1949_v27  ;;  %vm1771_vm6 = vcmask 785408  }
 0x13c   : > { %v994_v34 = vrot.slane %v992_v31, 4  ;;  %1001 = vst.msk [vmem:[#allocation2 + $0x23c] sm:$0xf] %vm175_vm0, %v992_v31  ;;  %v993_v36 = vrot.slane %v990_v32, 4  ;;  %1679 = vmatpush1.bf16.msra.mxu1 %v2082_v33 }
 0x13d   : > { %1680 = vmatprep.subr.bf16.mxu1 %v2129_v40 }
 0x13e   : > { %v995_v37 = vsel %vm187_vm1, %v993_v36, %v994_v34 }
 0x13f   : > { %v997_v38 = vsel %vm996_vm7, %v990_v32, %v995_v37  ;;  %v1009_v39 = vpop.permute.xlu1 %1008  ;;  %v1007_v41 = vpop.permute.xlu0 %1006 }
 0x140   : > { %v1011_v42 = vrot.slane %v1009_v39, 4  ;;  %1018 = vst.msk [vmem:[#allocation2 + $0x248] sm:$0xf] %vm175_vm0, %v1009_v39  ;;  %v1010_v44 = vrot.slane %v1007_v41, 4  ;;  %v1952_v45 = vcombine.low %v980_v30, %v997_v38  ;;  %v1953_v46 = vcombine.high %v980_v30, %v997_v38 }
 0x142   : > { %v1012_v47 = vsel %vm187_vm1, %v1010_v44, %v1011_v42  ;;  %1599 = vmatprep.subr.bf16.mxu0 %v1953_v46 }
 0x143   : > { %v1014_v48 = vsel %vm1013_vm11, %v1007_v41, %v1012_v47  ;;  %v2083_v0 = vld [vmem:[#allocation2 + $0x230] ss:$12 sps:$4 sm:$0xff]   ;;  %1600 = vmatpush1.bf16.msra.mxu0 %v1952_v45 }
 0x144   : > { %v1956_v21 = vcombine.high %v1014_v48, %v1014_v48  ;;  %v1955_v15 = vcombine.low %v1014_v48, %v1014_v48  ;;  %1681 = vmatpush1.bf16.msra.mxu1 %v2083_v0 }
 0x145   : > { %1682 = vmatprep.subr.bf16.mxu1 %v2129_v40  ;;  %v1706_v40 = vlaneseq }
 0x146   : > { %1958 = vmatprep.subr.msk.bf16.mxu0 %vm187_vm1, %v1956_v21  ;;  %v1536_v43 = vsel %vm187_vm1, %v1955_v15, 0 }
 0x147   : > { %v2084_v50 = vld [vmem:[#allocation2 + $0x248] ss:$0 sps:$4 sm:$0xff]   ;;  %1602 = vmatpush1.bf16.msra.mxu0 %v1536_v43  ;;  %v1707_v57 = vand.u32 127, %v1706_v40 }
 0x148   : > { %v1542_v51 = vsel %vm187_vm1, %v2084_v50, 0 }
 0x149   : > { %1683 = vmatpush1.bf16.msra.mxu1 %v1542_v51  ;;  %v1708_v58 = vadd.s32 128, %v1707_v57  ;;  %v1709_v59 = vadd.s32 256, %v1707_v57  ;;  %v2444_v60 = vmul.u32.u64.low 3123612579, %v1707_v57  ;;  %v2445_v35 = vmul.u32.u64.high 3123612579, %v1707_v57, %v2444_v60 }
 0x14a   : > { %1618 = vmatmul.mubr.bf16.vlgmr.msra.gmra.mrb[0].mxu0 %v1881_v49 }
 0x14b   : > { %v2447_v61 = vmul.u32.u64.low 3123612579, %v1708_v58  ;;  %v2448_v62 = vmul.u32.u64.high 3123612579, %v1708_v58, %v2447_v61  ;;  %v2450_v63 = vmul.u32.u64.low 3123612579, %v1709_v59  ;;  %v2451_v1 = vmul.u32.u64.high 3123612579, %v1709_v59, %v2450_v63 }
 0x14c   : > { %1699 = vmatmul.mubr.bf16.vlgmr.msra.gmra.mrb[4].mxu1 %v1881_v49  ;;  %v1716_v2 = vshrl.u32 %v2445_v35, 4 }
 0x14d   : > { %v1727_v3 = vshrl.u32 %v2448_v62, 4  ;;  %v1738_v4 = vshrl.u32 %v2451_v1, 4 }
 0x14e   : > { %v1717_v5 = vmul.u32 22, %v1716_v2 }
 0x14f   : > { %v1728_v6 = vmul.u32 22, %v1727_v3  ;;  %v1739_v7 = vmul.u32 22, %v1738_v4 }
 0x150   : > { %v1718_v8 = vsub.s32 %v1707_v57, %v1717_v5  ;;  %v1123_v17 = vpop.permute.xlu0 %1122 }
 0x151   : > { %v1729_v9 = vsub.s32 %v1708_v58, %v1728_v6  ;;  %v1740_v10 = vsub.s32 %v1709_v59, %v1739_v7 }
 0x152   : > { %vm1743_vm1 = vcmp.ne.s32.totalorder %v1718_v8, 0  ;;  %vm1746_vm12 = vcmp.lt.s32.totalorder %v1718_v8, 0  ;;  %v1752_v11 = vadd.s32 22, %v1718_v8 }
 0x153   : > { %vm1744_vm13 = vcmp.ne.s32.totalorder %v1729_v9, 0  ;;  %vm1747_vm14 = vcmp.lt.s32.totalorder %v1729_v9, 0  ;;  %vm1745_vm15 = vcmp.ne.s32.totalorder %v1740_v10, 0  ;;  %vm1748_vm2 = vcmp.lt.s32.totalorder %v1740_v10, 0  ;;  %vm1749_vm3 = vmand %vm1746_vm12, %vm1743_vm1 }
 0x154   : > { %v1753_v12 = vadd.s32 22, %v1729_v9  ;;  %vm1750_vm4 = vmand %vm1747_vm14, %vm1744_vm13  ;;  %v1754_v13 = vadd.s32 22, %v1740_v10  ;;  %v1755_v14 = vsel %vm1749_vm3, %v1752_v11, %v1718_v8 }
 0x155   : > { %vm1751_vm8 = vmand %vm1748_vm2, %vm1745_vm15  ;;  %vm2456_vm9 = vcmp.lt.s32.totalorder %v1755_v14, 16 }
 0x156   : > { %v1756_v16 = vsel %vm1750_vm4, %v1753_v12, %v1729_v9  ;;  %v1757_v18 = vsel %vm1751_vm8, %v1754_v13, %v1740_v10 }
 0x157   : > { %vm2460_vm10 = vcmp.lt.s32.totalorder %v1756_v16, 16  ;;  %vm2464_vm5 = vcmp.lt.s32.totalorder %v1757_v18, 16 }
 0x1de   : > { %v1984_v52 = vpop.f32.mrb[0].mxu1 }
 0x1df   : > { %v1985_v53 = vpop.f32.mrb[1].mxu1 }
 0x1e0   : > { %v1986_v54 = vadd.f32 %v1985_v53, %v1984_v52  ;;  %v1987_v55 = vpop.f32.mrb[2].mxu1 }
 0x1e1   : > { %v1988_v56 = vpop.f32.mrb[3].mxu1 }
 0x1e2   : > { %v1661_v25 = vadd.f32 %v1986_v54, %v1123_v17 }
 0x21d   : > { %v1619_v19 = vpop.f32.mrb[0].mxu0 }
 0x21e   : > { %v1990_v22 = vadd.f32 %v1619_v19, %v1123_v17  ;;  %v1621_v23 = vpop.f32.mrb[1].mxu0 }
 0x21f   : > { %v1991_v26 = vadd.f32 %v1621_v23, %v1123_v17  ;;  %v1623_v27 = vpop.f32.mrb[2].mxu0  ;;  %v1700_v28 = vpop.f32.mrb[4].mxu1 }
 0x220   : > { %v1767_v30 = vsel %vm2456_vm9, %v1990_v22, 0.0  ;;  %v1624_v31 = vpop.f32.mrb[3].mxu0  ;;  %v1701_v32 = vadd.f32 %v1700_v28, %v1661_v25  ;;  %v1702_v33 = vpop.f32.mrb[5].mxu1 }
 0x221   : > { %v1768_v34 = vsel %vm2460_vm10, %v1991_v26, 0.0  ;;  %v1703_v36 = vpop.f32.mrb[6].mxu1 }
 0x222   : > { %v1770_v37 = vadd.f32 %v1768_v34, %v1767_v30  ;;  %v1769_v38 = vsel %vm2464_vm5, %v1701_v32, 0.0  ;;  %v1704_v39 = vpop.f32.mrb[7].mxu1 }
 0x223   : > { %v1772_v41 = vsel %vm1771_vm6, %v1769_v38, 0.0 }
 0x224   : > { %v1773_v42 = vadd.f32 %v1772_v41, %v1770_v37 }
 0x226   : > { %1774 = vadd.xlane.f32.xlu1 %v1773_v42 }
 0x2b3   : > { %v1775_v44 = vpop.xlane.xlu1 %1774 }
 0x2b4   : > { %v1777_v45 = vmul.f32 0.00390625, %v1775_v44 }
 0x2b6   : > { %v1778_v46 = vsub.f32 %v1990_v22, %v1777_v45  ;;  %v1779_v47 = vsub.f32 %v1991_v26, %v1777_v45  ;;  %v1780_v48 = vsub.f32 %v1701_v32, %v1777_v45 }
 0x2b8   : > { %v1781_v0 = vsel %vm2456_vm9, %v1778_v46, 0.0  ;;  %v1782_v21 = vsel %vm2460_vm10, %v1779_v47, 0.0  ;;  %v1783_v15 = vsel %vm2464_vm5, %v1780_v48, 0.0 }
 0x2b9   : > { %v1784_v49 = vmul.f32 %v1781_v0, %v1781_v0  ;;  %v1785_v43 = vmul.f32 %v1782_v21, %v1782_v21  ;;  %v1786_v50 = vmul.f32 %v1783_v15, %v1783_v15 }
 0x2bb   : > { %v1787_v51 = vadd.f32 %v1785_v43, %v1784_v49  ;;  %v1788_v52 = vsel %vm1771_vm6, %v1786_v50, 0.0 }
 0x2bd   : > { %v1789_v53 = vadd.f32 %v1788_v52, %v1787_v51 }
 0x2bf   : > { %1790 = vadd.xlane.f32.xlu0 %v1789_v53 }
 0x34c   : > { %v1791_v54 = vpop.xlane.xlu0 %1790 }
 0x34d   : > { %v1792_v55 = vmul.f32 0.00390625, %v1791_v54 }
 0x34f   : > { %v1793_v56 = vadd.f32 1e-05, %v1792_v55 }
 0x351   : > { %2087 = vrsqrt.f32 %v1793_v56 }
 0x35b   : > { %v2088_v40 = vpop.eup %2087 }
 0x35c   : > { %v1795_v57 = vmul.f32 %v2088_v40, %v1778_v46  ;;  %v1796_v58 = vmul.f32 %v2088_v40, %v1779_v47  ;;  %v1797_v59 = vmul.f32 %v2088_v40, %v1780_v48 }
 0x35e   : > { %v1798_v60 = vmax.f32 %v1795_v57, 0.0  ;;  %v1799_v35 = vmax.f32 %v1796_v58, 0.0  ;;  %v1800_v61 = vmax.f32 %v1797_v59, 0.0 }
 0x360   : > { %v1966_v62 = vpack.c.bf16 %v1799_v35, %v1798_v60  ;;  %v1967_v63 = vpack.c.bf16 %v1800_v61, %v1800_v61 }
 0x362   : > { %1814 = vst [vmem:[%s170_s26] sm:$0xff] %v1966_v62  ;;  %1815 = vst.msk [vmem:[%s170_s26 + $0x8] sm:$0xf] %vm175_vm0, %v1967_v63 }
 0x363 PF: > { %s13_s12 = sadd.s32 1, %s2095_s12  }
 0x364   : > { %p10_p4 = scmp.ge.s32.totalorder %s13_s12, 4  }
 0x366   :  { %12 = sbr.rel (!%p10_p4) target bundleno = 1 (0x1), region = 62 }

// kernel: content_encoder_forward.6
= control target key start
LH: loop header
LB: loop body
LE: loop exit
PB: predicated region body
PF: predicated region fallthrough
CT: control target
= control target key end

     0   :  { %s566_s12 = smov 0   ;;  %s633_s0 = inlined_call_operand.vmem [shape: bf16[2,32,82], index: 0, kind: input, shape index: {}]   ;;  %s634_s1 = inlined_call_operand.vmem [shape: bf16[16,128], index: 1, kind: input, shape index: {}]   ;;  %s635_s2 = inlined_call_operand.vmem [shape: f32[16,1], index: 2, kind: input, shape index: {}]   ;;  %s636_s3 = inlined_call_operand.vmem [shape: bf16[2,16,72], index: 3, kind: output, shape index: {}]  }
   0x1 LB: > { %s446_s13 = sadd.s32 4294967295, %s538_s12   ;;  %p450_p0 = scmp.ge.s32.totalorder %s538_s12, 1  ;;  %s538_s12 = sphi %s566_s12, %s13_s12  }
   0x2   : > { %p137_p1 = scmp.lt.s32.totalorder %s538_s12, 3 }
   0x4   : > { %p138_p2 = pnand %p450_p0, %p137_p1 }
   0x5   : > { %p161_p3 = scmp.lt.s32.totalorder (!%p138_p2), %s446_s13, 1  ;;  %v540_v0 = vmov (!%p138_p2), 0.0   ;;  %s541_s18 = smov (!%p138_p2), 127   ;;  %vm188_vm0 = vcmask (!%p138_p2), 588800   ;;  %vm544_vm1 = vmmov (!%p138_p2), 0   ;;  %v267_v11 = vld [vmem:[%s635_s2] sm:$0xff] (!%p138_p2)  ;;  %v326_v27 = vlaneseq (!%p138_p2) }
   0x6   : > { %141 = sbr.rel (%p138_p2) target bundleno = 695 (0x2b7), region = 32  ;;  %481 = vmatprep.subr.bf16.mxu0 (!%p138_p2), %v540_v0  ;;  %s542_s19 = smov (!%p138_p2), 119   ;;  %497 = vmatprep.mubr.msk.bf16.mxu0 (!%p138_p2), %vm544_vm1, %v540_v0  ;;  %v268_v12 = vld [vmem:[%s635_s2 + $0x8] sm:$0xff] (!%p138_p2)  ;;  %v545_v13 = vmov (!%p138_p2), 0   ;;  %v527_v26 = vld [vmem:[%s634_s1] sm:$0xff] (!%p138_p2)   ;;  %vm388_vm6 = vcmask (!%p138_p2), 584704  }
   0x7   : > { %s543_s20 = smov (!%p138_p2), 118   ;;  %517 = vset.pattern.permute.xlu0 (!%p138_p2), %v545_v13  ;;  %518 = vset.pattern.permute.xlu1 (!%p138_p2), %v545_v13  ;;  %v327_v28 = vand.u32 (!%p138_p2), 127, %v326_v27 }
   0x9   : > { %v606_v29 = vmul.u32.u64.low (!%p138_p2), 3817748708, %v327_v28  ;;  %v607_v30 = vmul.u32.u64.high 3817748708, %v327_v28, %v606_v29 }
   0xb   : > { %v334_v31 = vshrl.u32 (!%p138_p2), %v607_v30, 3 }
   0xd   : > { %s640_s13 = smov (!%p161_p3, %s446_s13), 1  ;;  %v335_v32 = vmul.u32 9, %v334_v31 }
   0xe   : > { %s468_s14 = sshll.u32 %s640_s13, 4  ;;  %s469_s27 = sshll.u32 %s640_s13, 3 }
   0xf   : > { %s165_s17 = scalar_lea.vmem %s633_s0, %s468_s14  ;;  %v336_v33 = vsub.s32 %v327_v28, %v335_v32  ;;  %s170_s30 = scalar_lea.vmem %s636_s3, %s469_s27 }
  0x10   : > { %v519_v1 = vld [vmem:[%s165_s17] sm:$0xff]   ;;  %v520_v2 = vld [vmem:[%s165_s17 + $0x8] sm:$0xff]  }
  0x11   : > { %205 = vrot.lane.b32.xlu0 %v519_v1, %s541_s18  ;;  %v521_v3 = vld [vmem:[%s165_s17] sm:$0xff]   ;;  %v522_v4 = vld [vmem:[%s165_s17 + $0x8] sm:$0xff]   ;;  %vm339_vm2 = vcmp.ne.s32.totalorder %v336_v33, 0  ;;  %vm340_vm3 = vcmp.lt.s32.totalorder %v336_v33, 0  ;;  %v342_v34 = vadd.s32 9, %v336_v33 }
  0x12   : > { %227 = vrot.lane.b32.xlu1 %v521_v3, %s542_s19  ;;  %v523_v5 = vld [vmem:[%s165_s17] sm:$0xff]   ;;  %v526_v7 = vld [vmem:[%s165_s17 + $0x8] sm:$0xff]   ;;  %vm341_vm4 = vmand %vm340_vm3, %vm339_vm2 }
  0x13   : > { %v525_v6 = vld [vmem:[%s165_s17] sm:$0xff]   ;;  %v524_v8 = vld [vmem:[%s165_s17 + $0x8] sm:$0xff]   ;;  %190 = vst.msk [vmem:[#allocation2 + $0x8] sm:$0xff] %vm188_vm0, %v526_v7  ;;  %v343_v35 = vsel %vm341_vm4, %v342_v34, %v336_v33 }
  0x14   : > { %189 = vst.msk [vmem:[#allocation2] sm:$0xff] %vm188_vm0, %v525_v6  ;;  %vm610_vm5 = vcmp.lt.s32.totalorder %v343_v35, 8 }
  0x15   : > { %207 = vrot.lane.b32.xlu0 %v520_v2, %s541_s18 }
  0x16   : > { %229 = vrot.lane.b32.xlu1 %v522_v4, %s542_s19 }
  0x19   : > { %249 = vrot.lane.b32.xlu0 %v523_v5, %s543_s20 }
  0x1a   : > { %251 = vrot.lane.b32.xlu1 %v524_v8, %s543_s20  ;;  %v260_v10 = vld [vmem:[#allocation2 + $0x8] sm:$0xff] }
  0x1b   : > { %v259_v9 = vld [vmem:[#allocation2] sm:$0xff] }
  0x1c   : > { %482 = vmatpush3.bf16.msra.mxu0 %v259_v9 }
  0x1d   : > { %483 = vmatprep.subr.bf16.mxu0 %v540_v0  ;;  %271 = vperm.xlu0 %517, %v267_v11  }
  0x1e   : > { %276 = vperm.xlu1 %518, %v268_v12  }
  0x20   : > { %484 = vmatpush3.bf16.msra.mxu0 %v260_v10 }
  0x21   : > { %485 = vmatprep.subr.bf16.mxu0 %v540_v0 }
  0x83   : > { %v206_v14 = vpop.permute.xlu0 %205 }
  0x84   : > { %211 = vst.msk [vmem:[#allocation2 + $0x10] sm:$0xff] %vm188_vm0, %v206_v14  ;;  %v228_v15 = vpop.permute.xlu1 %227 }
  0x85   : > { %233 = vst.msk [vmem:[#allocation2 + $0x20] sm:$0xff] %vm188_vm0, %v228_v15 }
  0x87   : > { %v208_v16 = vpop.permute.xlu0 %207 }
  0x88   : > { %212 = vst.msk [vmem:[#allocation2 + $0x18] sm:$0xff] %vm188_vm0, %v208_v16  ;;  %v230_v17 = vpop.permute.xlu1 %229 }
  0x89   : > { %234 = vst.msk [vmem:[#allocation2 + $0x28] sm:$0xff] %vm188_vm0, %v230_v17 }
  0x8b   : > { %v261_v18 = vld [vmem:[#allocation2 + $0x10] sm:$0xff]  ;;  %v250_v19 = vpop.permute.xlu0 %249 }
  0x8c   : > { %486 = vmatpush3.bf16.msra.mxu0 %v261_v18  ;;  %255 = vst.msk [vmem:[#allocation2 + $0x30] sm:$0xff] %vm188_vm0, %v250_v19  ;;  %v252_v20 = vpop.permute.xlu1 %251  ;;  %v263_v22 = vld [vmem:[#allocation2 + $0x20] sm:$0xff] }
  0x8d   : > { %487 = vmatprep.subr.bf16.mxu0 %v540_v0  ;;  %256 = vst.msk [vmem:[#allocation2 + $0x38] sm:$0xff] %vm188_vm0, %v252_v20 }
  0x8f   : > { %v262_v21 = vld [vmem:[#allocation2 + $0x18] sm:$0xff] }
  0x90   : > { %488 = vmatpush3.bf16.msra.mxu0 %v262_v21  ;;  %v264_v23 = vld [vmem:[#allocation2 + $0x28] sm:$0xff] }
  0x91   : > { %489 = vmatprep.subr.bf16.mxu0 %v540_v0 }
  0x93   : > { %v265_v24 = vld [vmem:[#allocation2 + $0x30] sm:$0xff] }
  0x94   : > { %490 = vmatpush3.bf16.msra.mxu0 %v263_v22  ;;  %v266_v25 = vld [vmem:[#allocation2 + $0x38] sm:$0xff] }
  0x95   : > { %491 = vmatprep.subr.bf16.mxu0 %v540_v0 }
  0x98   : > { %492 = vmatpush3.bf16.msra.mxu0 %v264_v23 }
  0x99   : > { %493 = vmatprep.subr.bf16.mxu0 %v540_v0 }
  0x9c   : > { %494 = vmatpush3.bf16.msra.mxu0 %v265_v24  ;;  %v272_v36 = vpop.permute.xlu0 %271 }
  0x9d   : > { %495 = vmatprep.subr.bf16.mxu0 %v540_v0  ;;  %v277_v38 = vpop.permute.xlu1 %276 }
  0xa0   : > { %496 = vmatpush3.bf16.msra.mxu0 %v266_v25 }
  0xa3   : > { %498 = vmatmul.mubr.bf16.vlgmr.msra.gmra.mrb[0].mxu0 %v527_v26 }
 0x176   : > { %v319_v37 = vpop.f32.mrb[0].mxu0 }
 0x177   : > { %v320_v40 = vadd.f32 %v319_v37, %v272_v36  ;;  %v499_v41 = vpop.f32.mrb[1].mxu0 }
 0x178   : > { %v322_v42 = vpop.f32.mrb[2].mxu0 }
 0x179   : > { %v323_v43 = vadd.f32 %v322_v42, %v277_v38  ;;  %v500_v44 = vpop.f32.mrb[3].mxu0  ;;  %v347_v45 = vsel %vm610_vm5, %v320_v40, 0.0 }
 0x17a   : > { %v349_v46 = vsel %vm188_vm0, %v347_v45, 0.0 }
 0x17b   : > { %350 = vadd.xlane.f32.xlu1 %v349_v46  ;;  %v348_v47 = vsel %vm610_vm5, %v323_v43, 0.0 }
 0x17c   : > { %v352_v48 = vsel %vm188_vm0, %v348_v47, 0.0 }
 0x17d   : > { %353 = vadd.xlane.f32.xlu0 %v352_v48 }
 0x208   : > { %v351_v49 = vpop.xlane.xlu1 %350 }
 0x209   : > { %v356_v50 = vmul.f32 0.015625, %v351_v49 }
 0x20a   : > { %v354_v51 = vpop.xlane.xlu0 %353 }
 0x20b   : > { %v358_v52 = vsub.f32 %v320_v40, %v356_v50  ;;  %v357_v53 = vmul.f32 0.015625, %v354_v51 }
 0x20d   : > { %v359_v54 = vsub.f32 %v323_v43, %v357_v53  ;;  %v360_v55 = vsel %vm610_vm5, %v358_v52, 0.0 }
 0x20e   : > { %v362_v56 = vmul.f32 %v360_v55, %v360_v55 }
 0x20f   : > { %v361_v57 = vsel %vm610_vm5, %v359_v54, 0.0 }
 0x210   : > { %v364_v58 = vsel %vm188_vm0, %v362_v56, 0.0  ;;  %v363_v59 = vmul.f32 %v361_v57, %v361_v57 }
 0x211   : > { %365 = vadd.xlane.f32.xlu0 %v364_v58 }
 0x212   : > { %v367_v60 = vsel %vm188_vm0, %v363_v59, 0.0 }
 0x213   : > { %368 = vadd.xlane.f32.xlu1 %v367_v60 }
 0x29e   : > { %v366_v61 = vpop.xlane.xlu0 %365 }
 0x29f   : > { %v370_v62 = vmul.f32 0.015625, %v366_v61 }
 0x2a0   : > { %v369_v63 = vpop.xlane.xlu1 %368 }
 0x2a1   : > { %v372_v0 = vadd.f32 1e-05, %v370_v62  ;;  %v371_v1 = vmul.f32 0.015625, %v369_v63 }
 0x2a3   : > { %528 = vrsqrt.f32 %v372_v0  ;;  %v373_v2 = vadd.f32 1e-05, %v371_v1 }
 0x2a5   : > { %530 = vrsqrt.f32 %v373_v2 }
 0x2ad   : > { %v529_v3 = vpop.eup %528 }
 0x2ae   : > { %v376_v4 = vmul.f32 %v529_v3, %v358_v52 }
 0x2af   : > { %v531_v5 = vpop.eup %530 }
 0x2b0   : > { %v378_v6 = vmax.f32 %v376_v4, 0.0  ;;  %v377_v7 = vmul.f32 %v531_v5, %v359_v54 }
 0x2b2   : > { %v470_v8 = vpack.c.bf16 %v378_v6, %v378_v6  ;;  %v379_v9 = vmax.f32 %v377_v7, 0.0 }
 0x2b4   : > { %389 = vst.msk [vmem:[%s170_s30] sm:$0xf] %vm388_vm6, %v470_v8  ;;  %v471_v10 = vpack.c.bf16 %v379_v9, %v379_v9 }
 0x2b6   : > { %390 = vst.msk [vmem:[%s170_s30 + $0x4] sm:$0xf] %vm388_vm6, %v471_v10 }
 0x2b7 PF: > { %s13_s12 = sadd.s32 1, %s538_s12  }
 0x2b8   : > { %p10_p4 = scmp.ge.s32.totalorder %s13_s12, 4  }
 0x2ba   :  { %12 = sbr.rel (!%p10_p4) target bundleno = 1 (0x1), region = 62 }

// kernel: content_encoder_forward.7
= control target key start
LH: loop header
LB: loop body
LE: loop exit
PB: predicated region body
PF: predicated region fallthrough
CT: control target
= control target key end

     0   :  { %s779_s12 = smov 0   ;;  %s890_s0 = inlined_call_operand.vmem [shape: bf16[2,64,26], index: 0, kind: input, shape index: {}]   ;;  %s891_s1 = inlined_call_operand.vmem [shape: bf16[32,256], index: 1, kind: input, shape index: {}]   ;;  %s892_s2 = inlined_call_operand.vmem [shape: f32[32,1], index: 2, kind: input, shape index: {}]   ;;  %s893_s3 = inlined_call_operand.vmem [shape: bf16[2,32,20], index: 3, kind: output, shape index: {}]  }
   0x1 LB: > { %s616_s13 = sadd.s32 4294967295, %s753_s12   ;;  %p620_p0 = scmp.ge.s32.totalorder %s753_s12, 1  ;;  %s753_s12 = sphi %s779_s12, %s13_s12  }
   0x2   : > { %p137_p1 = scmp.lt.s32.totalorder %s753_s12, 3 }
   0x4   : > { %p138_p2 = pnand %p620_p0, %p137_p1 }
   0x5   : > { %p161_p3 = scmp.lt.s32.totalorder (!%p138_p2), %s616_s13, 1  ;;  %s755_s18 = smov (!%p138_p2), 123   ;;  %vm204_vm0 = vcmask (!%p138_p2), 162816   ;;  %v735_v16 = vld [vmem:[%s891_s1 + $0x4] ss:$8 sps:$4 sm:$0xff] (!%p138_p2)   ;;  %v758_v20 = vmov (!%p138_p2), 0   ;;  %v454_v53 = vlaneseq (!%p138_p2) }
   0x6   : > { %141 = sbr.rel (%p138_p2) target bundleno = 712 (0x2c8), region = 32  ;;  %s756_s19 = smov (!%p138_p2), 122   ;;  %v738_v17 = vld [vmem:[%s891_s1 + $0x14] ss:$8 sps:$4 sm:$0xff] (!%p138_p2)   ;;  %437 = vmatprep.mubr.bf16.mxu0 (!%p138_p2), %v735_v16  ;;  %v361_v18 = vld [vmem:[%s892_s2] sm:$0xff] (!%p138_p2)  ;;  %v362_v19 = vld [vmem:[%s892_s2 + $0x8] sm:$0xff] (!%p138_p2)  ;;  %716 = vset.pattern.permute.xlu1 (!%p138_p2), %v758_v20 }
   0x7   : > { %s757_s20 = smov (!%p138_p2), 127   ;;  %445 = vmatprep.mubr.bf16.mxu1 (!%p138_p2), %v738_v17  ;;  %715 = vset.pattern.permute.xlu0 (!%p138_p2), %v758_v20  ;;  %v364_v21 = vld [vmem:[%s892_s2 + $0x18] sm:$0xff] (!%p138_p2)  ;;  %v363_v22 = vld [vmem:[%s892_s2 + $0x10] sm:$0xff] (!%p138_p2)  ;;  %v733_v51 = vld [vmem:[%s891_s1] ss:$8 sps:$4 sm:$0xff] (!%p138_p2)   ;;  %v455_v54 = vand.u32 (!%p138_p2), 127, %v454_v53 }
   0x8   : > { %v736_v52 = vld [vmem:[%s891_s1 + $0x10] ss:$8 sps:$4 sm:$0xff] (!%p138_p2)   ;;  %vm556_vm5 = vcmask (!%p138_p2), 158720  }
   0x9   : > { %v851_v55 = vmul.u32.u64.low (!%p138_p2), 3435973837, %v455_v54  ;;  %v852_v56 = vmul.u32.u64.high 3435973837, %v455_v54, %v851_v55 }
   0xb   : > { %v462_v57 = vshrl.u32 (!%p138_p2), %v852_v56, 2 }
   0xd   : > { %s897_s13 = smov (!%p161_p3, %s616_s13), 1  ;;  %v463_v58 = vmul.u32 5, %v462_v57 }
   0xe   : > { %s651_s14 = sshll.u32 %s897_s13, 5  ;;  %s652_s10 = sshll.u32 %s897_s13, 4 }
   0xf   : > { %s793_s17 = scalar_lea.vmem %s890_s0, %s651_s14  ;;  %v464_v59 = vsub.s32 %v455_v54, %v463_v58  ;;  %s170_s15 = scalar_lea.vmem %s893_s3, %s652_s10 }
  0x10   : > { %v717_v0 = vld [vmem:[%s793_s17] sm:$0xff]   ;;  %v718_v1 = vld [vmem:[%s793_s17 + $0x8] sm:$0xff]   ;;  %v719_v2 = vld [vmem:[%s793_s17 + $0x10] sm:$0xff]  }
  0x11   : > { %281 = vrot.lane.b32.xlu0 %v717_v0, %s755_s18  ;;  %285 = vrot.lane.b32.xlu1 %v719_v2, %s755_s18  ;;  %v720_v3 = vld [vmem:[%s793_s17 + $0x18] sm:$0xff]   ;;  %v721_v4 = vld [vmem:[%s793_s17] sm:$0xff]   ;;  %vm467_vm1 = vcmp.ne.s32.totalorder %v464_v59, 0  ;;  %vm468_vm2 = vcmp.lt.s32.totalorder %v464_v59, 0  ;;  %v470_v62 = vadd.s32 5, %v464_v59 }
  0x12   : > { %v722_v5 = vld [vmem:[%s793_s17] sm:$0xff]   ;;  %v723_v6 = vld [vmem:[%s793_s17 + $0x8] sm:$0xff]   ;;  %v725_v8 = vld [vmem:[%s793_s17 + $0x10] sm:$0xff]  }
  0x13   : > { %v724_v7 = vld [vmem:[%s793_s17 + $0x8] sm:$0xff]   ;;  %v729_v9 = vld [vmem:[%s793_s17] sm:$0xff]   ;;  %v731_v11 = vld [vmem:[%s793_s17 + $0x10] sm:$0xff]  }
  0x14   : > { %v730_v10 = vld [vmem:[%s793_s17 + $0x8] sm:$0xff]   ;;  %205 = vst.msk [vmem:[#allocation2] sm:$0xff] %vm204_vm0, %v729_v9  ;;  %v732_v12 = vld [vmem:[%s793_s17 + $0x18] sm:$0xff]   ;;  %v726_v13 = vld [vmem:[%s793_s17 + $0x10] sm:$0xff]  }
  0x15   : > { %283 = vrot.lane.b32.xlu0 %v718_v1, %s755_s18  ;;  %287 = vrot.lane.b32.xlu1 %v720_v3, %s755_s18  ;;  %206 = vst.msk [vmem:[#allocation2 + $0x8] sm:$0xff] %vm204_vm0, %v730_v10  ;;  %207 = vst.msk [vmem:[#allocation2 + $0x10] sm:$0xff] %vm204_vm0, %v731_v11  ;;  %v727_v14 = vld [vmem:[%s793_s17 + $0x18] sm:$0xff]  }
  0x16   : > { %208 = vst.msk [vmem:[#allocation2 + $0x18] sm:$0xff] %vm204_vm0, %v732_v12  ;;  %v728_v15 = vld [vmem:[%s793_s17 + $0x18] sm:$0xff]   ;;  %vm469_vm3 = vmand %vm468_vm2, %vm467_vm1 }
  0x17   : > { %v471_v3 = vsel %vm469_vm3, %v470_v62, %v464_v59 }
  0x18   : > { %vm855_vm4 = vcmp.lt.s32.totalorder %v471_v3, 4 }
  0x19   : > { %325 = vrot.lane.b32.xlu0 %v721_v4, %s756_s19  ;;  %237 = vrot.lane.b32.xlu1 %v722_v5, %s757_s20 }
  0x1b   : > { %v345_v27 = vld [vmem:[#allocation2] sm:$0xff] }
  0x1c   : > { %v346_v31 = vld [vmem:[#allocation2 + $0x8] sm:$0xff]  ;;  %v347_v36 = vld [vmem:[#allocation2 + $0x10] sm:$0xff] }
  0x1d   : > { %327 = vrot.lane.b32.xlu0 %v723_v6, %s756_s19  ;;  %239 = vrot.lane.b32.xlu1 %v724_v7, %s757_s20  ;;  %v348_v40 = vld [vmem:[#allocation2 + $0x18] sm:$0xff] }
  0x21   : > { %329 = vrot.lane.b32.xlu0 %v725_v8, %s756_s19  ;;  %241 = vrot.lane.b32.xlu1 %v726_v13, %s757_s20 }
  0x25   : > { %331 = vrot.lane.b32.xlu0 %v727_v14, %s756_s19  ;;  %243 = vrot.lane.b32.xlu1 %v728_v15, %s757_s20 }
  0x29   : > { %367 = vperm.xlu0 %715, %v361_v18   ;;  %372 = vperm.xlu1 %716, %v362_v19  }
  0x2d   : > { %382 = vperm.xlu0 %715, %v364_v21   ;;  %377 = vperm.xlu1 %716, %v363_v22  }
  0x83   : > { %v282_v23 = vpop.permute.xlu0 %281  ;;  %v286_v24 = vpop.permute.xlu1 %285 }
  0x84   : > { %293 = vst.msk [vmem:[#allocation2 + $0x40] sm:$0xff] %vm204_vm0, %v282_v23  ;;  %295 = vst.msk [vmem:[#allocation2 + $0x50] sm:$0xff] %vm204_vm0, %v286_v24 }
  0x87   : > { %v284_v25 = vpop.permute.xlu0 %283  ;;  %v288_v26 = vpop.permute.xlu1 %287 }
  0x88   : > { %294 = vst.msk [vmem:[#allocation2 + $0x48] sm:$0xff] %vm204_vm0, %v284_v25  ;;  %296 = vst.msk [vmem:[#allocation2 + $0x58] sm:$0xff] %vm204_vm0, %v288_v26 }
  0x8b   : > { %v353_v28 = vld [vmem:[#allocation2 + $0x40] sm:$0xff]  ;;  %v326_v29 = vpop.permute.xlu0 %325  ;;  %v238_v30 = vpop.permute.xlu1 %237  ;;  %v355_v33 = vld [vmem:[#allocation2 + $0x50] sm:$0xff] }
  0x8c   : > { %657 = vmatprep.subr.bf16.mxu0 %v353_v28  ;;  %685 = vmatprep.subr.bf16.mxu1 %v353_v28  ;;  %337 = vst.msk [vmem:[#allocation2 + $0x60] sm:$0xff] %vm204_vm0, %v326_v29  ;;  %249 = vst.msk [vmem:[#allocation2 + $0x20] sm:$0xff] %vm204_vm0, %v238_v30 }
  0x8d   : > { %658 = vmatpush3.bf16.msra.mxu0 %v345_v27  ;;  %693 = vmatpush3.bf16.msra.mxu1 %v345_v27 }
  0x8f   : > { %v354_v32 = vld [vmem:[#allocation2 + $0x48] sm:$0xff]  ;;  %v328_v34 = vpop.permute.xlu0 %327  ;;  %v240_v35 = vpop.permute.xlu1 %239  ;;  %v356_v37 = vld [vmem:[#allocation2 + $0x58] sm:$0xff] }
  0x90   : > { %659 = vmatprep.subr.bf16.mxu0 %v354_v32  ;;  %686 = vmatprep.subr.bf16.mxu1 %v354_v32  ;;  %338 = vst.msk [vmem:[#allocation2 + $0x68] sm:$0xff] %vm204_vm0, %v328_v34  ;;  %250 = vst.msk [vmem:[#allocation2 + $0x28] sm:$0xff] %vm204_vm0, %v240_v35 }
  0x91   : > { %660 = vmatpush3.bf16.msra.mxu0 %v346_v31  ;;  %694 = vmatpush3.bf16.msra.mxu1 %v346_v31 }
  0x92   : > { %661 = vmatprep.subr.bf16.mxu0 %v355_v33  ;;  %687 = vmatprep.subr.bf16.mxu1 %v355_v33 }
  0x93   : > { %v330_v38 = vpop.permute.xlu0 %329  ;;  %v242_v39 = vpop.permute.xlu1 %241  ;;  %v357_v41 = vld [vmem:[#allocation2 + $0x60] sm:$0xff] }
  0x94   : > { %339 = vst.msk [vmem:[#allocation2 + $0x70] sm:$0xff] %vm204_vm0, %v330_v38  ;;  %251 = vst.msk [vmem:[#allocation2 + $0x30] sm:$0xff] %vm204_vm0, %v242_v39  ;;  %v349_v44 = vld [vmem:[#allocation2 + $0x20] sm:$0xff] }
  0x95   : > { %662 = vmatpush3.bf16.msra.mxu0 %v347_v36  ;;  %695 = vmatpush3.bf16.msra.mxu1 %v347_v36 }
  0x96   : > { %663 = vmatprep.subr.bf16.mxu0 %v356_v37  ;;  %688 = vmatprep.subr.bf16.mxu1 %v356_v37 }
  0x97   : > { %v332_v42 = vpop.permute.xlu0 %331  ;;  %v244_v43 = vpop.permute.xlu1 %243  ;;  %v358_v45 = vld [vmem:[#allocation2 + $0x68] sm:$0xff] }
  0x98   : > { %340 = vst.msk [vmem:[#allocation2 + $0x78] sm:$0xff] %vm204_vm0, %v332_v42  ;;  %252 = vst.msk [vmem:[#allocation2 + $0x38] sm:$0xff] %vm204_vm0, %v244_v43  ;;  %v350_v46 = vld [vmem:[#allocation2 + $0x28] sm:$0xff] }
  0x99   : > { %664 = vmatpush3.bf16.msra.mxu0 %v348_v40  ;;  %696 = vmatpush3.bf16.msra.mxu1 %v348_v40 }
  0x9a   : > { %665 = vmatprep.subr.bf16.mxu0 %v357_v41  ;;  %689 = vmatprep.subr.bf16.mxu1 %v357_v41 }
  0x9b   : > { %v359_v47 = vld [vmem:[#allocation2 + $0x70] sm:$0xff] }
  0x9c   : > { %v351_v48 = vld [vmem:[#allocation2 + $0x30] sm:$0xff] }
  0x9d   : > { %666 = vmatpush3.bf16.msra.mxu0 %v349_v44  ;;  %697 = vmatpush3.bf16.msra.mxu1 %v349_v44 }
  0x9e   : > { %667 = vmatprep.subr.bf16.mxu0 %v358_v45  ;;  %690 = vmatprep.subr.bf16.mxu1 %v358_v45 }
  0x9f   : > { %v360_v49 = vld [vmem:[#allocation2 + $0x78] sm:$0xff] }
  0xa0   : > { %v352_v50 = vld [vmem:[#allocation2 + $0x38] sm:$0xff] }
  0xa1   : > { %668 = vmatpush3.bf16.msra.mxu0 %v350_v46  ;;  %698 = vmatpush3.bf16.msra.mxu1 %v350_v46 }
  0xa2   : > { %669 = vmatprep.subr.bf16.mxu0 %v359_v47  ;;  %691 = vmatprep.subr.bf16.mxu1 %v359_v47 }
  0xa5   : > { %670 = vmatpush3.bf16.msra.mxu0 %v351_v48  ;;  %699 = vmatpush3.bf16.msra.mxu1 %v351_v48 }
  0xa6   : > { %671 = vmatprep.subr.bf16.mxu0 %v360_v49  ;;  %692 = vmatprep.subr.bf16.mxu1 %v360_v49 }
  0xa8   : > { %v368_v60 = vpop.permute.xlu0 %367  ;;  %v373_v61 = vpop.permute.xlu1 %372 }
  0xa9   : > { %672 = vmatpush3.bf16.msra.mxu0 %v352_v50  ;;  %700 = vmatpush3.bf16.msra.mxu1 %v352_v50 }
  0xac   : > { %438 = vmatmul.mubr.bf16.vlgmr.msra.gmra.mrb[0].mxu0 %v733_v51  ;;  %446 = vmatmul.mubr.bf16.vlgmr.msra.gmra.mrb[0].mxu1 %v736_v52  ;;  %v383_v63 = vpop.permute.xlu0 %382  ;;  %v378_v0 = vpop.permute.xlu1 %377 }
 0x17f   : > { %v673_v1 = vpop.f32.mrb[0].mxu0  ;;  %v679_v2 = vpop.f32.mrb[0].mxu1 }
 0x180   : > { %v674_v4 = vpop.f32.mrb[1].mxu0  ;;  %v680_v5 = vpop.f32.mrb[1].mxu1 }
 0x181   : > { %v675_v6 = vadd.f32 %v674_v4, %v673_v1  ;;  %v681_v7 = vadd.f32 %v680_v5, %v679_v2  ;;  %v676_v8 = vpop.f32.mrb[2].mxu0  ;;  %v682_v9 = vpop.f32.mrb[2].mxu1 }
 0x182   : > { %v677_v10 = vpop.f32.mrb[3].mxu0  ;;  %v683_v11 = vpop.f32.mrb[3].mxu1 }
 0x183   : > { %v440_v13 = vadd.f32 %v675_v6, %v368_v60  ;;  %v678_v14 = vadd.f32 %v677_v10, %v676_v8  ;;  %v684_v15 = vadd.f32 %v683_v11, %v682_v9  ;;  %v448_v18 = vadd.f32 %v681_v7, %v378_v0 }
 0x185   : > { %v443_v16 = vadd.f32 %v678_v14, %v373_v61  ;;  %v451_v17 = vadd.f32 %v684_v15, %v383_v63  ;;  %v475_v19 = vsel %vm855_vm4, %v440_v13, 0.0  ;;  %v477_v24 = vsel %vm855_vm4, %v448_v18, 0.0 }
 0x186   : > { %v479_v20 = vsel %vm204_vm0, %v475_v19, 0.0  ;;  %v485_v26 = vsel %vm204_vm0, %v477_v24, 0.0 }
 0x187   : > { %480 = vadd.xlane.f32.xlu1 %v479_v20  ;;  %v476_v21 = vsel %vm855_vm4, %v443_v16, 0.0  ;;  %v478_v22 = vsel %vm855_vm4, %v451_v17, 0.0 }
 0x188   : > { %v482_v23 = vsel %vm204_vm0, %v476_v21, 0.0  ;;  %v488_v25 = vsel %vm204_vm0, %v478_v22, 0.0 }
 0x189   : > { %483 = vadd.xlane.f32.xlu0 %v482_v23 }
 0x18b   : > { %489 = vadd.xlane.f32.xlu1 %v488_v25 }
 0x18d   : > { %486 = vadd.xlane.f32.xlu0 %v485_v26 }
 0x214   : > { %v481_v27 = vpop.xlane.xlu1 %480 }
 0x215   : > { %v492_v28 = vmul.f32 0.0625, %v481_v27 }
 0x216   : > { %v484_v29 = vpop.xlane.xlu0 %483 }
 0x217   : > { %v496_v30 = vsub.f32 %v440_v13, %v492_v28  ;;  %v493_v31 = vmul.f32 0.0625, %v484_v29 }
 0x218   : > { %v490_v32 = vpop.xlane.xlu1 %489 }
 0x219   : > { %v497_v33 = vsub.f32 %v443_v16, %v493_v31  ;;  %v495_v34 = vmul.f32 0.0625, %v490_v32  ;;  %v500_v35 = vsel %vm855_vm4, %v496_v30, 0.0 }
 0x21a   : > { %v487_v36 = vpop.xlane.xlu0 %486  ;;  %v504_v37 = vmul.f32 %v500_v35, %v500_v35 }
 0x21b   : > { %v499_v38 = vsub.f32 %v451_v17, %v495_v34  ;;  %v494_v39 = vmul.f32 0.0625, %v487_v36  ;;  %v501_v40 = vsel %vm855_vm4, %v497_v33, 0.0 }
 0x21c   : > { %v508_v41 = vsel %vm204_vm0, %v504_v37, 0.0  ;;  %v505_v42 = vmul.f32 %v501_v40, %v501_v40 }
 0x21d   : > { %v498_v43 = vsub.f32 %v448_v18, %v494_v39  ;;  %509 = vadd.xlane.f32.xlu0 %v508_v41  ;;  %v503_v44 = vsel %vm855_vm4, %v499_v38, 0.0 }
 0x21e   : > { %v511_v45 = vsel %vm204_vm0, %v505_v42, 0.0  ;;  %v507_v46 = vmul.f32 %v503_v44, %v503_v44 }
 0x21f   : > { %512 = vadd.xlane.f32.xlu1 %v511_v45  ;;  %v502_v47 = vsel %vm855_vm4, %v498_v43, 0.0 }
 0x220   : > { %v506_v48 = vmul.f32 %v502_v47, %v502_v47  ;;  %v517_v50 = vsel %vm204_vm0, %v507_v46, 0.0 }
 0x222   : > { %v514_v49 = vsel %vm204_vm0, %v506_v48, 0.0 }
 0x223   : > { %515 = vadd.xlane.f32.xlu0 %v514_v49  ;;  %518 = vadd.xlane.f32.xlu1 %v517_v50 }
 0x2aa   : > { %v510_v51 = vpop.xlane.xlu0 %509 }
 0x2ab   : > { %v520_v52 = vmul.f32 0.0625, %v510_v51 }
 0x2ac   : > { %v513_v53 = vpop.xlane.xlu1 %512 }
 0x2ad   : > { %v524_v54 = vadd.f32 1e-05, %v520_v52  ;;  %v521_v55 = vmul.f32 0.0625, %v513_v53 }
 0x2af   : > { %739 = vrsqrt.f32 %v524_v54  ;;  %v525_v56 = vadd.f32 1e-05, %v521_v55 }
 0x2b0   : > { %v516_v57 = vpop.xlane.xlu0 %515  ;;  %v519_v58 = vpop.xlane.xlu1 %518 }
 0x2b1   : > { %741 = vrsqrt.f32 %v525_v56  ;;  %v522_v59 = vmul.f32 0.0625, %v516_v57  ;;  %v523_v60 = vmul.f32 0.0625, %v519_v58 }
 0x2b3   : > { %v526_v61 = vadd.f32 1e-05, %v522_v59  ;;  %v527_v62 = vadd.f32 1e-05, %v523_v60 }
 0x2b5   : > { %743 = vrsqrt.f32 %v526_v61 }
 0x2b6   : > { %745 = vrsqrt.f32 %v527_v62 }
 0x2b9   : > { %v740_v63 = vpop.eup %739 }
 0x2ba   : > { %v532_v0 = vmul.f32 %v740_v63, %v496_v30 }
 0x2bb   : > { %v742_v1 = vpop.eup %741 }
 0x2bc   : > { %v536_v2 = vmax.f32 %v532_v0, 0.0  ;;  %v533_v3 = vmul.f32 %v742_v1, %v497_v33 }
 0x2be   : > { %v653_v4 = vpack.c.bf16 %v536_v2, %v536_v2  ;;  %v537_v5 = vmax.f32 %v533_v3, 0.0 }
 0x2bf   : > { %v744_v6 = vpop.eup %743 }
 0x2c0   : > { %v746_v7 = vpop.eup %745  ;;  %557 = vst.msk [vmem:[%s170_s15] sm:$0xf] %vm556_vm5, %v653_v4  ;;  %v654_v8 = vpack.c.bf16 %v537_v5, %v537_v5  ;;  %v534_v9 = vmul.f32 %v744_v6, %v498_v43 }
 0x2c1   : > { %v535_v10 = vmul.f32 %v746_v7, %v499_v38 }
 0x2c2   : > { %558 = vst.msk [vmem:[%s170_s15 + $0x4] sm:$0xf] %vm556_vm5, %v654_v8  ;;  %v538_v11 = vmax.f32 %v534_v9, 0.0 }
 0x2c3   : > { %v539_v12 = vmax.f32 %v535_v10, 0.0 }
 0x2c4   : > { %v655_v13 = vpack.c.bf16 %v538_v11, %v538_v11 }
 0x2c5   : > { %v656_v14 = vpack.c.bf16 %v539_v12, %v539_v12 }
 0x2c6   : > { %559 = vst.msk [vmem:[%s170_s15 + $0x8] sm:$0xf] %vm556_vm5, %v655_v13 }
 0x2c7   : > { %560 = vst.msk [vmem:[%s170_s15 + $0xc] sm:$0xf] %vm556_vm5, %v656_v14 }
 0x2c8 PF: > { %s13_s12 = sadd.s32 1, %s753_s12  }
 0x2c9   : > { %p10_p4 = scmp.ge.s32.totalorder %s13_s12, 4  }
 0x2cb   :  { %12 = sbr.rel (!%p10_p4) target bundleno = 1 (0x1), region = 62 }

// kernel: content_encoder_forward.8
= control target key start
LH: loop header
LB: loop body
LE: loop exit
PB: predicated region body
PF: predicated region fallthrough
CT: control target
= control target key end

     0   :  { %s1827_s30 = smov 0   ;;  %s2165_s0 = inlined_call_operand.vmem [shape: bf16[2,32,38], index: 0, kind: input, shape index: {}]   ;;  %s2166_s1 = inlined_call_operand.vmem [shape: bf16[32,288], index: 1, kind: input, shape index: {}]   ;;  %s2167_s2 = inlined_call_operand.vmem [shape: f32[32,1], index: 2, kind: input, shape index: {}]   ;;  %s2168_s3 = inlined_call_operand.vmem [shape: f32[32,1], index: 3, kind: input, shape index: {}]   ;;  %s2169_s4 = inlined_call_operand.vmem [shape: f32[32,1], index: 4, kind: input, shape index: {}]   ;;  %s2170_s5 = inlined_call_operand.vmem [shape: bf16[32,288], index: 5, kind: input, shape index: {}]   ;;  %s2171_s6 = inlined_call_operand.vmem [shape: f32[32,1], index: 6, kind: input, shape index: {}]   ;;  %s2172_s7 = inlined_call_operand.vmem [shape: f32[32,1], index: 7, kind: input, shape index: {}]   ;;  %s2173_s8 = inlined_call_operand.vmem [shape: f32[32,1], index: 8, kind: input, shape index: {}]   ;;  %s2174_s9 = inlined_call_operand.vmem [shape: bf16[2,32,24], index: 9, kind: output, shape index: {}]  }
   0x1 LB: > { %s1533_s10 = sadd.s32 4294967295, %s1763_s30   ;;  %p1537_p0 = scmp.ge.s32.totalorder %s1763_s30, 1  ;;  %s1763_s30 = sphi %s1827_s30, %s19_s30  }
   0x2   : > { %p287_p1 = scmp.lt.s32.totalorder %s1763_s30, 3 }
   0x4   : > { %p288_p2 = pnand %p1537_p0, %p287_p1 }
   0x5   : > { %p323_p3 = scmp.lt.s32.totalorder (!%p288_p2), %s1533_s10, 1  ;;  %s1765_s15 = smov (!%p288_p2), 121   ;;  %vm369_vm0 = vcmask (!%p288_p2), 195584   ;;  %v1731_v17 = vld [vmem:[%s2166_s1 + $0x4] ss:$12 sps:$4 sm:$0xff] (!%p288_p2)   ;;  %vm628_vm1 = vcmask (!%p288_p2), 261120   ;;  %v334_v63 = vlaneseq (!%p288_p2) }
   0x6   : > { %291 = sbr.rel (%p288_p2) target bundleno = 2877 (0xb3d), region = 56  ;;  %s1766_s16 = smov (!%p288_p2), 120   ;;  %667 = vmatprep.mubr.bf16.mxu0 (!%p288_p2), %v1731_v17  ;;  %v1732_v19 = vld [vmem:[%s2166_s1 + $0x8] ss:$12 sps:$4 sm:$0xff] (!%p288_p2)   ;;  %v574_v20 = vld [vmem:[%s2167_s2] sm:$0xff] (!%p288_p2)  ;;  %v1773_v22 = vmov (!%p288_p2), 0  }
   0x7   : > { %s1767_s17 = smov (!%p288_p2), 127   ;;  %s1768_s18 = smov (!%p288_p2), 116   ;;  %1665 = vmatprep.mubr.msk.bf16.mxu1 (!%p288_p2), %vm628_vm1, %v1732_v19  ;;  %v575_v21 = vld [vmem:[%s2167_s2 + $0x8] sm:$0xff] (!%p288_p2)  ;;  %1700 = vset.pattern.permute.xlu1 (!%p288_p2), %v1773_v22  ;;  %v576_v23 = vld [vmem:[%s2167_s2 + $0x10] sm:$0xff] (!%p288_p2)  ;;  %v577_v24 = vld [vmem:[%s2167_s2 + $0x18] sm:$0xff] (!%p288_p2)  ;;  %vm880_vm8 = vcmask (!%p288_p2), 252984  }
   0x8   : > { %s1769_s19 = smov (!%p288_p2), 126   ;;  %s1770_s20 = smov (!%p288_p2), 115   ;;  %1699 = vset.pattern.permute.xlu0 (!%p288_p2), %v1773_v22  ;;  %v1729_v58 = vld [vmem:[%s2166_s1] ss:$12 sps:$4 sm:$0xff] (!%p288_p2)   ;;  %v1734_v60 = vld [vmem:[%s2166_s1 + $0x1c] ss:$12 sps:$4 sm:$0xff] (!%p288_p2)  }
   0x9   : > { %s1771_s21 = smov (!%p288_p2), 122   ;;  %s1772_s24 = smov (!%p288_p2), 114   ;;  %v1733_v61 = vld [vmem:[%s2166_s1 + $0x20] ss:$12 sps:$4 sm:$0xff] (!%p288_p2)   ;;  %v1736_v62 = vld [vmem:[%s2166_s1 + $0x18] ss:$12 sps:$4 sm:$0xff] (!%p288_p2)  }
   0xa   : > { %vm893_vm9 = vcmask (!%p288_p2), 56368   ;;  %s1775_s13 = smov (!%p288_p2), 2   ;;  %vm906_vm10 = vcmask (!%p288_p2), 97368   ;;  %vm919_vm11 = vcmask (!%p288_p2), 105568   ;;  %vm932_vm12 = vcmask (!%p288_p2), 146568   ;;  %s1776_s22 = smov (!%p288_p2), 12  }
   0xb   : > { %vm945_vm13 = vcmask (!%p288_p2), 154768   ;;  %vm958_vm14 = vcmask (!%p288_p2), 195768   ;;  %vm971_vm15 = vcmask (!%p288_p2), 203968   ;;  %v1301_v19 = vld [vmem:[%s2172_s7 + $0x8] sm:$0xff] (!%p288_p2) }
   0xd   : > { %s2180_s10 = smov (!%p323_p3, %s1533_s10), 1 }
   0xe   : > { %s2175_s11 = sshll.u32 %s2180_s10, 4 }
   0xf   : > { %s1843_s14 = scalar_lea.vmem %s2165_s0, %s2175_s11  ;;  %s1774_s11 = smov 7  }
  0x10   : > { %v1711_v0 = vld [vmem:[%s1843_s14] sm:$0xff]   ;;  %v1713_v2 = vld [vmem:[%s1843_s14 + $0x8] sm:$0xff]  }
  0x11   : > { %v1712_v1 = vld [vmem:[%s1843_s14] sm:$0xff]   ;;  %452 = vrot.lane.b32.xlu0 %v1711_v0, %s1765_s15  ;;  %v1714_v4 = vld [vmem:[%s1843_s14 + $0x8] sm:$0xff]   ;;  %v335_v0 = vand.u32 127, %v334_v63 }
  0x12   : > { %474 = vrot.lane.b32.xlu1 %v1712_v1, %s1766_s16  ;;  %v1715_v3 = vld [vmem:[%s1843_s14] sm:$0xff]   ;;  %v1717_v5 = vld [vmem:[%s1843_s14 + $0x8] sm:$0xff]  }
  0x13   : > { %v1716_v6 = vld [vmem:[%s1843_s14] sm:$0xff]   ;;  %v1718_v8 = vld [vmem:[%s1843_s14 + $0x8] sm:$0xff]  }
  0x14   : > { %v1719_v7 = vld [vmem:[%s1843_s14] sm:$0xff]   ;;  %v1721_v9 = vld [vmem:[%s1843_s14 + $0x8] sm:$0xff]  }
  0x15   : > { %454 = vrot.lane.b32.xlu0 %v1713_v2, %s1765_s15  ;;  %v1727_v10 = vld [vmem:[%s1843_s14] sm:$0xff]   ;;  %v1728_v11 = vld [vmem:[%s1843_s14 + $0x8] sm:$0xff]   ;;  %v1931_v1 = vmul.u32.u64.low 2863311531, %v335_v0  ;;  %v1932_v2 = vmul.u32.u64.high 2863311531, %v335_v0, %v1931_v1 }
  0x16   : > { %386 = vrot.lane.b32.xlu1 %v1715_v3, %s1767_s17  ;;  %v1720_v12 = vld [vmem:[%s1843_s14] sm:$0xff]   ;;  %370 = vst.msk [vmem:[#allocation2] sm:$0xff] %vm369_vm0, %v1727_v10  ;;  %371 = vst.msk [vmem:[#allocation2 + $0x8] sm:$0xff] %vm369_vm0, %v1728_v11  ;;  %v1722_v14 = vld [vmem:[%s1843_s14 + $0x8] sm:$0xff]  }
  0x17   : > { %v1723_v13 = vld [vmem:[%s1843_s14] sm:$0xff]   ;;  %v1725_v15 = vld [vmem:[%s1843_s14 + $0x8] sm:$0xff]   ;;  %v342_v3 = vshrl.u32 %v1932_v2, 2 }
  0x18   : > { %v1724_v16 = vld [vmem:[%s1843_s14] sm:$0xff]   ;;  %v1726_v18 = vld [vmem:[%s1843_s14 + $0x8] sm:$0xff]  }
  0x19   : > { %476 = vrot.lane.b32.xlu0 %v1714_v4, %s1766_s16  ;;  %v343_v4 = vmul.u32 6, %v342_v3 }
  0x1a   : > { %388 = vrot.lane.b32.xlu1 %v1717_v5, %s1767_s17 }
  0x1b   : > { %v344_v5 = vsub.s32 %v335_v0, %v343_v4 }
  0x1d   : > { %496 = vrot.lane.b32.xlu0 %v1716_v6, %s1768_s18  ;;  %v556_v29 = vld [vmem:[#allocation2] sm:$0xff]  ;;  %v557_v33 = vld [vmem:[#allocation2 + $0x8] sm:$0xff]  ;;  %vm347_vm2 = vcmp.ne.s32.totalorder %v344_v5, 0  ;;  %vm348_vm3 = vcmp.lt.s32.totalorder %v344_v5, 0  ;;  %v350_v6 = vadd.s32 6, %v344_v5 }
  0x1e   : > { %408 = vrot.lane.b32.xlu1 %v1719_v7, %s1769_s19  ;;  %vm349_vm4 = vmand %vm348_vm3, %vm347_vm2  ;;  %vm984_vm2 = vcmask 244968   ;;  %vm997_vm3 = vcmask 48128  }
  0x21   : > { %498 = vrot.lane.b32.xlu0 %v1718_v8, %s1768_s18 }
  0x22   : > { %410 = vrot.lane.b32.xlu1 %v1721_v9, %s1769_s19 }
  0x25   : > { %518 = vrot.lane.b32.xlu0 %v1720_v12, %s1770_s20  ;;  %v351_v12 = vsel %vm349_vm4, %v350_v6, %v344_v5  ;;  %vm1010_vm4 = vcmask 294128  }
  0x26   : > { %430 = vrot.lane.b32.xlu1 %v1723_v13, %s1771_s21  ;;  %vm1935_vm5 = vcmp.lt.s32.totalorder %v351_v12, 4  ;;  %v734_v12 = vld [vmem:[%s2168_s3 + $0x8] sm:$0xff] }
  0x29   : > { %520 = vrot.lane.b32.xlu0 %v1722_v14, %s1770_s20 }
  0x2a   : > { %432 = vrot.lane.b32.xlu1 %v1725_v15, %s1771_s21 }
  0x2d   : > { %540 = vrot.lane.b32.xlu0 %v1724_v16, %s1772_s24 }
  0x2e   : > { %542 = vrot.lane.b32.xlu1 %v1726_v18, %s1772_s24 }
  0x31   : > { %580 = vperm.xlu0 %1699, %v574_v20  }
  0x32   : > { %585 = vperm.xlu1 %1700, %v575_v21  }
  0x35   : > { %595 = vperm.xlu0 %1699, %v577_v24  }
  0x36   : > { %590 = vperm.xlu1 %1700, %v576_v23  }
  0x83   : > { %v453_v25 = vpop.permute.xlu0 %452 }
  0x84   : > { %458 = vst.msk [vmem:[#allocation2 + $0x40] sm:$0xff] %vm369_vm0, %v453_v25  ;;  %v475_v26 = vpop.permute.xlu1 %474 }
  0x85   : > { %480 = vst.msk [vmem:[#allocation2 + $0x50] sm:$0xff] %vm369_vm0, %v475_v26 }
  0x87   : > { %v455_v27 = vpop.permute.xlu0 %454 }
  0x88   : > { %459 = vst.msk [vmem:[#allocation2 + $0x48] sm:$0xff] %vm369_vm0, %v455_v27  ;;  %v387_v28 = vpop.permute.xlu1 %386 }
  0x89   : > { %392 = vst.msk [vmem:[#allocation2 + $0x10] sm:$0xff] %vm369_vm0, %v387_v28 }
  0x8b   : > { %v477_v30 = vpop.permute.xlu0 %476  ;;  %v564_v31 = vld [vmem:[#allocation2 + $0x40] sm:$0xff] }
  0x8c   : > { %481 = vst.msk [vmem:[#allocation2 + $0x58] sm:$0xff] %vm369_vm0, %v477_v30  ;;  %1597 = vmatprep.subr.bf16.mxu0 %v564_v31  ;;  %v389_v32 = vpop.permute.xlu1 %388  ;;  %v566_v36 = vld [vmem:[#allocation2 + $0x50] sm:$0xff] }
  0x8d   : > { %1598 = vmatpush3.bf16.msra.mxu0 %v556_v29  ;;  %393 = vst.msk [vmem:[#allocation2 + $0x18] sm:$0xff] %vm369_vm0, %v389_v32 }
  0x8f   : > { %v497_v34 = vpop.permute.xlu0 %496  ;;  %v565_v35 = vld [vmem:[#allocation2 + $0x48] sm:$0xff] }
  0x90   : > { %502 = vst.msk [vmem:[#allocation2 + $0x60] sm:$0xff] %vm369_vm0, %v497_v34  ;;  %1599 = vmatprep.subr.bf16.mxu0 %v565_v35  ;;  %v409_v37 = vpop.permute.xlu1 %408  ;;  %v558_v38 = vld [vmem:[#allocation2 + $0x10] sm:$0xff] }
  0x91   : > { %1600 = vmatpush3.bf16.msra.mxu0 %v557_v33  ;;  %414 = vst.msk [vmem:[#allocation2 + $0x20] sm:$0xff] %vm369_vm0, %v409_v37 }
  0x92   : > { %1601 = vmatprep.subr.bf16.mxu0 %v566_v36 }
  0x93   : > { %v499_v39 = vpop.permute.xlu0 %498  ;;  %v567_v40 = vld [vmem:[#allocation2 + $0x58] sm:$0xff] }
  0x94   : > { %503 = vst.msk [vmem:[#allocation2 + $0x68] sm:$0xff] %vm369_vm0, %v499_v39  ;;  %v411_v41 = vpop.permute.xlu1 %410  ;;  %v559_v42 = vld [vmem:[#allocation2 + $0x18] sm:$0xff] }
  0x95   : > { %1602 = vmatpush3.bf16.msra.mxu0 %v558_v38  ;;  %415 = vst.msk [vmem:[#allocation2 + $0x28] sm:$0xff] %vm369_vm0, %v411_v41 }
  0x96   : > { %1603 = vmatprep.subr.bf16.mxu0 %v567_v40 }
  0x97   : > { %v519_v43 = vpop.permute.xlu0 %518  ;;  %v568_v44 = vld [vmem:[#allocation2 + $0x60] sm:$0xff] }
  0x98   : > { %524 = vst.msk [vmem:[#allocation2 + $0x70] sm:$0xff] %vm369_vm0, %v519_v43  ;;  %v431_v45 = vpop.permute.xlu1 %430  ;;  %v560_v46 = vld [vmem:[#allocation2 + $0x20] sm:$0xff] }
  0x99   : > { %1604 = vmatpush3.bf16.msra.mxu0 %v559_v42  ;;  %436 = vst.msk [vmem:[#allocation2 + $0x30] sm:$0xff] %vm369_vm0, %v431_v45 }
  0x9a   : > { %1605 = vmatprep.subr.bf16.mxu0 %v568_v44 }
  0x9b   : > { %v521_v47 = vpop.permute.xlu0 %520  ;;  %v569_v48 = vld [vmem:[#allocation2 + $0x68] sm:$0xff] }
  0x9c   : > { %525 = vst.msk [vmem:[#allocation2 + $0x78] sm:$0xff] %vm369_vm0, %v521_v47  ;;  %v433_v49 = vpop.permute.xlu1 %432  ;;  %v561_v50 = vld [vmem:[#allocation2 + $0x28] sm:$0xff] }
  0x9d   : > { %1606 = vmatpush3.bf16.msra.mxu0 %v560_v46  ;;  %437 = vst.msk [vmem:[#allocation2 + $0x38] sm:$0xff] %vm369_vm0, %v433_v49 }
  0x9e   : > { %1607 = vmatprep.subr.bf16.mxu0 %v569_v48 }
  0x9f   : > { %v541_v51 = vpop.permute.xlu0 %540  ;;  %v570_v52 = vld [vmem:[#allocation2 + $0x70] sm:$0xff] }
  0xa0   : > { %546 = vst.msk [vmem:[#allocation2 + $0x80] sm:$0xff] %vm369_vm0, %v541_v51  ;;  %v543_v53 = vpop.permute.xlu1 %542  ;;  %v562_v54 = vld [vmem:[#allocation2 + $0x30] sm:$0xff] }
  0xa1   : > { %1608 = vmatpush3.bf16.msra.mxu0 %v561_v50  ;;  %547 = vst.msk [vmem:[#allocation2 + $0x88] sm:$0xff] %vm369_vm0, %v543_v53 }
  0xa2   : > { %1609 = vmatprep.subr.bf16.mxu0 %v570_v52 }
  0xa3   : > { %v571_v55 = vld [vmem:[#allocation2 + $0x78] sm:$0xff] }
  0xa4   : > { %v563_v56 = vld [vmem:[#allocation2 + $0x38] sm:$0xff] }
  0xa5   : > { %1610 = vmatpush3.bf16.msra.mxu0 %v562_v54 }
  0xa6   : > { %1611 = vmatprep.subr.bf16.mxu0 %v571_v55 }
  0xa7   : > { %v572_v57 = vld [vmem:[#allocation2 + $0x80] sm:$0xff] }
  0xa8   : > { %1661 = vmatprep.subr.bf16.mxu1 %v572_v57  ;;  %v573_v59 = vld [vmem:[#allocation2 + $0x88] sm:$0xff] }
  0xa9   : > { %1612 = vmatpush3.bf16.msra.mxu0 %v563_v56  ;;  %1662 = vmatpush3.bf16.msra.mxu1 %v572_v57 }
  0xaa   : > { %1663 = vmatprep.subr.bf16.mxu1 %v573_v59 }
  0xac   : > { %668 = vmatmul.mubr.bf16.vlgmr.msra.gmra.mrb[0].mxu0 %v1729_v58 }
  0xad   : > { %1664 = vmatpush3.bf16.msra.mxu1 %v573_v59  ;;  %675 = vmatprep.mubr.bf16.mxu0 %v1734_v60 }
  0xb0   : > { %1666 = vmatmul.mubr.msk.bf16.vlgmr.msra.gmra.mrb[0].mxu1 %vm628_vm1, %v1733_v61  ;;  %v581_v9 = vpop.permute.xlu0 %580 }
  0xb1   : > { %v586_v17 = vpop.permute.xlu1 %585 }
  0xb4   : > { %676 = vmatmul.mubr.bf16.gmra.mrb[4].mxu0 %v1736_v62  ;;  %v596_v38 = vpop.permute.xlu0 %595 }
  0xb5   : > { %v591_v33 = vpop.permute.xlu1 %590 }
 0x17f   : > { %v1613_v7 = vpop.f32.mrb[0].mxu0 }
 0x180   : > { %v1614_v8 = vpop.f32.mrb[1].mxu0 }
 0x181   : > { %v1615_v10 = vadd.f32 %v1614_v8, %v1613_v7  ;;  %v1616_v11 = vpop.f32.mrb[2].mxu0 }
 0x182   : > { %v1617_v13 = vpop.f32.mrb[3].mxu0 }
 0x183   : > { %v670_v14 = vadd.f32 %v1615_v10, %v581_v9  ;;  %v1618_v15 = vadd.f32 %v1617_v13, %v1616_v11  ;;  %v1667_v16 = vpop.f32.mrb[0].mxu1  ;;  %v737_v13 = vld [vmem:[%s2169_s4] sm:$0xff] }
 0x184   : > { %v718_v18 = vpop.f32.mrb[1].mxu1 }
 0x185   : > { %v719_v20 = vadd.f32 %v718_v18, %v670_v14  ;;  %v1668_v21 = vpop.f32.mrb[2].mxu1  ;;  %v673_v23 = vadd.f32 %v1618_v15, %v586_v17  ;;  %v733_v14 = vld [vmem:[%s2168_s3] sm:$0xff]  ;;  %v735_v15 = vld [vmem:[%s2168_s3 + $0x10] sm:$0xff]  ;;  %v736_v18 = vld [vmem:[%s2168_s3 + $0x18] sm:$0xff] }
 0x186   : > { %v721_v24 = vpop.f32.mrb[3].mxu1  ;;  %v739_v17 = vld [vmem:[%s2169_s4 + $0x10] sm:$0xff] }
 0x187   : > { %v722_v25 = vadd.f32 %v721_v24, %v673_v23  ;;  %v1619_v26 = vpop.f32.mrb[4].mxu0  ;;  %v743_v27 = vsel %vm1935_vm5, %v719_v20, 0.0 }
 0x188   : > { %v1620_v28 = vpop.f32.mrb[5].mxu0  ;;  %v747_v29 = vsel %vm369_vm0, %v743_v27, 0.0 }
 0x189   : > { %v1621_v30 = vadd.f32 %v1620_v28, %v1619_v26  ;;  %v1622_v31 = vpop.f32.mrb[6].mxu0  ;;  %748 = vadd.xlane.f32.xlu1 %v747_v29  ;;  %v744_v32 = vsel %vm1935_vm5, %v722_v25, 0.0 }
 0x18a   : > { %v1623_v34 = vpop.f32.mrb[7].mxu0  ;;  %v750_v35 = vsel %vm369_vm0, %v744_v32, 0.0 }
 0x18b   : > { %v678_v36 = vadd.f32 %v1621_v30, %v591_v33  ;;  %v1624_v37 = vadd.f32 %v1623_v34, %v1622_v31  ;;  %751 = vadd.xlane.f32.xlu0 %v750_v35 }
 0x18d   : > { %v681_v39 = vadd.f32 %v1624_v37, %v596_v38  ;;  %v727_v40 = vadd.f32 %v1667_v16, %v678_v36  ;;  %v738_v16 = vld [vmem:[%s2169_s4 + $0x8] sm:$0xff] }
 0x18f   : > { %v745_v41 = vsel %vm1935_vm5, %v727_v40, 0.0  ;;  %v730_v42 = vadd.f32 %v1668_v21, %v681_v39 }
 0x190   : > { %v753_v43 = vsel %vm369_vm0, %v745_v41, 0.0 }
 0x191   : > { %754 = vadd.xlane.f32.xlu0 %v753_v43  ;;  %v746_v44 = vsel %vm1935_vm5, %v730_v42, 0.0 }
 0x192   : > { %v756_v45 = vsel %vm369_vm0, %v746_v44, 0.0 }
 0x193   : > { %757 = vadd.xlane.f32.xlu1 %v756_v45 }
 0x216   : > { %v749_v47 = vpop.xlane.xlu1 %748 }
 0x218   : > { %v752_v46 = vpop.xlane.xlu0 %751 }
 0x219   : > { %v759_v48 = vadd.f32 %v752_v46, %v749_v47 }
 0x21e   : > { %v755_v49 = vpop.xlane.xlu0 %754 }
 0x21f   : > { %v760_v50 = vadd.f32 %v759_v48, %v755_v49 }
 0x220   : > { %v758_v51 = vpop.xlane.xlu1 %757 }
 0x221   : > { %v761_v52 = vadd.f32 %v760_v50, %v758_v51 }
 0x223   : > { %v762_v53 = vrot.slane %v761_v52, 4 }
 0x225   : > { %v763_v54 = vadd.f32 %v762_v53, %v761_v52 }
 0x227   : > { %v764_v55 = vrot.slane %v763_v54, 2 }
 0x229   : > { %v765_v56 = vadd.f32 %v764_v55, %v763_v54 }
 0x22b   : > { %v766_v57 = vrot.slane %v765_v56, 1 }
 0x22d   : > { %v767_v58 = vadd.f32 %v766_v57, %v765_v56 }
 0x22f   : > { %v769_v59 = vmul.f32 0.001953125, %v767_v58 }
 0x231   : > { %v1951_v60 = vsub.f32 %v722_v25, %v769_v59  ;;  %v1953_v61 = vsub.f32 %v719_v20, %v769_v59  ;;  %v1955_v62 = vsub.f32 %v730_v42, %v769_v59  ;;  %v1957_v63 = vsub.f32 %v727_v40, %v769_v59  ;;  %v740_v20 = vld [vmem:[%s2169_s4 + $0x18] sm:$0xff] }
 0x233   : > { %v775_v0 = vsel %vm1935_vm5, %v1951_v60, 0.0  ;;  %v774_v1 = vsel %vm1935_vm5, %v1953_v61, 0.0  ;;  %v777_v2 = vsel %vm1935_vm5, %v1955_v62, 0.0  ;;  %v776_v3 = vsel %vm1935_vm5, %v1957_v63, 0.0 }
 0x234   : > { %v779_v4 = vmul.f32 %v775_v0, %v775_v0  ;;  %v778_v5 = vmul.f32 %v774_v1, %v774_v1  ;;  %v781_v8 = vmul.f32 %v777_v2, %v777_v2  ;;  %v780_v9 = vmul.f32 %v776_v3, %v776_v3 }
 0x236   : > { %v785_v6 = vsel %vm369_vm0, %v779_v4, 0.0  ;;  %v782_v7 = vsel %vm369_vm0, %v778_v5, 0.0  ;;  %v791_v10 = vsel %vm369_vm0, %v781_v8, 0.0  ;;  %v788_v11 = vsel %vm369_vm0, %v780_v9, 0.0 }
 0x237   : > { %786 = vadd.xlane.f32.xlu1 %v785_v6  ;;  %783 = vadd.xlane.f32.xlu0 %v782_v7 }
 0x23b   : > { %792 = vadd.xlane.f32.xlu1 %v791_v10  ;;  %789 = vadd.xlane.f32.xlu0 %v788_v11 }
 0x24c   : > { %825 = vperm.xlu1 %1700, %v734_v12  }
 0x250   : > { %844 = vperm.xlu1 %1700, %v737_v13  }
 0x251   : > { %820 = vperm.xlu0 %1699, %v733_v14  }
 0x254   : > { %830 = vperm.xlu1 %1700, %v735_v15  }
 0x255   : > { %849 = vperm.xlu0 %1699, %v738_v16  }
 0x258   : > { %854 = vperm.xlu1 %1700, %v739_v17  }
 0x259   : > { %835 = vperm.xlu0 %1699, %v736_v18  }
 0x25d   : > { %859 = vperm.xlu0 %1699, %v740_v20  }
 0x2c4   : > { %v787_v21 = vpop.xlane.xlu1 %786  ;;  %v784_v23 = vpop.xlane.xlu0 %783 }
 0x2c5   : > { %v794_v24 = vadd.f32 %v787_v21, %v784_v23 }
 0x2c8   : > { %v790_v25 = vpop.xlane.xlu0 %789  ;;  %v793_v27 = vpop.xlane.xlu1 %792 }
 0x2c9   : > { %v795_v26 = vadd.f32 %v794_v24, %v790_v25 }
 0x2cb   : > { %v796_v28 = vadd.f32 %v795_v26, %v793_v27 }
 0x2cc   : > { %v826_v40 = vpop.permute.xlu1 %825 }
 0x2cd   : > { %v797_v29 = vrot.slane %v796_v28, 4 }
 0x2cf   : > { %v798_v30 = vadd.f32 %v797_v29, %v796_v28 }
 0x2d0   : > { %v821_v41 = vpop.permute.xlu0 %820  ;;  %v845_v44 = vpop.permute.xlu1 %844 }
 0x2d1   : > { %v799_v31 = vrot.slane %v798_v30, 2 }
 0x2d3   : > { %v800_v32 = vadd.f32 %v799_v31, %v798_v30 }
 0x2d4   : > { %v850_v45 = vpop.permute.xlu0 %849  ;;  %v831_v46 = vpop.permute.xlu1 %830 }
 0x2d5   : > { %v801_v33 = vrot.slane %v800_v32, 1 }
 0x2d7   : > { %v802_v34 = vadd.f32 %v801_v33, %v800_v32 }
 0x2d8   : > { %v836_v47 = vpop.permute.xlu0 %835  ;;  %v855_v57 = vpop.permute.xlu1 %854 }
 0x2d9   : > { %v804_v35 = vmul.f32 0.0019569471, %v802_v34 }
 0x2db   : > { %1745 = vrsqrt.f32 %v804_v35  ;;  %vm807_vm6 = vcmp.eq.f32.partialorder %v804_v35, inf  ;;  %v810_v38 = vand.u32 2147483648, %v804_v35  ;;  %vm809_vm7 = vcmp.eq.f32.partialorder %v804_v35, 0.0 }
 0x2dc   : > { %v860_v58 = vpop.permute.xlu0 %859 }
 0x2e5   : > { %v1746_v36 = vpop.eup %1745 }
 0x2e6   : > { %v806_v37 = vmul.f32 %v1746_v36, %v804_v35 }
 0x2e8   : > { %v808_v39 = vsel %vm807_vm6, %v804_v35, %v806_v37  ;;  %vm1013_vm6 = vcmask 310560  }
 0x2e9   : > { %v811_v42 = vsel %vm809_vm7, %v810_v38, %v808_v39 }
 0x2ea   : > { %v812_v43 = vadd.f32 1e-05, %v811_v42 }
 0x2ec   : > { %1747 = vrcp.f32 %v812_v43 }
 0x2f6   : > { %v1748_v48 = vpop.eup %1747 }
 0x2f7   : > { %v815_v49 = vmul.f32 %v1748_v48, %v1951_v60  ;;  %v814_v50 = vmul.f32 %v1748_v48, %v1953_v61  ;;  %v816_v51 = vmul.f32 %v1748_v48, %v1957_v63  ;;  %v817_v52 = vmul.f32 %v1748_v48, %v1955_v62 }
 0x2f9   : > { %v839_v53 = vmul.f32 %v826_v40, %v815_v49  ;;  %v838_v54 = vmul.f32 %v821_v41, %v814_v50  ;;  %v840_v55 = vmul.f32 %v831_v46, %v816_v51  ;;  %v841_v56 = vmul.f32 %v836_v47, %v817_v52  ;;  %v1740_v51 = vld [vmem:[%s2170_s5 + $0x8] ss:$12 sps:$4 sm:$0xff]   ;;  %v1142_v52 = vld [vmem:[%s2171_s6] sm:$0xff] }
 0x2fa   : > { %1673 = vmatprep.mubr.msk.bf16.mxu0 %vm628_vm1, %v1740_v51 }
 0x2fb   : > { %v862_v59 = vadd.f32 %v845_v44, %v838_v54  ;;  %v863_v0 = vadd.f32 %v850_v45, %v839_v53  ;;  %v864_v1 = vadd.f32 %v855_v57, %v840_v55  ;;  %v865_v2 = vadd.f32 %v860_v58, %v841_v56  ;;  %v1143_v53 = vld [vmem:[%s2171_s6 + $0x8] sm:$0xff]  ;;  %v1144_v54 = vld [vmem:[%s2171_s6 + $0x10] sm:$0xff]  ;;  %v1145_v55 = vld [vmem:[%s2171_s6 + $0x18] sm:$0xff] }
 0x2fd   : > { %v866_v3 = vmax.f32 %v862_v59, 0.0  ;;  %v867_v4 = vmax.f32 %v863_v0, 0.0  ;;  %v868_v5 = vmax.f32 %v864_v1, 0.0  ;;  %v869_v60 = vmax.f32 %v865_v2, 0.0 }
 0x2ff   : > { %v870_v6 = vpack.c.bf16 %v867_v4, %v866_v3  ;;  %v871_v61 = vpack.c.bf16 %v869_v60, %v868_v5 }
 0x301   : > { %874 = vrot.lane.b32.xlu1 %v870_v6, %s1774_s11  ;;  %876 = vrot.lane.b32.xlu0 %v871_v61, %s1774_s11 }
 0x373   : > { %v875_v62 = vpop.permute.xlu1 %874  ;;  %v877_v63 = vpop.permute.xlu0 %876 }
 0x374   : > { %881 = vst.msk [vmem:[#allocation3] sm:$0xff] %vm880_vm8, %v875_v62  ;;  %882 = vst.msk [vmem:[#allocation3 + $0x8] sm:$0xff] %vm880_vm8, %v877_v63 }
 0x37b   : > { %v883_v7 = vld [vmem:[#allocation3] sm:$0xff]  ;;  %v884_v8 = vld [vmem:[#allocation3 + $0x8] sm:$0xff] }
 0x37c   : > { %887 = vrot.lane.b32.xlu1 %v883_v7, %s1769_s19  ;;  %889 = vrot.lane.b32.xlu0 %v884_v8, %s1769_s19 }
 0x3ee   : > { %v888_v9 = vpop.permute.xlu1 %887  ;;  %v890_v10 = vpop.permute.xlu0 %889 }
 0x3ef   : > { %894 = vst.msk [vmem:[#allocation3] sm:$0xff] %vm893_vm9, %v888_v9  ;;  %895 = vst.msk [vmem:[#allocation3 + $0x8] sm:$0xff] %vm893_vm9, %v890_v10 }
 0x3f6   : > { %v896_v11 = vld [vmem:[#allocation3] sm:$0xff]  ;;  %v897_v12 = vld [vmem:[#allocation3 + $0x8] sm:$0xff] }
 0x3f7   : > { %900 = vrot.lane.b32.xlu1 %v896_v11, %s1775_s13  ;;  %902 = vrot.lane.b32.xlu0 %v897_v12, %s1775_s13 }
 0x469   : > { %v901_v13 = vpop.permute.xlu1 %900  ;;  %v903_v14 = vpop.permute.xlu0 %902 }
 0x46a   : > { %907 = vst.msk [vmem:[#allocation3] sm:$0xff] %vm906_vm10, %v901_v13  ;;  %908 = vst.msk [vmem:[#allocation3 + $0x8] sm:$0xff] %vm906_vm10, %v903_v14 }
 0x471   : > { %v909_v15 = vld [vmem:[#allocation3] sm:$0xff]  ;;  %v910_v16 = vld [vmem:[#allocation3 + $0x8] sm:$0xff] }
 0x472   : > { %913 = vrot.lane.b32.xlu1 %v909_v15, %s1769_s19  ;;  %915 = vrot.lane.b32.xlu0 %v910_v16, %s1769_s19 }
 0x4e4   : > { %v914_v17 = vpop.permute.xlu1 %913  ;;  %v916_v18 = vpop.permute.xlu0 %915 }
 0x4e5   : > { %920 = vst.msk [vmem:[#allocation3] sm:$0xff] %vm919_vm11, %v914_v17  ;;  %921 = vst.msk [vmem:[#allocation3 + $0x8] sm:$0xff] %vm919_vm11, %v916_v18 }
 0x4ec   : > { %v922_v20 = vld [vmem:[#allocation3] sm:$0xff]  ;;  %v923_v21 = vld [vmem:[#allocation3 + $0x8] sm:$0xff] }
 0x4ed   : > { %926 = vrot.lane.b32.xlu1 %v922_v20, %s1775_s13  ;;  %928 = vrot.lane.b32.xlu0 %v923_v21, %s1775_s13 }
 0x55f   : > { %v927_v23 = vpop.permute.xlu1 %926  ;;  %v929_v24 = vpop.permute.xlu0 %928 }
 0x560   : > { %933 = vst.msk [vmem:[#allocation3] sm:$0xff] %vm932_vm12, %v927_v23  ;;  %934 = vst.msk [vmem:[#allocation3 + $0x8] sm:$0xff] %vm932_vm12, %v929_v24 }
 0x567   : > { %v935_v25 = vld [vmem:[#allocation3] sm:$0xff]  ;;  %v936_v26 = vld [vmem:[#allocation3 + $0x8] sm:$0xff] }
 0x568   : > { %939 = vrot.lane.b32.xlu1 %v935_v25, %s1769_s19  ;;  %941 = vrot.lane.b32.xlu0 %v936_v26, %s1769_s19 }
 0x5da   : > { %v940_v27 = vpop.permute.xlu1 %939  ;;  %v942_v28 = vpop.permute.xlu0 %941 }
 0x5db   : > { %946 = vst.msk [vmem:[#allocation3] sm:$0xff] %vm945_vm13, %v940_v27  ;;  %947 = vst.msk [vmem:[#allocation3 + $0x8] sm:$0xff] %vm945_vm13, %v942_v28  ;;  %v1737_v28 = vld [vmem:[%s2170_s5] ss:$12 sps:$4 sm:$0xff]  }
 0x5e2   : > { %v948_v29 = vld [vmem:[#allocation3] sm:$0xff]  ;;  %v949_v30 = vld [vmem:[#allocation3 + $0x8] sm:$0xff] }
 0x5e3   : > { %952 = vrot.lane.b32.xlu1 %v948_v29, %s1775_s13  ;;  %954 = vrot.lane.b32.xlu0 %v949_v30, %s1775_s13  ;;  %v1742_v29 = vld [vmem:[%s2170_s5 + $0x1c] ss:$12 sps:$4 sm:$0xff]   ;;  %v1741_v30 = vld [vmem:[%s2170_s5 + $0x20] ss:$12 sps:$4 sm:$0xff]  }
 0x655   : > { %v953_v31 = vpop.permute.xlu1 %952  ;;  %v955_v32 = vpop.permute.xlu0 %954 }
 0x656   : > { %959 = vst.msk [vmem:[#allocation3] sm:$0xff] %vm958_vm14, %v953_v31  ;;  %960 = vst.msk [vmem:[#allocation3 + $0x8] sm:$0xff] %vm958_vm14, %v955_v32  ;;  %v1744_v31 = vld [vmem:[%s2170_s5 + $0x18] ss:$12 sps:$4 sm:$0xff]  }
 0x65d   : > { %v961_v33 = vld [vmem:[#allocation3] sm:$0xff]  ;;  %v962_v34 = vld [vmem:[#allocation3 + $0x8] sm:$0xff] }
 0x65e   : > { %965 = vrot.lane.b32.xlu1 %v961_v33, %s1769_s19  ;;  %967 = vrot.lane.b32.xlu0 %v962_v34, %s1769_s19 }
 0x6d0   : > { %v966_v35 = vpop.permute.xlu1 %965  ;;  %v968_v36 = vpop.permute.xlu0 %967 }
 0x6d1   : > { %972 = vst.msk [vmem:[#allocation3] sm:$0xff] %vm971_vm15, %v966_v35  ;;  %973 = vst.msk [vmem:[#allocation3 + $0x8] sm:$0xff] %vm971_vm15, %v968_v36 }
 0x6d8   : > { %v974_v37 = vld [vmem:[#allocation3] sm:$0xff]  ;;  %v975_v38 = vld [vmem:[#allocation3 + $0x8] sm:$0xff] }
 0x6d9   : > { %978 = vrot.lane.b32.xlu1 %v974_v37, %s1775_s13  ;;  %980 = vrot.lane.b32.xlu0 %v975_v38, %s1775_s13 }
 0x74b   : > { %v979_v39 = vpop.permute.xlu1 %978  ;;  %v981_v40 = vpop.permute.xlu0 %980 }
 0x74c   : > { %985 = vst.msk [vmem:[#allocation3] sm:$0xff] %vm984_vm2, %v979_v39  ;;  %986 = vst.msk [vmem:[#allocation3 + $0x8] sm:$0xff] %vm984_vm2, %v981_v40 }
 0x753   : > { %v987_v41 = vld [vmem:[#allocation3] sm:$0xff]  ;;  %v988_v42 = vld [vmem:[#allocation3 + $0x8] sm:$0xff] }
 0x754   : > { %991 = vrot.lane.b32.xlu1 %v987_v41, %s1768_s18  ;;  %993 = vrot.lane.b32.xlu0 %v988_v42, %s1768_s18 }
 0x7c6   : > { %v992_v43 = vpop.permute.xlu1 %991  ;;  %v994_v44 = vpop.permute.xlu0 %993 }
 0x7c7   : > { %998 = vst.msk [vmem:[#allocation3] sm:$0xff] %vm997_vm3, %v992_v43  ;;  %999 = vst.msk [vmem:[#allocation3 + $0x8] sm:$0xff] %vm997_vm3, %v994_v44 }
 0x7ce   : > { %v1000_v45 = vld [vmem:[#allocation3] sm:$0xff]  ;;  %v1001_v46 = vld [vmem:[#allocation3 + $0x8] sm:$0xff] }
 0x7cf   : > { %1004 = vrot.lane.b32.xlu1 %v1000_v45, %s1776_s22  ;;  %1006 = vrot.lane.b32.xlu0 %v1001_v46, %s1776_s22 }
 0x841   : > { %v1005_v47 = vpop.permute.xlu1 %1004  ;;  %v1007_v48 = vpop.permute.xlu0 %1006 }
 0x842   : > { %1011 = vst.msk [vmem:[#allocation3] sm:$0xff] %vm1010_vm4, %v1005_v47  ;;  %1012 = vst.msk [vmem:[#allocation3 + $0x8] sm:$0xff] %vm1010_vm4, %v1007_v48 }
 0x843   : > { %1014 = vst.msk [vmem:[#allocation3] sm:$0xff] %vm1013_vm6, %v1773_v22  ;;  %1015 = vst.msk [vmem:[#allocation3 + $0x8] sm:$0xff] %vm1013_vm6, %v1773_v22  ;;  %v1739_v22 = vld [vmem:[%s2170_s5 + $0x4] ss:$12 sps:$4 sm:$0xff]  }
 0x844   : > { %1234 = vmatprep.mubr.bf16.mxu1 %v1739_v22 }
 0x84a   : > { %v1016_v49 = vld [vmem:[#allocation3] sm:$0xff]  ;;  %v1017_v50 = vld [vmem:[#allocation3 + $0x8] sm:$0xff] }
 0x84b   : > { %1018 = vst.msk [vmem:[#allocation2] sm:$0xff] %vm369_vm0, %v1016_v49  ;;  %1019 = vst.msk [vmem:[#allocation2 + $0x8] sm:$0xff] %vm369_vm0, %v1017_v50  ;;  %1060 = vrot.lane.b32.xlu1 %v1016_v49, %s1765_s15  ;;  %1062 = vrot.lane.b32.xlu0 %v1017_v50, %s1765_s15 }
 0x84f   : > { %1072 = vrot.lane.b32.xlu1 %v1016_v49, %s1766_s16  ;;  %1024 = vrot.lane.b32.xlu0 %v1016_v49, %s1767_s17 }
 0x852   : > { %v1124_v0 = vld [vmem:[#allocation2] sm:$0xff]  ;;  %v1125_v5 = vld [vmem:[#allocation2 + $0x8] sm:$0xff] }
 0x853   : > { %1074 = vrot.lane.b32.xlu1 %v1017_v50, %s1766_s16  ;;  %1026 = vrot.lane.b32.xlu0 %v1017_v50, %s1767_s17 }
 0x857   : > { %1084 = vrot.lane.b32.xlu1 %v1016_v49, %s1768_s18  ;;  %1036 = vrot.lane.b32.xlu0 %v1016_v49, %s1769_s19 }
 0x85b   : > { %1086 = vrot.lane.b32.xlu1 %v1017_v50, %s1768_s18  ;;  %1038 = vrot.lane.b32.xlu0 %v1017_v50, %s1769_s19 }
 0x85f   : > { %1096 = vrot.lane.b32.xlu1 %v1016_v49, %s1770_s20  ;;  %1048 = vrot.lane.b32.xlu0 %v1016_v49, %s1771_s21 }
 0x863   : > { %1098 = vrot.lane.b32.xlu1 %v1017_v50, %s1770_s20  ;;  %1050 = vrot.lane.b32.xlu0 %v1017_v50, %s1771_s21 }
 0x867   : > { %1108 = vrot.lane.b32.xlu1 %v1016_v49, %s1772_s24  ;;  %1110 = vrot.lane.b32.xlu0 %v1017_v50, %s1772_s24 }
 0x86b   : > { %1148 = vperm.xlu1 %1700, %v1142_v52   ;;  %1153 = vperm.xlu0 %1699, %v1143_v53  }
 0x86f   : > { %1158 = vperm.xlu1 %1700, %v1144_v54   ;;  %1163 = vperm.xlu0 %1699, %v1145_v55  }
 0x8bd   : > { %v1061_v56 = vpop.permute.xlu1 %1060  ;;  %v1063_v57 = vpop.permute.xlu0 %1062 }
 0x8be   : > { %1066 = vst.msk [vmem:[#allocation2 + $0x40] sm:$0xff] %vm369_vm0, %v1061_v56  ;;  %1067 = vst.msk [vmem:[#allocation2 + $0x48] sm:$0xff] %vm369_vm0, %v1063_v57 }
 0x8c1   : > { %v1073_v58 = vpop.permute.xlu1 %1072  ;;  %v1025_v59 = vpop.permute.xlu0 %1024 }
 0x8c2   : > { %1078 = vst.msk [vmem:[#allocation2 + $0x50] sm:$0xff] %vm369_vm0, %v1073_v58  ;;  %1030 = vst.msk [vmem:[#allocation2 + $0x10] sm:$0xff] %vm369_vm0, %v1025_v59 }
 0x8c5   : > { %v1075_v1 = vpop.permute.xlu1 %1074  ;;  %v1132_v2 = vld [vmem:[#allocation2 + $0x40] sm:$0xff]  ;;  %v1027_v3 = vpop.permute.xlu0 %1026  ;;  %v1133_v4 = vld [vmem:[#allocation2 + $0x48] sm:$0xff] }
 0x8c6   : > { %1079 = vst.msk [vmem:[#allocation2 + $0x58] sm:$0xff] %vm369_vm0, %v1075_v1  ;;  %1629 = vmatprep.subr.bf16.mxu1 %v1132_v2  ;;  %1031 = vst.msk [vmem:[#allocation2 + $0x18] sm:$0xff] %vm369_vm0, %v1027_v3 }
 0x8c7   : > { %1630 = vmatpush3.bf16.msra.mxu1 %v1124_v0 }
 0x8c8   : > { %1631 = vmatprep.subr.bf16.mxu1 %v1133_v4 }
 0x8c9   : > { %v1085_v60 = vpop.permute.xlu1 %1084  ;;  %v1134_v6 = vld [vmem:[#allocation2 + $0x50] sm:$0xff]  ;;  %v1037_v61 = vpop.permute.xlu0 %1036 }
 0x8ca   : > { %1090 = vst.msk [vmem:[#allocation2 + $0x60] sm:$0xff] %vm369_vm0, %v1085_v60  ;;  %1042 = vst.msk [vmem:[#allocation2 + $0x20] sm:$0xff] %vm369_vm0, %v1037_v61  ;;  %v1126_v62 = vld [vmem:[#allocation2 + $0x10] sm:$0xff] }
 0x8cb   : > { %1632 = vmatpush3.bf16.msra.mxu1 %v1125_v5 }
 0x8cc   : > { %1633 = vmatprep.subr.bf16.mxu1 %v1134_v6 }
 0x8cd   : > { %v1087_v63 = vpop.permute.xlu1 %1086  ;;  %v1135_v7 = vld [vmem:[#allocation2 + $0x58] sm:$0xff]  ;;  %v1039_v8 = vpop.permute.xlu0 %1038 }
 0x8ce   : > { %1091 = vst.msk [vmem:[#allocation2 + $0x68] sm:$0xff] %vm369_vm0, %v1087_v63  ;;  %1043 = vst.msk [vmem:[#allocation2 + $0x28] sm:$0xff] %vm369_vm0, %v1039_v8  ;;  %v1127_v9 = vld [vmem:[#allocation2 + $0x18] sm:$0xff] }
 0x8cf   : > { %1634 = vmatpush3.bf16.msra.mxu1 %v1126_v62 }
 0x8d0   : > { %1635 = vmatprep.subr.bf16.mxu1 %v1135_v7 }
 0x8d1   : > { %v1097_v10 = vpop.permute.xlu1 %1096  ;;  %v1136_v11 = vld [vmem:[#allocation2 + $0x60] sm:$0xff]  ;;  %v1049_v12 = vpop.permute.xlu0 %1048 }
 0x8d2   : > { %1102 = vst.msk [vmem:[#allocation2 + $0x70] sm:$0xff] %vm369_vm0, %v1097_v10  ;;  %1054 = vst.msk [vmem:[#allocation2 + $0x30] sm:$0xff] %vm369_vm0, %v1049_v12  ;;  %v1128_v13 = vld [vmem:[#allocation2 + $0x20] sm:$0xff] }
 0x8d3   : > { %1636 = vmatpush3.bf16.msra.mxu1 %v1127_v9 }
 0x8d4   : > { %1637 = vmatprep.subr.bf16.mxu1 %v1136_v11 }
 0x8d5   : > { %v1099_v14 = vpop.permute.xlu1 %1098  ;;  %v1137_v15 = vld [vmem:[#allocation2 + $0x68] sm:$0xff]  ;;  %v1051_v16 = vpop.permute.xlu0 %1050 }
 0x8d6   : > { %1103 = vst.msk [vmem:[#allocation2 + $0x78] sm:$0xff] %vm369_vm0, %v1099_v14  ;;  %1055 = vst.msk [vmem:[#allocation2 + $0x38] sm:$0xff] %vm369_vm0, %v1051_v16  ;;  %v1129_v17 = vld [vmem:[#allocation2 + $0x28] sm:$0xff] }
 0x8d7   : > { %1638 = vmatpush3.bf16.msra.mxu1 %v1128_v13 }
 0x8d8   : > { %1639 = vmatprep.subr.bf16.mxu1 %v1137_v15 }
 0x8d9   : > { %v1109_v18 = vpop.permute.xlu1 %1108  ;;  %v1138_v20 = vld [vmem:[#allocation2 + $0x70] sm:$0xff]  ;;  %v1111_v21 = vpop.permute.xlu0 %1110 }
 0x8da   : > { %1114 = vst.msk [vmem:[#allocation2 + $0x80] sm:$0xff] %vm369_vm0, %v1109_v18  ;;  %1115 = vst.msk [vmem:[#allocation2 + $0x88] sm:$0xff] %vm369_vm0, %v1111_v21  ;;  %v1130_v23 = vld [vmem:[#allocation2 + $0x30] sm:$0xff] }
 0x8db   : > { %1640 = vmatpush3.bf16.msra.mxu1 %v1129_v17 }
 0x8dc   : > { %1641 = vmatprep.subr.bf16.mxu1 %v1138_v20 }
 0x8dd   : > { %v1139_v24 = vld [vmem:[#allocation2 + $0x78] sm:$0xff] }
 0x8de   : > { %v1131_v25 = vld [vmem:[#allocation2 + $0x38] sm:$0xff] }
 0x8df   : > { %1642 = vmatpush3.bf16.msra.mxu1 %v1130_v23 }
 0x8e0   : > { %1643 = vmatprep.subr.bf16.mxu1 %v1139_v24 }
 0x8e1   : > { %v1140_v26 = vld [vmem:[#allocation2 + $0x80] sm:$0xff]  ;;  %v1141_v27 = vld [vmem:[#allocation2 + $0x88] sm:$0xff] }
 0x8e2   : > { %1669 = vmatprep.subr.bf16.mxu0 %v1140_v26 }
 0x8e3   : > { %1644 = vmatpush3.bf16.msra.mxu1 %v1131_v25  ;;  %1670 = vmatpush3.bf16.msra.mxu0 %v1140_v26 }
 0x8e4   : > { %1671 = vmatprep.subr.bf16.mxu0 %v1141_v27 }
 0x8e6   : > { %1235 = vmatmul.mubr.bf16.vlgmr.msra.gmra.mrb[4].mxu1 %v1737_v28 }
 0x8e7   : > { %1672 = vmatpush3.bf16.msra.mxu0 %v1141_v27  ;;  %1242 = vmatprep.mubr.bf16.mxu1 %v1742_v29 }
 0x8ea   : > { %1674 = vmatmul.mubr.msk.bf16.vlgmr.msra.gmra.mrb[8].mxu0 %vm628_vm1, %v1741_v30  ;;  %v1149_v36 = vpop.permute.xlu1 %1148  ;;  %v1154_v41 = vpop.permute.xlu0 %1153 }
 0x8ee   : > { %1243 = vmatmul.mubr.bf16.gmra.mrb[8].mxu1 %v1744_v31  ;;  %v1159_v54 = vpop.permute.xlu1 %1158  ;;  %v1164_v59 = vpop.permute.xlu0 %1163 }
 0x9b9   : > { %v1645_v32 = vpop.f32.mrb[4].mxu1 }
 0x9ba   : > { %v1646_v33 = vpop.f32.mrb[5].mxu1 }
 0x9bb   : > { %v1647_v34 = vadd.f32 %v1646_v33, %v1645_v32  ;;  %v1648_v35 = vpop.f32.mrb[6].mxu1 }
 0x9bc   : > { %v1649_v37 = vpop.f32.mrb[7].mxu1 }
 0x9bd   : > { %v1650_v38 = vadd.f32 %v1649_v37, %v1648_v35  ;;  %v1675_v39 = vpop.f32.mrb[8].mxu0  ;;  %v1237_v40 = vadd.f32 %v1647_v34, %v1149_v36  ;;  %v1302_v35 = vld [vmem:[%s2172_s7 + $0x10] sm:$0xff]  ;;  %v1300_v36 = vld [vmem:[%s2172_s7] sm:$0xff] }
 0x9be   : > { %v1285_v42 = vpop.f32.mrb[9].mxu0  ;;  %v1304_v37 = vld [vmem:[%s2173_s8] sm:$0xff] }
 0x9bf   : > { %v1286_v43 = vadd.f32 %v1285_v42, %v1237_v40  ;;  %v1676_v44 = vpop.f32.mrb[10].mxu0  ;;  %v1240_v45 = vadd.f32 %v1650_v38, %v1154_v41  ;;  %v1589_v38 = vld [vmem:[%s1843_s14] sm:$0xff]   ;;  %v1306_v42 = vld [vmem:[%s2173_s8 + $0x10] sm:$0xff] }
 0x9c0   : > { %v1288_v46 = vpop.f32.mrb[11].mxu0  ;;  %v1590_v40 = vunpack.c.l.bf16 %v1589_v38  ;;  %v1591_v41 = vunpack.c.h.bf16 %v1589_v38 }
 0x9c1   : > { %v1289_v47 = vadd.f32 %v1288_v46, %v1240_v45  ;;  %v1651_v48 = vpop.f32.mrb[8].mxu1  ;;  %v1308_v49 = vsel %vm1935_vm5, %v1286_v43, 0.0 }
 0x9c2   : > { %v1652_v50 = vpop.f32.mrb[9].mxu1  ;;  %v1312_v22 = vsel %vm369_vm0, %v1308_v49, 0.0  ;;  %v1701_v45 = vpack.i.bf16 %v1591_v41, %v1590_v40 }
 0x9c3   : > { %v1653_v51 = vadd.f32 %v1652_v50, %v1651_v48  ;;  %v1654_v52 = vpop.f32.mrb[10].mxu1  ;;  %1313 = vadd.xlane.f32.xlu1 %v1312_v22  ;;  %v1309_v53 = vsel %vm1935_vm5, %v1289_v47, 0.0  ;;  %v1307_v48 = vld [vmem:[%s2173_s8 + $0x18] sm:$0xff] }
 0x9c4   : > { %v1655_v55 = vpop.f32.mrb[11].mxu1  ;;  %v1315_v56 = vsel %vm369_vm0, %v1309_v53, 0.0 }
 0x9c5   : > { %v1245_v57 = vadd.f32 %v1653_v51, %v1159_v54  ;;  %v1656_v58 = vadd.f32 %v1655_v55, %v1654_v52  ;;  %1316 = vadd.xlane.f32.xlu0 %v1315_v56 }
 0x9c7   : > { %v1248_v0 = vadd.f32 %v1656_v58, %v1164_v59  ;;  %v1294_v1 = vadd.f32 %v1675_v39, %v1245_v57  ;;  %v1303_v39 = vld [vmem:[%s2172_s7 + $0x18] sm:$0xff] }
 0x9c9   : > { %v1310_v2 = vsel %vm1935_vm5, %v1294_v1, 0.0  ;;  %v1297_v3 = vadd.f32 %v1676_v44, %v1248_v0  ;;  %v1596_v44 = vld [vmem:[%s1843_s14 + $0x8] sm:$0xff]   ;;  %s2178_s14 = sshll.u32 %s2180_s10, 4 }
 0x9ca   : > { %v1318_v4 = vsel %vm369_vm0, %v1310_v2, 0.0  ;;  %v1594_v46 = vunpack.c.l.bf16 %v1596_v44  ;;  %s332_s18 = scalar_lea.vmem %s2174_s9, %s2178_s14 }
 0x9cb   : > { %1319 = vadd.xlane.f32.xlu0 %v1318_v4  ;;  %v1311_v5 = vsel %vm1935_vm5, %v1297_v3, 0.0 }
 0x9cc   : > { %v1321_v60 = vsel %vm369_vm0, %v1311_v5, 0.0 }
 0x9cd   : > { %1322 = vadd.xlane.f32.xlu1 %v1321_v60 }
 0xa50   : > { %v1314_v61 = vpop.xlane.xlu1 %1313 }
 0xa52   : > { %v1317_v6 = vpop.xlane.xlu0 %1316 }
 0xa53   : > { %v1324_v62 = vadd.f32 %v1317_v6, %v1314_v61 }
 0xa58   : > { %v1320_v63 = vpop.xlane.xlu0 %1319 }
 0xa59   : > { %v1325_v7 = vadd.f32 %v1324_v62, %v1320_v63 }
 0xa5a   : > { %v1323_v8 = vpop.xlane.xlu1 %1322 }
 0xa5b   : > { %v1326_v9 = vadd.f32 %v1325_v7, %v1323_v8 }
 0xa5d   : > { %v1327_v10 = vrot.slane %v1326_v9, 4 }
 0xa5f   : > { %v1328_v11 = vadd.f32 %v1327_v10, %v1326_v9 }
 0xa61   : > { %v1329_v12 = vrot.slane %v1328_v11, 2 }
 0xa63   : > { %v1330_v13 = vadd.f32 %v1329_v12, %v1328_v11 }
 0xa65   : > { %v1331_v14 = vrot.slane %v1330_v13, 1 }
 0xa67   : > { %v1332_v15 = vadd.f32 %v1331_v14, %v1330_v13 }
 0xa69   : > { %v1333_v16 = vmul.f32 0.001953125, %v1332_v15 }
 0xa6b   : > { %v2101_v17 = vsub.f32 %v1289_v47, %v1333_v16  ;;  %v2103_v18 = vsub.f32 %v1286_v43, %v1333_v16  ;;  %v2105_v20 = vsub.f32 %v1297_v3, %v1333_v16  ;;  %v2107_v21 = vsub.f32 %v1294_v1, %v1333_v16  ;;  %v1305_v43 = vld [vmem:[%s2173_s8 + $0x8] sm:$0xff] }
 0xa6c   : > { %v1595_v47 = vunpack.c.h.bf16 %v1596_v44 }
 0xa6d   : > { %v1339_v23 = vsel %vm1935_vm5, %v2101_v17, 0.0  ;;  %v1338_v24 = vsel %vm1935_vm5, %v2103_v18, 0.0  ;;  %v1341_v25 = vsel %vm1935_vm5, %v2105_v20, 0.0  ;;  %v1340_v26 = vsel %vm1935_vm5, %v2107_v21, 0.0 }
 0xa6e   : > { %v1343_v27 = vmul.f32 %v1339_v23, %v1339_v23  ;;  %v1342_v28 = vmul.f32 %v1338_v24, %v1338_v24  ;;  %v1345_v31 = vmul.f32 %v1341_v25, %v1341_v25  ;;  %v1344_v32 = vmul.f32 %v1340_v26, %v1340_v26 }
 0xa6f   : > { %v1706_v49 = vpack.i.bf16 %v1595_v47, %v1594_v46  ;;  %vm1473_vm5 = vcmask 191488  }
 0xa70   : > { %v1349_v29 = vsel %vm369_vm0, %v1343_v27, 0.0  ;;  %v1346_v30 = vsel %vm369_vm0, %v1342_v28, 0.0  ;;  %v1355_v33 = vsel %vm369_vm0, %v1345_v31, 0.0  ;;  %v1352_v34 = vsel %vm369_vm0, %v1344_v32, 0.0 }
 0xa71   : > { %1350 = vadd.xlane.f32.xlu1 %v1349_v29  ;;  %1347 = vadd.xlane.f32.xlu0 %v1346_v30 }
 0xa75   : > { %1356 = vadd.xlane.f32.xlu1 %v1355_v33  ;;  %1353 = vadd.xlane.f32.xlu0 %v1352_v34 }
 0xa86   : > { %1388 = vperm.xlu1 %1700, %v1301_v19  }
 0xa8a   : > { %1393 = vperm.xlu1 %1700, %v1302_v35  }
 0xa8b   : > { %1383 = vperm.xlu0 %1699, %v1300_v36  }
 0xa8e   : > { %1407 = vperm.xlu1 %1700, %v1304_v37  }
 0xa8f   : > { %1398 = vperm.xlu0 %1699, %v1303_v39  }
 0xa92   : > { %1417 = vperm.xlu1 %1700, %v1306_v42  }
 0xa93   : > { %1412 = vperm.xlu0 %1699, %v1305_v43  }
 0xa96   : > { %1702 = vrot.lane.b32.xlu1 %v1701_v45, %s1765_s15 }
 0xa97   : > { %1422 = vperm.xlu0 %1699, %v1307_v48  }
 0xa9b   : > { %1707 = vrot.lane.b32.xlu0 %v1706_v49, %s1765_s15 }
 0xafe   : > { %v1351_v50 = vpop.xlane.xlu1 %1350  ;;  %v1348_v22 = vpop.xlane.xlu0 %1347 }
 0xaff   : > { %v1358_v51 = vadd.f32 %v1351_v50, %v1348_v22 }
 0xb02   : > { %v1354_v52 = vpop.xlane.xlu0 %1353  ;;  %v1357_v54 = vpop.xlane.xlu1 %1356 }
 0xb03   : > { %v1359_v53 = vadd.f32 %v1358_v51, %v1354_v52 }
 0xb05   : > { %v1360_v55 = vadd.f32 %v1359_v53, %v1357_v54 }
 0xb06   : > { %v1389_v3 = vpop.permute.xlu1 %1388 }
 0xb07   : > { %v1361_v56 = vrot.slane %v1360_v55, 4 }
 0xb09   : > { %v1362_v57 = vadd.f32 %v1361_v56, %v1360_v55 }
 0xb0a   : > { %v1384_v4 = vpop.permute.xlu0 %1383  ;;  %v1394_v60 = vpop.permute.xlu1 %1393 }
 0xb0b   : > { %v1363_v58 = vrot.slane %v1362_v57, 2 }
 0xb0d   : > { %v1364_v59 = vadd.f32 %v1363_v58, %v1362_v57 }
 0xb0e   : > { %v1399_v6 = vpop.permute.xlu0 %1398  ;;  %v1408_v9 = vpop.permute.xlu1 %1407 }
 0xb0f   : > { %v1365_v0 = vrot.slane %v1364_v59, 1 }
 0xb11   : > { %v1366_v1 = vadd.f32 %v1365_v0, %v1364_v59 }
 0xb12   : > { %v1413_v10 = vpop.permute.xlu0 %1412  ;;  %v1418_v11 = vpop.permute.xlu1 %1417 }
 0xb13   : > { %v1367_v2 = vmul.f32 0.0019569471, %v1366_v1 }
 0xb15   : > { %1749 = vrsqrt.f32 %v1367_v2  ;;  %vm1370_vm0 = vcmp.eq.f32.partialorder %v1367_v2, inf  ;;  %v1373_v62 = vand.u32 2147483648, %v1367_v2  ;;  %vm1372_vm1 = vcmp.eq.f32.partialorder %v1367_v2, 0.0 }
 0xb16   : > { %v1423_v12 = vpop.permute.xlu0 %1422  ;;  %v1703_v13 = vpop.permute.xlu1 %1702 }
 0xb1a   : > { %v1708_v14 = vpop.permute.xlu0 %1707 }
 0xb1f   : > { %v1750_v5 = vpop.eup %1749 }
 0xb20   : > { %v1369_v61 = vmul.f32 %v1750_v5, %v1367_v2 }
 0xb22   : > { %v1371_v63 = vsel %vm1370_vm0, %v1367_v2, %v1369_v61 }
 0xb23   : > { %v1374_v7 = vsel %vm1372_vm1, %v1373_v62, %v1371_v63 }
 0xb24   : > { %v1375_v8 = vadd.f32 1e-05, %v1374_v7 }
 0xb26   : > { %1751 = vrcp.f32 %v1375_v8 }
 0xb30   : > { %v1752_v15 = vpop.eup %1751 }
 0xb31   : > { %v1378_v16 = vmul.f32 %v1752_v15, %v2101_v17  ;;  %v1379_v23 = vmul.f32 %v1752_v15, %v2107_v21  ;;  %v1377_v24 = vmul.f32 %v1752_v15, %v2103_v18  ;;  %v1380_v25 = vmul.f32 %v1752_v15, %v2105_v20 }
 0xb33   : > { %v1402_v26 = vmul.f32 %v1389_v3, %v1378_v16  ;;  %v1403_v27 = vmul.f32 %v1394_v60, %v1379_v23  ;;  %v1401_v28 = vmul.f32 %v1384_v4, %v1377_v24  ;;  %v1404_v29 = vmul.f32 %v1399_v6, %v1380_v25 }
 0xb35   : > { %v1425_v30 = vadd.f32 %v1408_v9, %v1401_v28  ;;  %v1427_v31 = vadd.f32 %v1418_v11, %v1403_v27  ;;  %v1426_v32 = vadd.f32 %v1413_v10, %v1402_v26  ;;  %v1428_v33 = vadd.f32 %v1423_v12, %v1404_v29 }
 0xb37   : > { %v1753_v34 = vadd.low.f32.bf16 %v1425_v30, %v1703_v13  ;;  %v1754_v19 = vadd.high.f32.bf16 %v1426_v32, %v1703_v13  ;;  %v1755_v35 = vadd.high.f32.bf16 %v1428_v33, %v1708_v14  ;;  %v1756_v36 = vadd.low.f32.bf16 %v1427_v31, %v1708_v14 }
 0xb39   : > { %v1584_v17 = vpack.c.bf16 %v1753_v34, %v1753_v34  ;;  %v1585_v18 = vpack.c.bf16 %v1754_v19, %v1754_v19  ;;  %v1587_v20 = vpack.c.bf16 %v1755_v35, %v1755_v35  ;;  %v1586_v21 = vpack.c.bf16 %v1756_v36, %v1756_v36 }
 0xb3b   : > { %1474 = vst.msk [vmem:[%s332_s18] sm:$0xf] %vm1473_vm5, %v1584_v17  ;;  %1475 = vst.msk [vmem:[%s332_s18 + $0x4] sm:$0xf] %vm1473_vm5, %v1585_v18 }
 0xb3c   : > { %1477 = vst.msk [vmem:[%s332_s18 + $0xc] sm:$0xf] %vm1473_vm5, %v1587_v20  ;;  %1476 = vst.msk [vmem:[%s332_s18 + $0x8] sm:$0xf] %vm1473_vm5, %v1586_v21 }
 0xb3d PF: > { %s19_s30 = sadd.s32 1, %s1763_s30  }
 0xb3e   : > { %p16_p4 = scmp.ge.s32.totalorder %s19_s30, 4  }
 0xb40   :  { %18 = sbr.rel (!%p16_p4) target bundleno = 1 (0x1), region = 86 }

</bundles_post_ra>
